<compile_context>
chip_gen: v6e
topology: v6e:2x2x1
jax: 0.10.0
libtpu: 0.0.40
codegen_flags: <defaults>
</compile_context>

<pallas_src>
import functools

import jax
import jax.numpy as jnp
from jax.experimental import pallas as pl
from jax.experimental.pallas import tpu as pltpu

LANE = 128                     # lane-padded channel / feature width
K = 5                          # conv kernel size
C1, C2, C3 = 6, 16, 120        # conv1 / conv2 / conv3 output channels
F1 = 84                        # fc1 output features
KG = 5                         # conv2 kw lane groups (width C1=6 -> lanes 0..29)
CG = 8                         # channel-replica groups for conv3 (8*C2 = 128 lanes)

HIN = 32                       # input spatial size
HC1 = 28                       # conv1 valid-output spatial
HP1 = 14                       # pool1 output spatial
HC2 = 10                       # conv2 valid-output spatial
HP2 = 5                        # pool2 output spatial

N1 = HC1 * HC1                        # 784: rows of im2col patches / conv1 output
N2 = HP1 * HP1                        # 196: rows of pool1 output (dense 14x14)
MV2 = N2 - (K - 1) * HP1 - (K - 1)    # 136: rows covering all valid conv2 outputs
N2P = MV2 + (K - 1) * HP1             # 192: rows of the kw-packed conv2 lhs
N4 = 32                               # pool2 output rows (25 valid, padded to x8)


# ----------------------------------------------------------------------------
# Fused kernel: one grid step == one image
# ----------------------------------------------------------------------------
def lenet5_kernel(xp_ref, w1_ref, b1_ref, p1_ref, m6_ref, w2_ref, b2_ref,
                  p2_ref, m16_ref, w3_ref, b3_ref, fw1_ref, fb1_ref,
                  fw2_ref, fb2_ref, o_ref, act2_ref, act2p_ref, a4_ref):
    f32 = jnp.float32
    bf16 = jnp.bfloat16

    # ---- conv1 + tanh: single matmul over wrapper-side im2col patches -------
    # xp_ref[0]: (784,128) bf16, lane t = kh*5+kw of the 5x5 window.
    a1 = jnp.dot(xp_ref[0], w1_ref[...], preferred_element_type=f32)  # (784,128)
    act1 = jnp.tanh(a1 + b1_ref[...]).astype(bf16)

    # ---- avgpool1 as matmul: (196,784) x (784,128) -> dense 14x14 layout -----
    # Output channels arrive replicated x5 in lane groups of 6 (via w1 columns).
    act2_ref[...] = jnp.dot(p1_ref[...], act1,
                            preferred_element_type=f32).astype(bf16)

    # ---- conv2 + tanh: pack the 5 kw shifts into lane groups, then 5 matmuls --
    # act2p[r, 6g+c] = act2[r+g, c]   (masked merge of 5 row-shifted copies)
    a2p = act2_ref[pl.ds(0, N2P), :] * m6_ref[pl.ds(0, 1), :]
    for g in range(1, KG):
        a2p += act2_ref[pl.ds(g, N2P), :] * m6_ref[pl.ds(g, 1), :]
    act2p_ref[...] = a2p                                              # (192,128) bf16

    a3 = jnp.dot(act2p_ref[pl.ds(0, MV2), :], w2_ref[0],
                 preferred_element_type=f32)
    for kh in range(1, K):
        a3 = a3 + jnp.dot(act2p_ref[pl.ds(kh * HP1, MV2), :], w2_ref[kh],
                          preferred_element_type=f32)
    act3 = jnp.tanh(a3 + b2_ref[...]).astype(bf16)                    # (136,128)

    # ---- avgpool2 as matmul: (32,136) x (136,128); rows 25..31 are zero ------
    a4_ref[...] = jnp.dot(p2_ref[...], act3,
                          preferred_element_type=f32).astype(bf16)    # (32,128)

    # ---- conv3 + tanh: pack 4 pooled positions x 8 channel groups per matmul --
    # a4p[q, 16g+c] = a4[4g+q, c]
    a4p = a4_ref[pl.ds(0, 4), :] * m16_ref[pl.ds(0, 1), :]
    for g in range(1, CG):
        a4p += a4_ref[pl.ds(4 * g, 4), :] * m16_ref[pl.ds(g, 1), :]
    acc3 = jnp.dot(a4p[0:1, :], w3_ref[0], preferred_element_type=f32)
    for q in range(1, 4):
        acc3 = acc3 + jnp.dot(a4p[q:q + 1, :], w3_ref[q],
                              preferred_element_type=f32)
    h0 = jnp.tanh(acc3 + b3_ref[...])                                 # (1,128)

    # ---- classifier: fc1 + tanh, fc2 ------------------------------------------
    h1 = jnp.tanh(jnp.dot(h0.astype(bf16), fw1_ref[...],
                          preferred_element_type=f32) + fb1_ref[...])
    logits = jnp.dot(h1.astype(bf16), fw2_ref[...],
                     preferred_element_type=f32) + fb2_ref[...]       # (1,128)
    o_ref[0] = logits


# ----------------------------------------------------------------------------
# One-time parameter preparation (pack / replicate / pad / cast, pool matrices)
# ----------------------------------------------------------------------------
def _pool_matrix(src_stride, src_rows, dst_hw, out_rows):
    """(out_rows, src_rows) bf16: 0.25 over each 2x2 window, else 0."""
    r = jnp.arange(out_rows)
    c = jnp.arange(src_rows)
    ri, rj = (r // dst_hw)[:, None], (r % dst_hw)[:, None]
    ch, cw = (c // src_stride)[None, :], (c % src_stride)[None, :]
    hit = (r[:, None] < dst_hw * dst_hw) & ((ch // 2) == ri) & ((cw // 2) == rj)
    return jnp.where(hit, 0.25, 0.0).astype(jnp.bfloat16)


def prepare_params(params):
    f32, bf16 = jnp.float32, jnp.bfloat16

    # conv1: rows t = kh*5+kw ; cols g*6+c, channels replicated in KG lane groups.
    w1 = params["conv1_w"]                                       # (6,1,5,5)
    w1t = jnp.transpose(w1[:, 0], (1, 2, 0)).reshape(K * K, C1)  # (25,6) [t, cout]
    w1p = jnp.zeros((LANE, LANE), f32)
    b1p = jnp.zeros((1, LANE), f32)
    for g in range(KG):
        w1p = w1p.at[:K * K, g * C1:(g + 1) * C1].set(w1t)
        b1p = b1p.at[0, g * C1:(g + 1) * C1].set(params["conv1_b"])

    # conv2: per-kh weights; rows kw*6+cin ; cols g*16+cout replicated in CG groups.
    w2 = params["conv2_w"]                                       # (16,6,5,5)
    w2kw = jnp.transpose(w2, (3, 1, 0, 2))                       # (kw,cin,cout,kh)
    w2p = jnp.zeros((K, LANE, LANE), f32)
    b2p = jnp.zeros((1, LANE), f32)
    for kh in range(K):
        sub = w2kw[:, :, :, kh].reshape(K * C1, C2)              # (30,16)
        for g in range(CG):
            w2p = w2p.at[kh, :K * C1, g * C2:(g + 1) * C2].set(sub)
    for g in range(CG):
        b2p = b2p.at[0, g * C2:(g + 1) * C2].set(params["conv2_b"])

    # conv3: 4 matmuls; rows g*16+cin hold the tap p = 4g+q (p<25), cols cout.
    w3 = params["conv3_w"]                                       # (120,16,5,5)
    w3f = jnp.transpose(w3, (2, 3, 1, 0)).reshape(K * K, C2, C3)  # (25,16,120)
    w3p = jnp.zeros((4, LANE, LANE), f32)
    for p in range(K * K):
        g, q = divmod(p, 4)
        w3p = w3p.at[q, g * C2:(g + 1) * C2, :C3].set(w3f[p])
    b3p = jnp.zeros((1, LANE), f32).at[0, :C3].set(params["conv3_b"])

    # fully connected layers (PyTorch stores (out, in)).
    fw1 = jnp.zeros((LANE, LANE), f32).at[:C3, :F1].set(params["fc1_w"].T)
    fb1 = jnp.zeros((1, LANE), f32).at[0, :F1].set(params["fc1_b"])
    n_cls = params["fc2_w"].shape[0]
    assert n_cls <= LANE
    fw2 = jnp.zeros((LANE, LANE), f32).at[:F1, :n_cls].set(params["fc2_w"].T)
    fb2 = jnp.zeros((1, LANE), f32).at[0, :n_cls].set(params["fc2_b"])

    # pool selection matrices + lane-group masks.
    p1 = _pool_matrix(src_stride=HC1, src_rows=N1, dst_hw=HP1, out_rows=N2)
    p2 = _pool_matrix(src_stride=HP1, src_rows=MV2, dst_hw=HP2, out_rows=N4)
    lanes = jnp.arange(LANE)
    m6 = jnp.stack([(lanes >= g * C1) & (lanes < (g + 1) * C1)
                    for g in range(KG)]).astype(bf16)             # (5,128)
    m16 = jnp.stack([(lanes >= g * C2) & (lanes < (g + 1) * C2)
                     for g in range(CG)]).astype(bf16)            # (8,128)

    return dict(w1=w1p.astype(bf16), b1=b1p, p1=p1, m6=m6,
                w2=w2p.astype(bf16), b2=b2p, p2=p2, m16=m16,
                w3=w3p.astype(bf16), b3=b3p,
                fw1=fw1.astype(bf16), fb1=fb1,
                fw2=fw2.astype(bf16), fb2=fb2)


# ----------------------------------------------------------------------------
# Forward
# ----------------------------------------------------------------------------
@functools.partial(jax.jit, static_argnums=(2,))
def lenet5_forward(prep, x, n_classes):
    B = x.shape[0]
    img = x[:, 0, :, :]                                            # (B,32,32)
    # Layout plumbing: conv1 im2col — lane t = kh*5+kw holds x[h+kh, w+kw]
    # for output row r = h*28+w.  (25 real lanes, padded to 128.)
    cols = [img[:, kh:kh + HC1, kw:kw + HC1] for kh in range(K) for kw in range(K)]
    patches = jnp.stack(cols, axis=-1).reshape(B, N1, K * K)
    patches = jnp.pad(patches, ((0, 0), (0, 0), (0, LANE - K * K))
                      ).astype(jnp.bfloat16)                       # (B,784,128)

    def full(shape):
        return pl.BlockSpec(shape, lambda b, _n=len(shape): (0,) * _n)

    out = pl.pallas_call(
        lenet5_kernel,
        out_shape=jax.ShapeDtypeStruct((B, 1, LANE), jnp.float32),
        grid=(B,),
        in_specs=[
            pl.BlockSpec((1, N1, LANE), lambda b: (b, 0, 0)),      # im2col patches
            full((LANE, LANE)), full((1, LANE)),                   # w1, b1
            full((N2, N1)),                                        # pool1 matrix
            full((KG, LANE)),                                      # conv2 lane masks
            full((K, LANE, LANE)), full((1, LANE)),                # w2, b2
            full((N4, MV2)),                                       # pool2 matrix
            full((CG, LANE)),                                      # conv3 lane masks
            full((4, LANE, LANE)), full((1, LANE)),                # w3, b3
            full((LANE, LANE)), full((1, LANE)),                   # fc1
            full((LANE, LANE)), full((1, LANE)),                   # fc2
        ],
        out_specs=pl.BlockSpec((1, 1, LANE), lambda b: (b, 0, 0)),
        scratch_shapes=[
            pltpu.VMEM((N2, LANE), jnp.bfloat16),     # pool1 output (dense 14x14)
            pltpu.VMEM((N2P, LANE), jnp.bfloat16),    # kw-packed conv2 lhs
            pltpu.VMEM((N4, LANE), jnp.bfloat16),     # pool2 output
        ],
        compiler_params=pltpu.CompilerParams(
            dimension_semantics=("parallel",)),
    )(patches, prep["w1"], prep["b1"], prep["p1"], prep["m6"], prep["w2"],
      prep["b2"], prep["p2"], prep["m16"], prep["w3"], prep["b3"],
      prep["fw1"], prep["fb1"], prep["fw2"], prep["fb2"])

    # The PyTorch module computes softmax(logits) but returns logits; the
    # softmax is dead code and intentionally omitted.
    return out.reshape(B, LANE)[:, :n_classes]


# ----------------------------------------------------------------------------
# Pure-JAX reference (f32) for correctness checking
# ----------------------------------------------------------------------------
def lenet5_reference(params, x):
    def conv(a, w, b):
        out = jax.lax.conv_general_dilated(
            a, w, (1, 1), "VALID", dimension_numbers=("NCHW", "OIHW", "NCHW"))
        return out + b[None, :, None, None]

    def avgpool2(a):
        b, c, h, w = a.shape
        return a.reshape(b, c, h // 2, 2, w // 2, 2).mean(axis=(3, 5))

    a = jnp.tanh(conv(x, params["conv1_w"], params["conv1_b"]))
    a = avgpool2(a)
    a = jnp.tanh(conv(a, params["conv2_w"], params["conv2_b"]))
    a = avgpool2(a)
    a = jnp.tanh(conv(a, params["conv3_w"], params["conv3_b"]))
    a = a.reshape(a.shape[0], -1)
    a = jnp.tanh(a @ params["fc1_w"].T + params["fc1_b"])
    return a @ params["fc2_w"].T + params["fc2_b"]


# ----------------------------------------------------------------------------
# Parameter init (matches PyTorch default uniform fan-in init bounds)
# ----------------------------------------------------------------------------
def init_lenet5_params(key, n_classes):
    ks = jax.random.split(key, 10)

    def u(k, shape, fan_in):
        bound = 1.0 / jnp.sqrt(jnp.float32(fan_in))
        return jax.random.uniform(k, shape, jnp.float32, -bound, bound)

    return {
        "conv1_w": u(ks[0], (C1, 1, K, K), 1 * K * K),
        "conv1_b": u(ks[1], (C1,), 1 * K * K),
        "conv2_w": u(ks[2], (C2, C1, K, K), C1 * K * K),
        "conv2_b": u(ks[3], (C2,), C1 * K * K),
        "conv3_w": u(ks[4], (C3, C2, K, K), C2 * K * K),
        "conv3_b": u(ks[5], (C3,), C2 * K * K),
        "fc1_w": u(ks[6], (F1, C3), C3),
        "fc1_b": u(ks[7], (F1,), C3),
        "fc2_w": u(ks[8], (n_classes, F1), F1),
        "fc2_b": u(ks[9], (n_classes,), F1),
    }


if __name__ == "__main__":
    n_classes = 10
    batch = 2
    key = jax.random.PRNGKey(0)
    k_params, k_x = jax.random.split(key)

    params = init_lenet5_params(k_params, n_classes)
    prep = prepare_params(params)
    # LeNet5 expects 32x32 single-channel NCHW images (like the PyTorch module).
    x = jax.random.normal(k_x, (batch, 1, HIN, HIN), jnp.float32)

    logits = lenet5_forward(prep, x, n_classes)
    jax.block_until_ready(logits)
    assert logits.shape == (batch, n_classes), logits.shape
    assert bool(jnp.all(jnp.isfinite(logits))), "non-finite logits"

    ref = lenet5_reference(params, x)
    max_err = float(jnp.max(jnp.abs(logits - ref)))
    assert max_err < 0.1, f"kernel/reference mismatch: {max_err}"

    print("KERNEL_OK")
</pallas_src>

<mosaic_0001>
module attributes {stable_mosaic.version = 11 : i64} {
  func.func @lenet5_kernel(%arg0: i32, %arg1: memref<1x784x128xbf16, #tpu.memory_space<vmem>>, %arg2: memref<128x128xbf16, #tpu.memory_space<vmem>>, %arg3: memref<1x128xf32, #tpu.memory_space<vmem>>, %arg4: memref<196x784xbf16, #tpu.memory_space<vmem>>, %arg5: memref<5x128xbf16, #tpu.memory_space<vmem>>, %arg6: memref<5x128x128xbf16, #tpu.memory_space<vmem>>, %arg7: memref<1x128xf32, #tpu.memory_space<vmem>>, %arg8: memref<32x136xbf16, #tpu.memory_space<vmem>>, %arg9: memref<8x128xbf16, #tpu.memory_space<vmem>>, %arg10: memref<4x128x128xbf16, #tpu.memory_space<vmem>>, %arg11: memref<1x128xf32, #tpu.memory_space<vmem>>, %arg12: memref<128x128xbf16, #tpu.memory_space<vmem>>, %arg13: memref<1x128xf32, #tpu.memory_space<vmem>>, %arg14: memref<128x128xbf16, #tpu.memory_space<vmem>>, %arg15: memref<1x128xf32, #tpu.memory_space<vmem>>, %arg16: memref<1x1x128xf32, #tpu.memory_space<vmem>>, %arg17: memref<196x128xbf16, #tpu.memory_space<vmem>>, %arg18: memref<192x128xbf16, #tpu.memory_space<vmem>>, %arg19: memref<32x128xbf16, #tpu.memory_space<vmem>>) attributes {dimension_semantics = [#tpu.dimension_semantics<parallel>], iteration_bounds = array<i64: 2>, scalar_prefetch = 0 : i64, scratch_operands = 3 : i64, tpu.core_type = #tpu.core_type<tc>, window_params = [{transform_indices = @transform_0, window_bounds = array<i64: 1, 784, 128>}, {pipeline_mode = #tpu.pipeline_mode<synchronous>, transform_indices = @transform_1, window_bounds = array<i64: 128, 128>}, {pipeline_mode = #tpu.pipeline_mode<synchronous>, transform_indices = @transform_2, window_bounds = array<i64: 1, 128>}, {pipeline_mode = #tpu.pipeline_mode<synchronous>, transform_indices = @transform_3, window_bounds = array<i64: 196, 784>}, {pipeline_mode = #tpu.pipeline_mode<synchronous>, transform_indices = @transform_4, window_bounds = array<i64: 5, 128>}, {pipeline_mode = #tpu.pipeline_mode<synchronous>, transform_indices = @transform_5, window_bounds = array<i64: 5, 128, 128>}, {pipeline_mode = #tpu.pipeline_mode<synchronous>, transform_indices = @transform_6, window_bounds = array<i64: 1, 128>}, {pipeline_mode = #tpu.pipeline_mode<synchronous>, transform_indices = @transform_7, window_bounds = array<i64: 32, 136>}, {pipeline_mode = #tpu.pipeline_mode<synchronous>, transform_indices = @transform_8, window_bounds = array<i64: 8, 128>}, {pipeline_mode = #tpu.pipeline_mode<synchronous>, transform_indices = @transform_9, window_bounds = array<i64: 4, 128, 128>}, {pipeline_mode = #tpu.pipeline_mode<synchronous>, transform_indices = @transform_10, window_bounds = array<i64: 1, 128>}, {pipeline_mode = #tpu.pipeline_mode<synchronous>, transform_indices = @transform_11, window_bounds = array<i64: 128, 128>}, {pipeline_mode = #tpu.pipeline_mode<synchronous>, transform_indices = @transform_12, window_bounds = array<i64: 1, 128>}, {pipeline_mode = #tpu.pipeline_mode<synchronous>, transform_indices = @transform_13, window_bounds = array<i64: 128, 128>}, {pipeline_mode = #tpu.pipeline_mode<synchronous>, transform_indices = @transform_14, window_bounds = array<i64: 1, 128>}, {transform_indices = @transform_15, window_bounds = array<i64: 1, 1, 128>}]} {
    %c0 = arith.constant 0 : index
    %c0_0 = arith.constant 0 : index
    %c0_1 = arith.constant 0 : index
    %0 = vector.load %arg1[%c0, %c0_0, %c0_1] : memref<1x784x128xbf16, #tpu.memory_space<vmem>>, vector<1x784x128xbf16>
    %1 = vector.shape_cast %0 : vector<1x784x128xbf16> to vector<784x128xbf16>
    %c0_2 = arith.constant 0 : index
    %c0_3 = arith.constant 0 : index
    %2 = vector.load %arg2[%c0_2, %c0_3] : memref<128x128xbf16, #tpu.memory_space<vmem>>, vector<128x128xbf16>
    %cst = arith.constant dense<0.000000e+00> : vector<784x128xf32>
    %3 = tpu.matmul %1, %2, %cst {dimension_numbers = #tpu.dot_dimension_numbers<[1], [0], [0], [1], [0, 0, 1, 1], [], []>} : vector<784x128xbf16>, vector<128x128xbf16>, vector<784x128xf32> -> vector<784x128xf32>
    %c0_4 = arith.constant 0 : index
    %c0_5 = arith.constant 0 : index
    %4 = vector.load %arg3[%c0_4, %c0_5] : memref<1x128xf32, #tpu.memory_space<vmem>>, vector<1x128xf32>
    %5 = vector.broadcast %4 : vector<1x128xf32> to vector<784x128xf32>
    %6 = arith.addf %3, %5 : vector<784x128xf32>
    %7 = math.tanh %6 : vector<784x128xf32>
    %8 = arith.truncf %7 : vector<784x128xf32> to vector<784x128xbf16>
    %c0_6 = arith.constant 0 : index
    %c0_7 = arith.constant 0 : index
    %9 = vector.load %arg4[%c0_6, %c0_7] : memref<196x784xbf16, #tpu.memory_space<vmem>>, vector<196x784xbf16>
    %cst_8 = arith.constant dense<0.000000e+00> : vector<196x128xf32>
    %10 = tpu.matmul %9, %8, %cst_8 {dimension_numbers = #tpu.dot_dimension_numbers<[1], [0], [0], [1], [0, 0, 1, 1], [], []>} : vector<196x784xbf16>, vector<784x128xbf16>, vector<196x128xf32> -> vector<196x128xf32>
    %11 = arith.truncf %10 : vector<196x128xf32> to vector<196x128xbf16>
    %c0_9 = arith.constant 0 : index
    %c0_10 = arith.constant 0 : index
    %12 = vector.load %arg17[%c0_9, %c0_10] : memref<196x128xbf16, #tpu.memory_space<vmem>>, vector<196x128xbf16>
    tpu.vector_store %arg17[%c0_9, %c0_10], %11 {strides = array<i32>} : memref<196x128xbf16, #tpu.memory_space<vmem>>, vector<196x128xbf16>,
    %c0_11 = arith.constant 0 : index
    %c0_12 = arith.constant 0 : index
    %13 = vector.load %arg17[%c0_11, %c0_12] : memref<196x128xbf16, #tpu.memory_space<vmem>>, vector<192x128xbf16>
    %c0_13 = arith.constant 0 : index
    %c0_14 = arith.constant 0 : index
    %14 = vector.load %arg5[%c0_13, %c0_14] : memref<5x128xbf16, #tpu.memory_space<vmem>>, vector<1x128xbf16>
    %15 = vector.broadcast %14 : vector<1x128xbf16> to vector<192x128xbf16>
    %16 = arith.mulf %13, %15 : vector<192x128xbf16>
    %c1 = arith.constant 1 : index
    %c0_15 = arith.constant 0 : index
    %17 = vector.load %arg17[%c1, %c0_15] : memref<196x128xbf16, #tpu.memory_space<vmem>>, vector<192x128xbf16>
    %c1_16 = arith.constant 1 : index
    %c0_17 = arith.constant 0 : index
    %18 = vector.load %arg5[%c1_16, %c0_17] : memref<5x128xbf16, #tpu.memory_space<vmem>>, vector<1x128xbf16>
    %19 = vector.broadcast %18 : vector<1x128xbf16> to vector<192x128xbf16>
    %20 = arith.mulf %17, %19 : vector<192x128xbf16>
    %21 = arith.addf %16, %20 : vector<192x128xbf16>
    %c2 = arith.constant 2 : index
    %c0_18 = arith.constant 0 : index
    %22 = vector.load %arg17[%c2, %c0_18] : memref<196x128xbf16, #tpu.memory_space<vmem>>, vector<192x128xbf16>
    %c2_19 = arith.constant 2 : index
    %c0_20 = arith.constant 0 : index
    %23 = vector.load %arg5[%c2_19, %c0_20] : memref<5x128xbf16, #tpu.memory_space<vmem>>, vector<1x128xbf16>
    %24 = vector.broadcast %23 : vector<1x128xbf16> to vector<192x128xbf16>
    %25 = arith.mulf %22, %24 : vector<192x128xbf16>
    %26 = arith.addf %21, %25 : vector<192x128xbf16>
    %c3 = arith.constant 3 : index
    %c0_21 = arith.constant 0 : index
    %27 = vector.load %arg17[%c3, %c0_21] : memref<196x128xbf16, #tpu.memory_space<vmem>>, vector<192x128xbf16>
    %c3_22 = arith.constant 3 : index
    %c0_23 = arith.constant 0 : index
    %28 = vector.load %arg5[%c3_22, %c0_23] : memref<5x128xbf16, #tpu.memory_space<vmem>>, vector<1x128xbf16>
    %29 = vector.broadcast %28 : vector<1x128xbf16> to vector<192x128xbf16>
    %30 = arith.mulf %27, %29 : vector<192x128xbf16>
    %31 = arith.addf %26, %30 : vector<192x128xbf16>
    %c4 = arith.constant 4 : index
    %c0_24 = arith.constant 0 : index
    %32 = vector.load %arg17[%c4, %c0_24] : memref<196x128xbf16, #tpu.memory_space<vmem>>, vector<192x128xbf16>
    %c4_25 = arith.constant 4 : index
    %c0_26 = arith.constant 0 : index
    %33 = vector.load %arg5[%c4_25, %c0_26] : memref<5x128xbf16, #tpu.memory_space<vmem>>, vector<1x128xbf16>
    %34 = vector.broadcast %33 : vector<1x128xbf16> to vector<192x128xbf16>
    %35 = arith.mulf %32, %34 : vector<192x128xbf16>
    %36 = arith.addf %31, %35 : vector<192x128xbf16>
    %c0_27 = arith.constant 0 : index
    %c0_28 = arith.constant 0 : index
    %37 = vector.load %arg18[%c0_27, %c0_28] : memref<192x128xbf16, #tpu.memory_space<vmem>>, vector<192x128xbf16>
    tpu.vector_store %arg18[%c0_27, %c0_28], %36 {strides = array<i32>} : memref<192x128xbf16, #tpu.memory_space<vmem>>, vector<192x128xbf16>,
    %c0_29 = arith.constant 0 : index
    %c0_30 = arith.constant 0 : index
    %38 = vector.load %arg18[%c0_29, %c0_30] : memref<192x128xbf16, #tpu.memory_space<vmem>>, vector<136x128xbf16>
    %c0_31 = arith.constant 0 : index
    %c0_32 = arith.constant 0 : index
    %c0_33 = arith.constant 0 : index
    %39 = vector.load %arg6[%c0_31, %c0_32, %c0_33] : memref<5x128x128xbf16, #tpu.memory_space<vmem>>, vector<1x128x128xbf16>
    %40 = vector.shape_cast %39 : vector<1x128x128xbf16> to vector<128x128xbf16>
    %cst_34 = arith.constant dense<0.000000e+00> : vector<136x128xf32>
    %41 = tpu.matmul %38, %40, %cst_34 {dimension_numbers = #tpu.dot_dimension_numbers<[1], [0], [0], [1], [0, 0, 1, 1], [], []>} : vector<136x128xbf16>, vector<128x128xbf16>, vector<136x128xf32> -> vector<136x128xf32>
    %c14 = arith.constant 14 : index
    %c0_35 = arith.constant 0 : index
    %42 = vector.load %arg18[%c14, %c0_35] : memref<192x128xbf16, #tpu.memory_space<vmem>>, vector<136x128xbf16>
    %c1_36 = arith.constant 1 : index
    %c0_37 = arith.constant 0 : index
    %c0_38 = arith.constant 0 : index
    %43 = vector.load %arg6[%c1_36, %c0_37, %c0_38] : memref<5x128x128xbf16, #tpu.memory_space<vmem>>, vector<1x128x128xbf16>
    %44 = vector.shape_cast %43 : vector<1x128x128xbf16> to vector<128x128xbf16>
    %cst_39 = arith.constant dense<0.000000e+00> : vector<136x128xf32>
    %45 = tpu.matmul %42, %44, %cst_39 {dimension_numbers = #tpu.dot_dimension_numbers<[1], [0], [0], [1], [0, 0, 1, 1], [], []>} : vector<136x128xbf16>, vector<128x128xbf16>, vector<136x128xf32> -> vector<136x128xf32>
    %46 = arith.addf %41, %45 : vector<136x128xf32>
    %c28 = arith.constant 28 : index
    %c0_40 = arith.constant 0 : index
    %47 = vector.load %arg18[%c28, %c0_40] : memref<192x128xbf16, #tpu.memory_space<vmem>>, vector<136x128xbf16>
    %c2_41 = arith.constant 2 : index
    %c0_42 = arith.constant 0 : index
    %c0_43 = arith.constant 0 : index
    %48 = vector.load %arg6[%c2_41, %c0_42, %c0_43] : memref<5x128x128xbf16, #tpu.memory_space<vmem>>, vector<1x128x128xbf16>
    %49 = vector.shape_cast %48 : vector<1x128x128xbf16> to vector<128x128xbf16>
    %cst_44 = arith.constant dense<0.000000e+00> : vector<136x128xf32>
    %50 = tpu.matmul %47, %49, %cst_44 {dimension_numbers = #tpu.dot_dimension_numbers<[1], [0], [0], [1], [0, 0, 1, 1], [], []>} : vector<136x128xbf16>, vector<128x128xbf16>, vector<136x128xf32> -> vector<136x128xf32>
    %51 = arith.addf %46, %50 : vector<136x128xf32>
    %c42 = arith.constant 42 : index
    %c0_45 = arith.constant 0 : index
    %52 = vector.load %arg18[%c42, %c0_45] : memref<192x128xbf16, #tpu.memory_space<vmem>>, vector<136x128xbf16>
    %c3_46 = arith.constant 3 : index
    %c0_47 = arith.constant 0 : index
    %c0_48 = arith.constant 0 : index
    %53 = vector.load %arg6[%c3_46, %c0_47, %c0_48] : memref<5x128x128xbf16, #tpu.memory_space<vmem>>, vector<1x128x128xbf16>
    %54 = vector.shape_cast %53 : vector<1x128x128xbf16> to vector<128x128xbf16>
    %cst_49 = arith.constant dense<0.000000e+00> : vector<136x128xf32>
    %55 = tpu.matmul %52, %54, %cst_49 {dimension_numbers = #tpu.dot_dimension_numbers<[1], [0], [0], [1], [0, 0, 1, 1], [], []>} : vector<136x128xbf16>, vector<128x128xbf16>, vector<136x128xf32> -> vector<136x128xf32>
    %56 = arith.addf %51, %55 : vector<136x128xf32>
    %c56 = arith.constant 56 : index
    %c0_50 = arith.constant 0 : index
    %57 = vector.load %arg18[%c56, %c0_50] : memref<192x128xbf16, #tpu.memory_space<vmem>>, vector<136x128xbf16>
    %c4_51 = arith.constant 4 : index
    %c0_52 = arith.constant 0 : index
    %c0_53 = arith.constant 0 : index
    %58 = vector.load %arg6[%c4_51, %c0_52, %c0_53] : memref<5x128x128xbf16, #tpu.memory_space<vmem>>, vector<1x128x128xbf16>
    %59 = vector.shape_cast %58 : vector<1x128x128xbf16> to vector<128x128xbf16>
    %cst_54 = arith.constant dense<0.000000e+00> : vector<136x128xf32>
    %60 = tpu.matmul %57, %59, %cst_54 {dimension_numbers = #tpu.dot_dimension_numbers<[1], [0], [0], [1], [0, 0, 1, 1], [], []>} : vector<136x128xbf16>, vector<128x128xbf16>, vector<136x128xf32> -> vector<136x128xf32>
    %61 = arith.addf %56, %60 : vector<136x128xf32>
    %c0_55 = arith.constant 0 : index
    %c0_56 = arith.constant 0 : index
    %62 = vector.load %arg7[%c0_55, %c0_56] : memref<1x128xf32, #tpu.memory_space<vmem>>, vector<1x128xf32>
    %63 = vector.broadcast %62 : vector<1x128xf32> to vector<136x128xf32>
    %64 = arith.addf %61, %63 : vector<136x128xf32>
    %65 = math.tanh %64 : vector<136x128xf32>
    %66 = arith.truncf %65 : vector<136x128xf32> to vector<136x128xbf16>
    %c0_57 = arith.constant 0 : index
    %c0_58 = arith.constant 0 : index
    %67 = vector.load %arg8[%c0_57, %c0_58] : memref<32x136xbf16, #tpu.memory_space<vmem>>, vector<32x136xbf16>
    %cst_59 = arith.constant dense<0.000000e+00> : vector<32x128xf32>
    %68 = tpu.matmul %67, %66, %cst_59 {dimension_numbers = #tpu.dot_dimension_numbers<[1], [0], [0], [1], [0, 0, 1, 1], [], []>} : vector<32x136xbf16>, vector<136x128xbf16>, vector<32x128xf32> -> vector<32x128xf32>
    %69 = arith.truncf %68 : vector<32x128xf32> to vector<32x128xbf16>
    %c0_60 = arith.constant 0 : index
    %c0_61 = arith.constant 0 : index
    %70 = vector.load %arg19[%c0_60, %c0_61] : memref<32x128xbf16, #tpu.memory_space<vmem>>, vector<32x128xbf16>
    tpu.vector_store %arg19[%c0_60, %c0_61], %69 {strides = array<i32>} : memref<32x128xbf16, #tpu.memory_space<vmem>>, vector<32x128xbf16>,
    %c0_62 = arith.constant 0 : index
    %c0_63 = arith.constant 0 : index
    %71 = vector.load %arg19[%c0_62, %c0_63] : memref<32x128xbf16, #tpu.memory_space<vmem>>, vector<4x128xbf16>
    %c0_64 = arith.constant 0 : index
    %c0_65 = arith.constant 0 : index
    %72 = vector.load %arg9[%c0_64, %c0_65] : memref<8x128xbf16, #tpu.memory_space<vmem>>, vector<1x128xbf16>
    %73 = vector.broadcast %72 : vector<1x128xbf16> to vector<4x128xbf16>
    %74 = arith.mulf %71, %73 : vector<4x128xbf16>
    %c4_66 = arith.constant 4 : index
    %c0_67 = arith.constant 0 : index
    %75 = vector.load %arg19[%c4_66, %c0_67] : memref<32x128xbf16, #tpu.memory_space<vmem>>, vector<4x128xbf16>
    %c1_68 = arith.constant 1 : index
    %c0_69 = arith.constant 0 : index
    %76 = vector.load %arg9[%c1_68, %c0_69] : memref<8x128xbf16, #tpu.memory_space<vmem>>, vector<1x128xbf16>
    %77 = vector.broadcast %76 : vector<1x128xbf16> to vector<4x128xbf16>
    %78 = arith.mulf %75, %77 : vector<4x128xbf16>
    %79 = arith.addf %74, %78 : vector<4x128xbf16>
    %c8 = arith.constant 8 : index
    %c0_70 = arith.constant 0 : index
    %80 = vector.load %arg19[%c8, %c0_70] : memref<32x128xbf16, #tpu.memory_space<vmem>>, vector<4x128xbf16>
    %c2_71 = arith.constant 2 : index
    %c0_72 = arith.constant 0 : index
    %81 = vector.load %arg9[%c2_71, %c0_72] : memref<8x128xbf16, #tpu.memory_space<vmem>>, vector<1x128xbf16>
    %82 = vector.broadcast %81 : vector<1x128xbf16> to vector<4x128xbf16>
    %83 = arith.mulf %80, %82 : vector<4x128xbf16>
    %84 = arith.addf %79, %83 : vector<4x128xbf16>
    %c12 = arith.constant 12 : index
    %c0_73 = arith.constant 0 : index
    %85 = vector.load %arg19[%c12, %c0_73] : memref<32x128xbf16, #tpu.memory_space<vmem>>, vector<4x128xbf16>
    %c3_74 = arith.constant 3 : index
    %c0_75 = arith.constant 0 : index
    %86 = vector.load %arg9[%c3_74, %c0_75] : memref<8x128xbf16, #tpu.memory_space<vmem>>, vector<1x128xbf16>
    %87 = vector.broadcast %86 : vector<1x128xbf16> to vector<4x128xbf16>
    %88 = arith.mulf %85, %87 : vector<4x128xbf16>
    %89 = arith.addf %84, %88 : vector<4x128xbf16>
    %c16 = arith.constant 16 : index
    %c0_76 = arith.constant 0 : index
    %90 = vector.load %arg19[%c16, %c0_76] : memref<32x128xbf16, #tpu.memory_space<vmem>>, vector<4x128xbf16>
    %c4_77 = arith.constant 4 : index
    %c0_78 = arith.constant 0 : index
    %91 = vector.load %arg9[%c4_77, %c0_78] : memref<8x128xbf16, #tpu.memory_space<vmem>>, vector<1x128xbf16>
    %92 = vector.broadcast %91 : vector<1x128xbf16> to vector<4x128xbf16>
    %93 = arith.mulf %90, %92 : vector<4x128xbf16>
    %94 = arith.addf %89, %93 : vector<4x128xbf16>
    %c20 = arith.constant 20 : index
    %c0_79 = arith.constant 0 : index
    %95 = vector.load %arg19[%c20, %c0_79] : memref<32x128xbf16, #tpu.memory_space<vmem>>, vector<4x128xbf16>
    %c5 = arith.constant 5 : index
    %c0_80 = arith.constant 0 : index
    %96 = vector.load %arg9[%c5, %c0_80] : memref<8x128xbf16, #tpu.memory_space<vmem>>, vector<1x128xbf16>
    %97 = vector.broadcast %96 : vector<1x128xbf16> to vector<4x128xbf16>
    %98 = arith.mulf %95, %97 : vector<4x128xbf16>
    %99 = arith.addf %94, %98 : vector<4x128xbf16>
    %c24 = arith.constant 24 : index
    %c0_81 = arith.constant 0 : index
    %100 = vector.load %arg19[%c24, %c0_81] : memref<32x128xbf16, #tpu.memory_space<vmem>>, vector<4x128xbf16>
    %c6 = arith.constant 6 : index
    %c0_82 = arith.constant 0 : index
    %101 = vector.load %arg9[%c6, %c0_82] : memref<8x128xbf16, #tpu.memory_space<vmem>>, vector<1x128xbf16>
    %102 = vector.broadcast %101 : vector<1x128xbf16> to vector<4x128xbf16>
    %103 = arith.mulf %100, %102 : vector<4x128xbf16>
    %104 = arith.addf %99, %103 : vector<4x128xbf16>
    %c28_83 = arith.constant 28 : index
    %c0_84 = arith.constant 0 : index
    %105 = vector.load %arg19[%c28_83, %c0_84] : memref<32x128xbf16, #tpu.memory_space<vmem>>, vector<4x128xbf16>
    %c7 = arith.constant 7 : index
    %c0_85 = arith.constant 0 : index
    %106 = vector.load %arg9[%c7, %c0_85] : memref<8x128xbf16, #tpu.memory_space<vmem>>, vector<1x128xbf16>
    %107 = vector.broadcast %106 : vector<1x128xbf16> to vector<4x128xbf16>
    %108 = arith.mulf %105, %107 : vector<4x128xbf16>
    %109 = arith.addf %104, %108 : vector<4x128xbf16>
    %110 = vector.extract_strided_slice %109 {offsets = [0, 0], sizes = [1, 128], strides = [1, 1]} : vector<4x128xbf16> to vector<1x128xbf16>
    %c0_86 = arith.constant 0 : index
    %c0_87 = arith.constant 0 : index
    %c0_88 = arith.constant 0 : index
    %111 = vector.load %arg10[%c0_86, %c0_87, %c0_88] : memref<4x128x128xbf16, #tpu.memory_space<vmem>>, vector<1x128x128xbf16>
    %112 = vector.shape_cast %111 : vector<1x128x128xbf16> to vector<128x128xbf16>
    %cst_89 = arith.constant dense<0.000000e+00> : vector<1x128xf32>
    %113 = tpu.matmul %110, %112, %cst_89 {dimension_numbers = #tpu.dot_dimension_numbers<[1], [0], [0], [1], [0, 0, 1, 1], [], []>} : vector<1x128xbf16>, vector<128x128xbf16>, vector<1x128xf32> -> vector<1x128xf32>
    %114 = vector.extract_strided_slice %109 {offsets = [1, 0], sizes = [1, 128], strides = [1, 1]} : vector<4x128xbf16> to vector<1x128xbf16>
    %c1_90 = arith.constant 1 : index
    %c0_91 = arith.constant 0 : index
    %c0_92 = arith.constant 0 : index
    %115 = vector.load %arg10[%c1_90, %c0_91, %c0_92] : memref<4x128x128xbf16, #tpu.memory_space<vmem>>, vector<1x128x128xbf16>
    %116 = vector.shape_cast %115 : vector<1x128x128xbf16> to vector<128x128xbf16>
    %cst_93 = arith.constant dense<0.000000e+00> : vector<1x128xf32>
    %117 = tpu.matmul %114, %116, %cst_93 {dimension_numbers = #tpu.dot_dimension_numbers<[1], [0], [0], [1], [0, 0, 1, 1], [], []>} : vector<1x128xbf16>, vector<128x128xbf16>, vector<1x128xf32> -> vector<1x128xf32>
    %118 = arith.addf %113, %117 : vector<1x128xf32>
    %119 = vector.extract_strided_slice %109 {offsets = [2, 0], sizes = [1, 128], strides = [1, 1]} : vector<4x128xbf16> to vector<1x128xbf16>
    %c2_94 = arith.constant 2 : index
    %c0_95 = arith.constant 0 : index
    %c0_96 = arith.constant 0 : index
    %120 = vector.load %arg10[%c2_94, %c0_95, %c0_96] : memref<4x128x128xbf16, #tpu.memory_space<vmem>>, vector<1x128x128xbf16>
    %121 = vector.shape_cast %120 : vector<1x128x128xbf16> to vector<128x128xbf16>
    %cst_97 = arith.constant dense<0.000000e+00> : vector<1x128xf32>
    %122 = tpu.matmul %119, %121, %cst_97 {dimension_numbers = #tpu.dot_dimension_numbers<[1], [0], [0], [1], [0, 0, 1, 1], [], []>} : vector<1x128xbf16>, vector<128x128xbf16>, vector<1x128xf32> -> vector<1x128xf32>
    %123 = arith.addf %118, %122 : vector<1x128xf32>
    %124 = vector.extract_strided_slice %109 {offsets = [3, 0], sizes = [1, 128], strides = [1, 1]} : vector<4x128xbf16> to vector<1x128xbf16>
    %c3_98 = arith.constant 3 : index
    %c0_99 = arith.constant 0 : index
    %c0_100 = arith.constant 0 : index
    %125 = vector.load %arg10[%c3_98, %c0_99, %c0_100] : memref<4x128x128xbf16, #tpu.memory_space<vmem>>, vector<1x128x128xbf16>
    %126 = vector.shape_cast %125 : vector<1x128x128xbf16> to vector<128x128xbf16>
    %cst_101 = arith.constant dense<0.000000e+00> : vector<1x128xf32>
    %127 = tpu.matmul %124, %126, %cst_101 {dimension_numbers = #tpu.dot_dimension_numbers<[1], [0], [0], [1], [0, 0, 1, 1], [], []>} : vector<1x128xbf16>, vector<128x128xbf16>, vector<1x128xf32> -> vector<1x128xf32>
    %128 = arith.addf %123, %127 : vector<1x128xf32>
    %c0_102 = arith.constant 0 : index
    %c0_103 = arith.constant 0 : index
    %129 = vector.load %arg11[%c0_102, %c0_103] : memref<1x128xf32, #tpu.memory_space<vmem>>, vector<1x128xf32>
    %130 = arith.addf %128, %129 : vector<1x128xf32>
    %131 = math.tanh %130 : vector<1x128xf32>
    %132 = arith.truncf %131 : vector<1x128xf32> to vector<1x128xbf16>
    %c0_104 = arith.constant 0 : index
    %c0_105 = arith.constant 0 : index
    %133 = vector.load %arg12[%c0_104, %c0_105] : memref<128x128xbf16, #tpu.memory_space<vmem>>, vector<128x128xbf16>
    %cst_106 = arith.constant dense<0.000000e+00> : vector<1x128xf32>
    %134 = tpu.matmul %132, %133, %cst_106 {dimension_numbers = #tpu.dot_dimension_numbers<[1], [0], [0], [1], [0, 0, 1, 1], [], []>} : vector<1x128xbf16>, vector<128x128xbf16>, vector<1x128xf32> -> vector<1x128xf32>
    %c0_107 = arith.constant 0 : index
    %c0_108 = arith.constant 0 : index
    %135 = vector.load %arg13[%c0_107, %c0_108] : memref<1x128xf32, #tpu.memory_space<vmem>>, vector<1x128xf32>
    %136 = arith.addf %134, %135 : vector<1x128xf32>
    %137 = math.tanh %136 : vector<1x128xf32>
    %138 = arith.truncf %137 : vector<1x128xf32> to vector<1x128xbf16>
    %c0_109 = arith.constant 0 : index
    %c0_110 = arith.constant 0 : index
    %139 = vector.load %arg14[%c0_109, %c0_110] : memref<128x128xbf16, #tpu.memory_space<vmem>>, vector<128x128xbf16>
    %cst_111 = arith.constant dense<0.000000e+00> : vector<1x128xf32>
    %140 = tpu.matmul %138, %139, %cst_111 {dimension_numbers = #tpu.dot_dimension_numbers<[1], [0], [0], [1], [0, 0, 1, 1], [], []>} : vector<1x128xbf16>, vector<128x128xbf16>, vector<1x128xf32> -> vector<1x128xf32>
    %c0_112 = arith.constant 0 : index
    %c0_113 = arith.constant 0 : index
    %141 = vector.load %arg15[%c0_112, %c0_113] : memref<1x128xf32, #tpu.memory_space<vmem>>, vector<1x128xf32>
    %142 = arith.addf %140, %141 : vector<1x128xf32>
    %c0_114 = arith.constant 0 : index
    %c0_115 = arith.constant 0 : index
    %c0_116 = arith.constant 0 : index
    %143 = vector.load %arg16[%c0_114, %c0_115, %c0_116] : memref<1x1x128xf32, #tpu.memory_space<vmem>>, vector<1x1x128xf32>
    %144 = vector.shape_cast %143 : vector<1x1x128xf32> to vector<1x128xf32>
    %145 = vector.shape_cast %142 : vector<1x128xf32> to vector<1x1x128xf32>
    tpu.vector_store %arg16[%c0_114, %c0_115, %c0_116], %145 {strides = array<i32>} : memref<1x1x128xf32, #tpu.memory_space<vmem>>, vector<1x1x128xf32>,
    return
  }
  func.func @transform_0(%arg0: i32) -> (i32, i32, i32) {
    %c0_i32 = arith.constant 0 : i32
    %c0_i32_0 = arith.constant 0 : i32
    %c0_i32_1 = arith.constant 0 : i32
    return %arg0, %c0_i32, %c0_i32_0 : i32, i32, i32
  }
  func.func @transform_1(%arg0: i32) -> (i32, i32) {
    %c0_i32 = arith.constant 0 : i32
    %c0_i32_0 = arith.constant 0 : i32
    %c0_i32_1 = arith.constant 0 : i32
    return %c0_i32, %c0_i32_0 : i32, i32
  }
  func.func @transform_2(%arg0: i32) -> (i32, i32) {
    %c0_i32 = arith.constant 0 : i32
    %c0_i32_0 = arith.constant 0 : i32
    %c0_i32_1 = arith.constant 0 : i32
    return %c0_i32, %c0_i32_0 : i32, i32
  }
  func.func @transform_3(%arg0: i32) -> (i32, i32) {
    %c0_i32 = arith.constant 0 : i32
    %c0_i32_0 = arith.constant 0 : i32
    %c0_i32_1 = arith.constant 0 : i32
    return %c0_i32, %c0_i32_0 : i32, i32
  }
  func.func @transform_4(%arg0: i32) -> (i32, i32) {
    %c0_i32 = arith.constant 0 : i32
    %c0_i32_0 = arith.constant 0 : i32
    %c0_i32_1 = arith.constant 0 : i32
    return %c0_i32, %c0_i32_0 : i32, i32
  }
  func.func @transform_5(%arg0: i32) -> (i32, i32, i32) {
    %c0_i32 = arith.constant 0 : i32
    %c0_i32_0 = arith.constant 0 : i32
    %c0_i32_1 = arith.constant 0 : i32
    %c0_i32_2 = arith.constant 0 : i32
    return %c0_i32, %c0_i32_0, %c0_i32_1 : i32, i32, i32
  }
  func.func @transform_6(%arg0: i32) -> (i32, i32) {
    %c0_i32 = arith.constant 0 : i32
    %c0_i32_0 = arith.constant 0 : i32
    %c0_i32_1 = arith.constant 0 : i32
    return %c0_i32, %c0_i32_0 : i32, i32
  }
  func.func @transform_7(%arg0: i32) -> (i32, i32) {
    %c0_i32 = arith.constant 0 : i32
    %c0_i32_0 = arith.constant 0 : i32
    %c0_i32_1 = arith.constant 0 : i32
    return %c0_i32, %c0_i32_0 : i32, i32
  }
  func.func @transform_8(%arg0: i32) -> (i32, i32) {
    %c0_i32 = arith.constant 0 : i32
    %c0_i32_0 = arith.constant 0 : i32
    %c0_i32_1 = arith.constant 0 : i32
    return %c0_i32, %c0_i32_0 : i32, i32
  }
  func.func @transform_9(%arg0: i32) -> (i32, i32, i32) {
    %c0_i32 = arith.constant 0 : i32
    %c0_i32_0 = arith.constant 0 : i32
    %c0_i32_1 = arith.constant 0 : i32
    %c0_i32_2 = arith.constant 0 : i32
    return %c0_i32, %c0_i32_0, %c0_i32_1 : i32, i32, i32
  }
  func.func @transform_10(%arg0: i32) -> (i32, i32) {
    %c0_i32 = arith.constant 0 : i32
    %c0_i32_0 = arith.constant 0 : i32
    %c0_i32_1 = arith.constant 0 : i32
    return %c0_i32, %c0_i32_0 : i32, i32
  }
  func.func @transform_11(%arg0: i32) -> (i32, i32) {
    %c0_i32 = arith.constant 0 : i32
    %c0_i32_0 = arith.constant 0 : i32
    %c0_i32_1 = arith.constant 0 : i32
    return %c0_i32, %c0_i32_0 : i32, i32
  }
  func.func @transform_12(%arg0: i32) -> (i32, i32) {
    %c0_i32 = arith.constant 0 : i32
    %c0_i32_0 = arith.constant 0 : i32
    %c0_i32_1 = arith.constant 0 : i32
    return %c0_i32, %c0_i32_0 : i32, i32
  }
  func.func @transform_13(%arg0: i32) -> (i32, i32) {
    %c0_i32 = arith.constant 0 : i32
    %c0_i32_0 = arith.constant 0 : i32
    %c0_i32_1 = arith.constant 0 : i32
    return %c0_i32, %c0_i32_0 : i32, i32
  }
  func.func @transform_14(%arg0: i32) -> (i32, i32) {
    %c0_i32 = arith.constant 0 : i32
    %c0_i32_0 = arith.constant 0 : i32
    %c0_i32_1 = arith.constant 0 : i32
    return %c0_i32, %c0_i32_0 : i32, i32
  }
  func.func @transform_15(%arg0: i32) -> (i32, i32, i32) {
    %c0_i32 = arith.constant 0 : i32
    %c0_i32_0 = arith.constant 0 : i32
    %c0_i32_1 = arith.constant 0 : i32
    return %arg0, %c0_i32, %c0_i32_0 : i32, i32, i32
  }
}

</mosaic_0001>

<bundles_post_ra>
// kernel: lenet5_forward.1
= control target key start
LH: loop header
LB: loop body
LE: loop exit
PB: predicated region body
PF: predicated region fallthrough
CT: control target
= control target key end

     0   :  { %s11905_s0 = inlined_call_operand.vmem [shape: bf16[2,784,128], index: 0, kind: input, shape index: {}]   ;;  %s11906_s1 = inlined_call_operand.vmem [shape: bf16[128,128], index: 1, kind: input, shape index: {}]   ;;  %s11907_s2 = inlined_call_operand.vmem [shape: f32[1,128], index: 2, kind: input, shape index: {}]   ;;  %s11908_s3 = inlined_call_operand.vmem [shape: bf16[196,784], index: 3, kind: input, shape index: {}]   ;;  %s11909_s4 = inlined_call_operand.vmem [shape: bf16[5,128], index: 4, kind: input, shape index: {}]   ;;  %s11910_s5 = inlined_call_operand.vmem [shape: bf16[5,128,128], index: 5, kind: input, shape index: {}]   ;;  %s11911_s6 = inlined_call_operand.vmem [shape: f32[1,128], index: 6, kind: input, shape index: {}]   ;;  %s11912_s7 = inlined_call_operand.vmem [shape: bf16[32,136], index: 7, kind: input, shape index: {}]   ;;  %s11913_s8 = inlined_call_operand.vmem [shape: bf16[8,128], index: 8, kind: input, shape index: {}]   ;;  %s11914_s9 = inlined_call_operand.vmem [shape: bf16[4,128,128], index: 9, kind: input, shape index: {}]   ;;  %s11915_s10 = inlined_call_operand.vmem [shape: f32[1,128], index: 10, kind: input, shape index: {}]   ;;  %s11916_s11 = inlined_call_operand.vmem [shape: bf16[128,128], index: 11, kind: input, shape index: {}]   ;;  %s11917_s12 = inlined_call_operand.vmem [shape: f32[1,128], index: 12, kind: input, shape index: {}]   ;;  %s11918_s13 = inlined_call_operand.vmem [shape: bf16[128,128], index: 13, kind: input, shape index: {}]   ;;  %s11919_s14 = inlined_call_operand.vmem [shape: f32[1,128], index: 14, kind: input, shape index: {}]   ;;  %s11920_s15 = inlined_call_operand.hbm [shape: f32[2,1,128], index: 15, kind: output, shape index: {}]  }
   0x1   :  { %11997 = sst [smem:[#allocation55_spill]] %s11905_s0 }
   0x2   :  { %20 = vsyncpa [#allocation6], 0 }
   0x3   :  { %22 = vsyncpa [#allocation6 + $0x1], 0  ;;  %s8669_s18 = smov 0   ;;  %s8671_s19 = smov 0  }
   0x4   :  { %s8673_s20 = smov 0   ;;  %s8675_s21 = smov 0  }
   0x5 LB: > { %11998 = sst [smem:[#allocation8_spill]] %s8579_s20  ;;  %s8690_s22 = sadd.s32 4294967295, %s8583_s21   ;;  %s8583_s21 = sphi %s8675_s21, %s12230_s21   ;;  %s8579_s20 = sphi %s8673_s20, %s12232_s20   ;;  %s8575_s19 = sphi %s8671_s19, %s12234_s19   ;;  %s8571_s18 = sphi %s8669_s18, %s12233_s18  }
   0x6   : > { %s6134_s23 = sadd.s32 4294967294, %s8583_s21   ;;  %s8694_s24 = sadd.s32 1, %s8583_s21  }
   0x7   : > { %11999 = sst [smem:[#allocation9_spill]] %s8694_s24  ;;  %s355_s25 = sadd.s32 1, %s8579_s20 }
   0x8   : > { %s352_s26 = ssub.s32 %s8583_s21, %s8694_s24  ;;  %p365_p0 = scmp.ne.s32.totalorder %s8579_s20, %s8575_s19 }
   0x9   : > { %p353_p1 = scmp.eq.s32.totalorder %s352_s26, 0  ;;  %p366_p2 = scmp.eq.s32.totalorder %s8690_s22, 1 }
   0xa   : > { %p371_p3 = scmp.ne.s32.totalorder %s8575_s19, %s8571_s18  ;;  %p372_p4 = scmp.eq.s32.totalorder %s6134_s23, 1 }
   0xb   : > { %s8705_s27 = scalar_select %p353_p1, %s8579_s20, %s355_s25  }
   0xc   : > { %p8707_p5 = por %p366_p2, %p365_p0  ;;  %p8711_p6 = por %p372_p4, %p371_p3 }
   0xd   : > { %12000 = sst [smem:[#allocation10_spill]] %s8705_s27  ;;  %p6137_p7 = scmp.ge.s32.totalorder %s8583_s21, 1 }
   0xe   : > { %s12002_s29 = scalar_select %p8711_p6, 1, 0 }
   0xf   : > { %p440_p8 = scmp.lt.s32.totalorder %s8583_s21, 3 }
  0x10   : > { %12003 = sst [smem:[#allocation11_spill]] %s12002_s29 }
  0x11   : > { %p441_p9 = pnand %p6137_p7, %p440_p8 }
  0x13   : > { %444 = sbr.rel (%p441_p9) target bundleno = 2507 (0x9cb), region = 80 }
  0x18   : > { %v7972_v0 = vld [vmem:[%s11906_s1 + $0x38] sm:$0xff]   ;;  %v11925_v1 = vmov 0.0   ;;  %v7973_v2 = vld [vmem:[%s11906_s1 + $0x30] sm:$0xff]   ;;  %vm8586_vm0 = vmmov 0   ;;  %p487_p10 = scmp.lt.s32.totalorder %s8690_s22, 1  ;;  %v7974_v3 = vld [vmem:[%s11906_s1 + $0x28] sm:$0xff]  }
  0x19   : > { %7283 = vmatprep.subr.bf16.mxu0 %v11925_v1  ;;  %7299 = vmatprep.mubr.msk.bf16.mxu0 %vm8586_vm0, %v11925_v1  ;;  %s12004_s0 = sld [smem:[#allocation55_spill]]  ;;  %v7975_v4 = vld [vmem:[%s11906_s1 + $0x20] sm:$0xff]   ;;  %v7976_v5 = vld [vmem:[%s11906_s1 + $0x18] sm:$0xff]   ;;  %v7977_v6 = vld [vmem:[%s11906_s1 + $0x10] sm:$0xff]   ;;  %vm2072_vm1 = vcmask 130048   ;;  %vm3237_vm5 = vcmask 1042432  }
  0x1a   : > { %7284 = vmatpush3.bf16.msra.mxu0 %v7972_v0  ;;  %s488_s25 = scalar_select %p487_p10, %s8690_s22, 1  ;;  %v7978_v7 = vld [vmem:[%s11906_s1 + $0x8] sm:$0xff]   ;;  %v7979_v8 = vld [vmem:[%s11906_s1] sm:$0xff]   ;;  %vm2879_vm2 = vsmask.f32 3328  ;;  %vm3238_vm6 = vcmask 1046532  }
  0x1b   : > { %7285 = vmatprep.subr.bf16.mxu0 %v11925_v1  ;;  %v8835_v34 = vld [vmem:[%s11907_s2] ss:$0 sm:$0xff]  ;;  %vm2880_vm3 = vsmask.f32 7440  ;;  %vm3398_vm7 = vsmask.f32 2304  ;;  %vm10009_vm11 = vmor %vm3237_vm5, %vm3238_vm6 }
  0x1c   : > { %s7929_s16 = smul.u32 392, %s488_s25  ;;  %vm9990_vm4 = vmor %vm2879_vm2, %vm2880_vm3  ;;  %vm3399_vm8 = vsmask.f32 6416  ;;  %vm3760_vm9 = vcmask 1041408   ;;  %vm3761_vm10 = vcmask 1045508   ;;  %vm4006_vm14 = vcmask 1044480  }
  0x1d   : > { %vm10021_vm12 = vmor %vm3398_vm7, %vm3399_vm8  ;;  %vm4715_vm15 = vcmask 1046528   ;;  %vm5238_vm2 = vcmask 64512   ;;  %vm5245_vm3 = vcmask 1043456   ;;  %s485_s24 = sand.u32 1, %s8575_s19   ;;  %s6594_s29 = sshll.u32 %s8690_s22, 4 }
  0x1e   : > { %7286 = vmatpush3.bf16.msra.mxu0 %v7973_v2  ;;  %vm10031_vm13 = vmor %vm3760_vm9, %vm3761_vm10  ;;  %s486_s30 = scalar_lea.vmem [#allocation5], %s485_s24  ;;  %s11864_s20 = scalar_lea.hbm %s11920_s15, %s6594_s29 }
  0x1f   : > { %7287 = vmatprep.subr.bf16.mxu0 %v11925_v1  ;;  %s8736_s17 = scalar_lea.vmem %s12004_s0, %s7929_s16  ;;  %s6079_s16 = sshll.u32 %s486_s30, 4  ;;  %s11866_s16 = int_to_ptr.vmem [resolvable:$true] %s6079_s16 }
  0x20   : > { %v7980_v9 = vld [vmem:[%s8736_s17] sm:$0xff]   ;;  %v7981_v10 = vld [vmem:[%s8736_s17 + $0x8] sm:$0xff]   ;;  %v7982_v11 = vld [vmem:[%s8736_s17 + $0x10] sm:$0xff]   ;;  %s6067_s27 = scalar_lea.sflag [#allocation6], %s485_s24  ;;  %s8523_s25 = scalar_lea.vmem %s11866_s16, 16 }
  0x21   : > { %v7983_v12 = vld [vmem:[%s8736_s17 + $0x18] sm:$0xff]   ;;  %v7984_v13 = vld [vmem:[%s8736_s17 + $0x20] sm:$0xff]   ;;  %v7985_v14 = vld [vmem:[%s8736_s17 + $0x28] sm:$0xff]   ;;  %p8524_p11 = scmp.ne.s32.totalorder %s11866_s16, %s8523_s25  ;;  %s8588_s22 = smov [#allocation5]  }
  0x22   : > { %7288 = vmatpush3.bf16.msra.mxu0 %v7974_v3  ;;  %v7986_v15 = vld [vmem:[%s8736_s17 + $0x30] sm:$0xff]   ;;  %v7987_v16 = vld [vmem:[%s8736_s17 + $0x38] sm:$0xff]   ;;  %v7988_v17 = vld [vmem:[%s8736_s17 + $0x40] sm:$0xff]  }
  0x23   : > { %7289 = vmatprep.subr.bf16.mxu0 %v11925_v1  ;;  %v7989_v18 = vld [vmem:[%s8736_s17 + $0x48] sm:$0xff]   ;;  %v7990_v19 = vld [vmem:[%s8736_s17 + $0x50] sm:$0xff]   ;;  %v7991_v20 = vld [vmem:[%s8736_s17 + $0x58] sm:$0xff]   ;;  %p8525_p12 = pnand %p8524_p11, %p8707_p5 }
  0x24   : > { %v7992_v21 = vld [vmem:[%s8736_s17 + $0x60] sm:$0xff]   ;;  %v7993_v22 = vld [vmem:[%s8736_s17 + $0x68] sm:$0xff]   ;;  %v7994_v23 = vld [vmem:[%s8736_s17 + $0x70] sm:$0xff]  }
  0x25   : > { %v7995_v24 = vld [vmem:[%s8736_s17 + $0x78] sm:$0xff]   ;;  %v7996_v25 = vld [vmem:[%s8736_s17 + $0x80] sm:$0xff]   ;;  %v7997_v26 = vld [vmem:[%s8736_s17 + $0x88] sm:$0xff]   ;;  %p8526_p13 = pneg %p8525_p12 }
  0x26   : > { %7290 = vmatpush3.bf16.msra.mxu0 %v7975_v4  ;;  %v7998_v27 = vld [vmem:[%s8736_s17 + $0x90] sm:$0xff]   ;;  %v7999_v28 = vld [vmem:[%s8736_s17 + $0x98] sm:$0xff]   ;;  %v8000_v29 = vld [vmem:[%s8736_s17 + $0xa0] sm:$0xff]  }
  0x27   : > { %7291 = vmatprep.subr.bf16.mxu0 %v11925_v1  ;;  %v8001_v30 = vld [vmem:[%s8736_s17 + $0xa8] sm:$0xff]   ;;  %v8002_v31 = vld [vmem:[%s8736_s17 + $0xb0] sm:$0xff]   ;;  %v8003_v32 = vld [vmem:[%s8736_s17 + $0xb8] sm:$0xff]  }
  0x28   : > { %v8004_v33 = vld [vmem:[%s8736_s17 + $0xc0] sm:$0xff]   ;;  %v8005_v39 = vld [vmem:[%s8736_s17 + $0xc8] sm:$0xff]   ;;  %v8006_v46 = vld [vmem:[%s8736_s17 + $0xd0] sm:$0xff]  }
  0x29   : > { %v8007_v55 = vld [vmem:[%s8736_s17 + $0xd8] sm:$0xff]   ;;  %v8008_v2 = vld [vmem:[%s8736_s17 + $0xe0] sm:$0xff]  }
  0x2a   : > { %7292 = vmatpush3.bf16.msra.mxu0 %v7976_v5 }
  0x2b   : > { %7293 = vmatprep.subr.bf16.mxu0 %v11925_v1 }
  0x2e   : > { %7294 = vmatpush3.bf16.msra.mxu0 %v7977_v6 }
  0x2f   : > { %7295 = vmatprep.subr.bf16.mxu0 %v11925_v1 }
  0x32   : > { %7296 = vmatpush3.bf16.msra.mxu0 %v7978_v7 }
  0x33   : > { %7297 = vmatprep.subr.bf16.mxu0 %v11925_v1 }
  0x36   : > { %7298 = vmatpush3.bf16.msra.mxu0 %v7979_v8 }
  0x37   : > { %7549 = vmatprep.subr.bf16.mxu0 %v11925_v1 }
  0x39   : > { %7300 = vmatmul.mubr.bf16.vlgmr.msra.gmra.mxu0 %v7980_v9 }
  0x3a   : > { %7303 = vmatprep.mubr.msk.bf16.mxu0 %vm8586_vm0, %v11925_v1 }
  0x41   : > { %7304 = vmatmul.mubr.bf16.gmra.mxu0 %v7981_v10 }
  0x42   : > { %7307 = vmatprep.mubr.msk.bf16.mxu0 %vm8586_vm0, %v11925_v1 }
  0x49   : > { %7308 = vmatmul.mubr.bf16.gmra.mxu0 %v7982_v11 }
  0x4a   : > { %7311 = vmatprep.mubr.msk.bf16.mxu0 %vm8586_vm0, %v11925_v1 }
  0x51   : > { %7312 = vmatmul.mubr.bf16.gmra.mxu0 %v7983_v12  ;;  %v8009_v12 = vld [vmem:[%s8736_s17 + $0xe8] sm:$0xff]  }
  0x52   : > { %7315 = vmatprep.mubr.msk.bf16.mxu0 %vm8586_vm0, %v11925_v1 }
  0x59   : > { %7316 = vmatmul.mubr.bf16.gmra.mxu0 %v7984_v13 }
  0x5a   : > { %7319 = vmatprep.mubr.msk.bf16.mxu0 %vm8586_vm0, %v11925_v1 }
  0x61   : > { %7320 = vmatmul.mubr.bf16.gmra.mxu0 %v7985_v14 }
  0x62   : > { %7323 = vmatprep.mubr.msk.bf16.mxu0 %vm8586_vm0, %v11925_v1 }
  0x69   : > { %7324 = vmatmul.mubr.bf16.gmra.mxu0 %v7986_v15 }
  0x6a   : > { %7327 = vmatprep.mubr.msk.bf16.mxu0 %vm8586_vm0, %v11925_v1 }
  0x71   : > { %7328 = vmatmul.mubr.bf16.gmra.mxu0 %v7987_v16 }
  0x72   : > { %7331 = vmatprep.mubr.msk.bf16.mxu0 %vm8586_vm0, %v11925_v1 }
  0x79   : > { %7332 = vmatmul.mubr.bf16.gmra.mxu0 %v7988_v17 }
  0x7a   : > { %7335 = vmatprep.mubr.msk.bf16.mxu0 %vm8586_vm0, %v11925_v1 }
  0x81   : > { %7336 = vmatmul.mubr.bf16.gmra.mxu0 %v7989_v18 }
  0x82   : > { %7339 = vmatprep.mubr.msk.bf16.mxu0 %vm8586_vm0, %v11925_v1 }
  0x89   : > { %7340 = vmatmul.mubr.bf16.gmra.mxu0 %v7990_v19 }
  0x8a   : > { %7343 = vmatprep.mubr.msk.bf16.mxu0 %vm8586_vm0, %v11925_v1 }
  0x91   : > { %7344 = vmatmul.mubr.bf16.gmra.mxu0 %v7991_v20 }
  0x92   : > { %7347 = vmatprep.mubr.msk.bf16.mxu0 %vm8586_vm0, %v11925_v1 }
  0x99   : > { %7348 = vmatmul.mubr.bf16.gmra.mxu0 %v7992_v21 }
  0x9a   : > { %7351 = vmatprep.mubr.msk.bf16.mxu0 %vm8586_vm0, %v11925_v1 }
  0xa1   : > { %7352 = vmatmul.mubr.bf16.gmra.mxu0 %v7993_v22  ;;  %v8010_v22 = vld [vmem:[%s8736_s17 + $0xf0] sm:$0xff]  }
  0xa2   : > { %7355 = vmatprep.mubr.msk.bf16.mxu0 %vm8586_vm0, %v11925_v1 }
  0xa9   : > { %7356 = vmatmul.mubr.bf16.gmra.mxu0 %v7994_v23 }
  0xaa   : > { %7359 = vmatprep.mubr.msk.bf16.mxu0 %vm8586_vm0, %v11925_v1 }
  0xb1   : > { %7360 = vmatmul.mubr.bf16.gmra.mxu0 %v7995_v24 }
  0xb2   : > { %7363 = vmatprep.mubr.msk.bf16.mxu0 %vm8586_vm0, %v11925_v1 }
  0xb9   : > { %7364 = vmatmul.mubr.bf16.gmra.mxu0 %v7996_v25 }
  0xba   : > { %7367 = vmatprep.mubr.msk.bf16.mxu0 %vm8586_vm0, %v11925_v1 }
  0xc1   : > { %7368 = vmatmul.mubr.bf16.gmra.mxu0 %v7997_v26 }
  0xc2   : > { %7371 = vmatprep.mubr.msk.bf16.mxu0 %vm8586_vm0, %v11925_v1 }
  0xc9   : > { %7372 = vmatmul.mubr.bf16.gmra.mxu0 %v7998_v27 }
  0xca   : > { %7375 = vmatprep.mubr.msk.bf16.mxu0 %vm8586_vm0, %v11925_v1 }
  0xd1   : > { %7376 = vmatmul.mubr.bf16.gmra.mxu0 %v7999_v28 }
  0xd2   : > { %7379 = vmatprep.mubr.msk.bf16.mxu0 %vm8586_vm0, %v11925_v1 }
  0xd9   : > { %7380 = vmatmul.mubr.bf16.gmra.mxu0 %v8000_v29 }
  0xda   : > { %7383 = vmatprep.mubr.msk.bf16.mxu0 %vm8586_vm0, %v11925_v1 }
  0xe1   : > { %7384 = vmatmul.mubr.bf16.gmra.mxu0 %v8001_v30 }
  0xe2   : > { %7387 = vmatprep.mubr.msk.bf16.mxu0 %vm8586_vm0, %v11925_v1 }
  0xe9   : > { %7388 = vmatmul.mubr.bf16.gmra.mxu0 %v8002_v31 }
  0xea   : > { %7391 = vmatprep.mubr.msk.bf16.mxu0 %vm8586_vm0, %v11925_v1 }
  0xf1   : > { %7392 = vmatmul.mubr.bf16.gmra.mxu0 %v8003_v32  ;;  %v8011_v32 = vld [vmem:[%s8736_s17 + $0xf8] sm:$0xff]  }
  0xf2   : > { %7395 = vmatprep.mubr.msk.bf16.mxu0 %vm8586_vm0, %v11925_v1 }
  0xf9   : > { %v990_v35 = vpop.f32.mrf.mxu0  ;;  %7396 = vmatmul.mubr.bf16.gmra.mxu0 %v8004_v33 }
  0xfa   : > { %7399 = vmatprep.mubr.msk.bf16.mxu0 %vm8586_vm0, %v11925_v1  ;;  %v991_v36 = vadd.f32 %v8835_v34, %v990_v35 }
  0xfb   : > { %v7301_v37 = vpop.f32.mrf.mxu0 }
  0xfc   : > { %8288 = vtanh.f32 %v991_v36 }
  0xfd   : > { %v993_v38 = vpop.f32.mrf.mxu0 }
  0xfe   : > { %v994_v40 = vadd.f32 %v8835_v34, %v993_v38 }
  0xff   : > { %v7302_v41 = vpop.f32.mrf.mxu0 }
 0x100   : > { %8290 = vtanh.f32 %v994_v40 }
 0x101   : > { %v998_v42 = vpop.f32.mrf.mxu0  ;;  %7400 = vmatmul.mubr.bf16.gmra.mxu0 %v8005_v39 }
 0x102   : > { %7403 = vmatprep.mubr.msk.bf16.mxu0 %vm8586_vm0, %v11925_v1  ;;  %v999_v43 = vadd.f32 %v8835_v34, %v998_v42 }
 0x103   : > { %v7305_v44 = vpop.f32.mrf.mxu0 }
 0x104   : > { %8292 = vtanh.f32 %v999_v43  ;;  %v8012_v43 = vld [vmem:[%s8736_s17 + $0x100] sm:$0xff]  }
 0x105   : > { %v1001_v45 = vpop.f32.mrf.mxu0 }
 0x106   : > { %v1002_v47 = vadd.f32 %v8835_v34, %v1001_v45 }
 0x107   : > { %v7306_v48 = vpop.f32.mrf.mxu0 }
 0x108   : > { %8294 = vtanh.f32 %v1002_v47 }
 0x109   : > { %v1006_v49 = vpop.f32.mrf.mxu0  ;;  %7404 = vmatmul.mubr.bf16.gmra.mxu0 %v8006_v46  ;;  %v8850_v52 = vpop.eup %8288 }
 0x10a   : > { %7407 = vmatprep.mubr.msk.bf16.mxu0 %vm8586_vm0, %v11925_v1  ;;  %v1007_v50 = vadd.f32 %v8835_v34, %v1006_v49 }
 0x10b   : > { %v7309_v51 = vpop.f32.mrf.mxu0 }
 0x10c   : > { %8296 = vtanh.f32 %v1007_v50 }
 0x10d   : > { %v8852_v53 = vpop.eup %8290  ;;  %v1009_v54 = vpop.f32.mrf.mxu0 }
 0x10e   : > { %v1010_v56 = vadd.f32 %v8835_v34, %v1009_v54  ;;  %v1479_v57 = vpack.c.bf16 %v8852_v53, %v8850_v52 }
 0x10f   : > { %v7310_v58 = vpop.f32.mrf.mxu0 }
 0x110   : > { %8298 = vtanh.f32 %v1010_v56  ;;  %v8030_v56 = vld [vmem:[%s11908_s3 + $0x4] ss:$28 sps:$4 sm:$0xff]  }
 0x111   : > { %v1014_v59 = vpop.f32.mrf.mxu0  ;;  %7408 = vmatmul.mubr.bf16.gmra.mxu0 %v8007_v55  ;;  %v8861_v62 = vpop.eup %8292  ;;  %v8013_v55 = vld [vmem:[%s8736_s17 + $0x108] sm:$0xff]   ;;  %2144 = vmatprep.mubr.bf16.mxu1 %v8030_v56 }
 0x112   : > { %7411 = vmatprep.mubr.msk.bf16.mxu0 %vm8586_vm0, %v11925_v1  ;;  %v1015_v60 = vadd.f32 %v8835_v34, %v1014_v59 }
 0x113   : > { %v7313_v61 = vpop.f32.mrf.mxu0 }
 0x114   : > { %8300 = vtanh.f32 %v1015_v60 }
 0x115   : > { %v8863_v63 = vpop.eup %8294  ;;  %v1017_v0 = vpop.f32.mrf.mxu0 }
 0x116   : > { %v1018_v3 = vadd.f32 %v8835_v34, %v1017_v0  ;;  %v1480_v4 = vpack.c.bf16 %v8863_v63, %v8861_v62  ;;  %v8026_v63 = vld [vmem:[%s8736_s17 + $0x170] sm:$0xff]  }
 0x117   : > { %v7314_v5 = vpop.f32.mrf.mxu0 }
 0x118   : > { %8302 = vtanh.f32 %v1018_v3 }
 0x119   : > { %v1022_v6 = vpop.f32.mrf.mxu0  ;;  %7412 = vmatmul.mubr.bf16.gmra.mxu0 %v8008_v2  ;;  %v8872_v9 = vpop.eup %8296 }
 0x11a   : > { %7415 = vmatprep.mubr.msk.bf16.mxu0 %vm8586_vm0, %v11925_v1  ;;  %v1023_v7 = vadd.f32 %v8835_v34, %v1022_v6 }
 0x11b   : > { %v7317_v8 = vpop.f32.mrf.mxu0 }
 0x11c   : > { %8304 = vtanh.f32 %v1023_v7  ;;  %v8014_v7 = vld [vmem:[%s8736_s17 + $0x110] sm:$0xff]  }
 0x11d   : > { %v8874_v10 = vpop.eup %8298  ;;  %v1025_v11 = vpop.f32.mrf.mxu0 }
 0x11e   : > { %v1026_v13 = vadd.f32 %v8835_v34, %v1025_v11  ;;  %v1481_v14 = vpack.c.bf16 %v8874_v10, %v8872_v9 }
 0x11f   : > { %v7318_v15 = vpop.f32.mrf.mxu0 }
 0x120   : > { %8306 = vtanh.f32 %v1026_v13 }
 0x121   : > { %v1030_v16 = vpop.f32.mrf.mxu0  ;;  %7416 = vmatmul.mubr.bf16.gmra.mxu0 %v8009_v12  ;;  %v8883_v19 = vpop.eup %8300 }
 0x122   : > { %7419 = vmatprep.mubr.msk.bf16.mxu0 %vm8586_vm0, %v11925_v1  ;;  %v1031_v17 = vadd.f32 %v8835_v34, %v1030_v16 }
 0x123   : > { %v7321_v18 = vpop.f32.mrf.mxu0 }
 0x124   : > { %8308 = vtanh.f32 %v1031_v17 }
 0x125   : > { %v8885_v20 = vpop.eup %8302  ;;  %v1033_v21 = vpop.f32.mrf.mxu0 }
 0x126   : > { %v1034_v23 = vadd.f32 %v8835_v34, %v1033_v21  ;;  %v1482_v24 = vpack.c.bf16 %v8885_v20, %v8883_v19  ;;  %v8015_v21 = vld [vmem:[%s8736_s17 + $0x118] sm:$0xff]  }
 0x127   : > { %v7322_v25 = vpop.f32.mrf.mxu0 }
 0x128   : > { %8310 = vtanh.f32 %v1034_v23 }
 0x129   : > { %v1038_v26 = vpop.f32.mrf.mxu0  ;;  %7420 = vmatmul.mubr.bf16.gmra.mxu0 %v8010_v22  ;;  %v8894_v29 = vpop.eup %8304 }
 0x12a   : > { %7423 = vmatprep.mubr.msk.bf16.mxu0 %vm8586_vm0, %v11925_v1  ;;  %v1039_v27 = vadd.f32 %v8835_v34, %v1038_v26 }
 0x12b   : > { %v7325_v28 = vpop.f32.mrf.mxu0 }
 0x12c   : > { %8312 = vtanh.f32 %v1039_v27 }
 0x12d   : > { %v8896_v30 = vpop.eup %8306  ;;  %v1041_v31 = vpop.f32.mrf.mxu0 }
 0x12e   : > { %v1042_v33 = vadd.f32 %v8835_v34, %v1041_v31  ;;  %v1483_v35 = vpack.c.bf16 %v8896_v30, %v8894_v29 }
 0x12f   : > { %v7326_v36 = vpop.f32.mrf.mxu0 }
 0x130   : > { %8314 = vtanh.f32 %v1042_v33 }
 0x131   : > { %v1046_v37 = vpop.f32.mrf.mxu0  ;;  %7424 = vmatmul.mubr.bf16.gmra.mxu0 %v8011_v32  ;;  %v8905_v40 = vpop.eup %8308  ;;  %v8016_v32 = vld [vmem:[%s8736_s17 + $0x120] sm:$0xff]  }
 0x132   : > { %7427 = vmatprep.mubr.msk.bf16.mxu0 %vm8586_vm0, %v11925_v1  ;;  %v1047_v38 = vadd.f32 %v8835_v34, %v1046_v37 }
 0x133   : > { %v7329_v39 = vpop.f32.mrf.mxu0 }
 0x134   : > { %8316 = vtanh.f32 %v1047_v38 }
 0x135   : > { %v8907_v41 = vpop.eup %8310  ;;  %v1049_v42 = vpop.f32.mrf.mxu0 }
 0x136   : > { %v1050_v44 = vadd.f32 %v8835_v34, %v1049_v42  ;;  %v1484_v45 = vpack.c.bf16 %v8907_v41, %v8905_v40  ;;  %v8017_v42 = vld [vmem:[%s8736_s17 + $0x128] sm:$0xff]   ;;  %v8024_v40 = vld [vmem:[%s8736_s17 + $0x160] sm:$0xff]  }
 0x137   : > { %v7330_v46 = vpop.f32.mrf.mxu0 }
 0x138   : > { %8318 = vtanh.f32 %v1050_v44 }
 0x139   : > { %v1054_v47 = vpop.f32.mrf.mxu0  ;;  %7428 = vmatmul.mubr.bf16.gmra.mxu0 %v8012_v43  ;;  %v8916_v50 = vpop.eup %8312 }
 0x13a   : > { %7431 = vmatprep.mubr.msk.bf16.mxu0 %vm8586_vm0, %v11925_v1  ;;  %v1055_v48 = vadd.f32 %v8835_v34, %v1054_v47 }
 0x13b   : > { %v7333_v49 = vpop.f32.mrf.mxu0 }
 0x13c   : > { %8320 = vtanh.f32 %v1055_v48  ;;  %v8018_v48 = vld [vmem:[%s8736_s17 + $0x130] sm:$0xff]  }
 0x13d   : > { %v8918_v51 = vpop.eup %8314  ;;  %v1057_v54 = vpop.f32.mrf.mxu0 }
 0x13e   : > { %v1058_v58 = vadd.f32 %v8835_v34, %v1057_v54  ;;  %v1485_v59 = vpack.c.bf16 %v8918_v51, %v8916_v50 }
 0x13f   : > { %v7334_v60 = vpop.f32.mrf.mxu0 }
 0x140   : > { %8322 = vtanh.f32 %v1058_v58  ;;  %v8019_v58 = vld [vmem:[%s8736_s17 + $0x138] sm:$0xff]  }
 0x141   : > { %v1062_v61 = vpop.f32.mrf.mxu0  ;;  %7432 = vmatmul.mubr.bf16.gmra.mxu0 %v8013_v55  ;;  %v8930_v3 = vpop.eup %8316 }
 0x142   : > { %7435 = vmatprep.mubr.msk.bf16.mxu0 %vm8586_vm0, %v11925_v1  ;;  %v1063_v0 = vadd.f32 %v8835_v34, %v1062_v61 }
 0x143   : > { %v7337_v2 = vpop.f32.mrf.mxu0 }
 0x144   : > { %8324 = vtanh.f32 %v1063_v0 }
 0x145   : > { %v8932_v5 = vpop.eup %8318  ;;  %v1065_v6 = vpop.f32.mrf.mxu0 }
 0x146   : > { %v1066_v8 = vadd.f32 %v8835_v34, %v1065_v6  ;;  %v1486_v11 = vpack.c.bf16 %v8932_v5, %v8930_v3  ;;  %v8023_v3 = vld [vmem:[%s8736_s17 + $0x158] sm:$0xff]  }
 0x147   : > { %v7338_v12 = vpop.f32.mrf.mxu0 }
 0x148   : > { %8326 = vtanh.f32 %v1066_v8  ;;  %v8020_v8 = vld [vmem:[%s8736_s17 + $0x140] sm:$0xff]  }
 0x149   : > { %v8938_v13 = vpop.f32.mrf.mxu0  ;;  %7436 = vmatmul.mubr.bf16.gmra.mxu0 %v8014_v7  ;;  %v8942_v16 = vpop.eup %8320 }
 0x14a   : > { %7439 = vmatprep.mubr.msk.bf16.mxu0 %vm8586_vm0, %v11925_v1 }
 0x14b   : > { %v7341_v15 = vpop.f32.mrf.mxu0 }
 0x14d   : > { %v8944_v17 = vpop.eup %8322  ;;  %v8946_v18 = vpop.f32.mrf.mxu0 }
 0x14e   : > { %v1487_v22 = vpack.c.bf16 %v8944_v17, %v8942_v16 }
 0x14f   : > { %v7342_v23 = vpop.f32.mrf.mxu0 }
 0x151   : > { %v8951_v25 = vpop.f32.mrf.mxu0  ;;  %7440 = vmatmul.mubr.bf16.gmra.mxu0 %v8015_v21  ;;  %v8955_v27 = vpop.eup %8324 }
 0x152   : > { %7443 = vmatprep.mubr.msk.bf16.mxu0 %vm8586_vm0, %v11925_v1 }
 0x153   : > { %v7345_v26 = vpop.f32.mrf.mxu0 }
 0x155   : > { %v8957_v28 = vpop.eup %8326  ;;  %v1081_v31 = vpop.f32.mrf.mxu0 }
 0x156   : > { %v1488_v33 = vpack.c.bf16 %v8957_v28, %v8955_v27  ;;  %v8028_v27 = vld [vmem:[%s11908_s3] ss:$28 sps:$4 sm:$0xff]  }
 0x157   : > { %v7346_v36 = vpop.f32.mrf.mxu0 }
 0x159   : > { %v1086_v37 = vpop.f32.mrf.mxu0  ;;  %7444 = vmatmul.mubr.bf16.gmra.mxu0 %v8016_v32 }
 0x15a   : > { %7447 = vmatprep.mubr.msk.bf16.mxu0 %vm8586_vm0, %v11925_v1 }
 0x15b   : > { %v7349_v38 = vpop.f32.mrf.mxu0 }
 0x15d   : > { %v1089_v39 = vpop.f32.mrf.mxu0 }
 0x15e   : > { %v1090_v26 = vadd.f32 %v8835_v34, %v1089_v39 }
 0x15f   : > { %v7350_v43 = vpop.f32.mrf.mxu0 }
 0x161   : > { %v1094_v44 = vpop.f32.mrf.mxu0  ;;  %7448 = vmatmul.mubr.bf16.gmra.mxu0 %v8017_v42 }
 0x162   : > { %7451 = vmatprep.mubr.msk.bf16.mxu0 %vm8586_vm0, %v11925_v1  ;;  %v1095_v36 = vadd.f32 %v8835_v34, %v1094_v44  ;;  %v1082_v44 = vadd.f32 %v8835_v34, %v1081_v31 }
 0x163   : > { %v7353_v46 = vpop.f32.mrf.mxu0 }
 0x164   : > { %v8021_v46 = vld [vmem:[%s8736_s17 + $0x148] sm:$0xff]  }
 0x165   : > { %v1097_v47 = vpop.f32.mrf.mxu0 }
 0x166   : > { %v1098_v23 = vadd.f32 %v8835_v34, %v1097_v47  ;;  %v1087_v47 = vadd.f32 %v8835_v34, %v1086_v37 }
 0x167   : > { %v7354_v49 = vpop.f32.mrf.mxu0 }
 0x168   : > { %v1074_v49 = vadd.f32 %v8835_v34, %v8946_v18  ;;  %v1071_v18 = vadd.f32 %v8835_v34, %v8938_v13 }
 0x169   : > { %v1102_v54 = vpop.f32.mrf.mxu0  ;;  %7452 = vmatmul.mubr.bf16.gmra.mxu0 %v8018_v48 }
 0x16a   : > { %7455 = vmatprep.mubr.msk.bf16.mxu0 %vm8586_vm0, %v11925_v1  ;;  %v1103_v12 = vadd.f32 %v8835_v34, %v1102_v54 }
 0x16b   : > { %v7357_v55 = vpop.f32.mrf.mxu0 }
 0x16c   : > { %v1079_v55 = vadd.f32 %v8835_v34, %v8951_v25 }
 0x16d   : > { %v1105_v56 = vpop.f32.mrf.mxu0 }
 0x16e   : > { %v1106_v0 = vadd.f32 %v8835_v34, %v1105_v56 }
 0x16f   : > { %v7358_v60 = vpop.f32.mrf.mxu0 }
 0x170   : > { %8328 = vtanh.f32 %v1106_v0  ;;  %v8022_v0 = vld [vmem:[%s8736_s17 + $0x150] sm:$0xff]  }
 0x171   : > { %v1110_v61 = vpop.f32.mrf.mxu0  ;;  %7456 = vmatmul.mubr.bf16.gmra.mxu0 %v8019_v58 }
 0x172   : > { %7459 = vmatprep.mubr.msk.bf16.mxu0 %vm8586_vm0, %v11925_v1  ;;  %v1111_v2 = vadd.f32 %v8835_v34, %v1110_v61 }
 0x173   : > { %v7361_v6 = vpop.f32.mrf.mxu0 }
 0x174   : > { %8330 = vtanh.f32 %v1111_v2 }
 0x175   : > { %v1113_v7 = vpop.f32.mrf.mxu0 }
 0x176   : > { %v1114_v15 = vadd.f32 %v8835_v34, %v1113_v7 }
 0x177   : > { %v7362_v21 = vpop.f32.mrf.mxu0 }
 0x178   : > { %8332 = vtanh.f32 %v1114_v15 }
 0x179   : > { %v1118_v32 = vpop.f32.mrf.mxu0  ;;  %7460 = vmatmul.mubr.bf16.gmra.mxu0 %v8020_v8  ;;  %8334 = vtanh.f32 %v1103_v12 }
 0x17a   : > { %7463 = vmatprep.mubr.msk.bf16.mxu0 %vm8586_vm0, %v11925_v1  ;;  %v1119_v38 = vadd.f32 %v8835_v34, %v1118_v32  ;;  %8336 = vtanh.f32 %v1098_v23 }
 0x17b   : > { %v7365_v42 = vpop.f32.mrf.mxu0  ;;  %8338 = vtanh.f32 %v1090_v26 }
 0x17c   : > { %8340 = vtanh.f32 %v1095_v36 }
 0x17d   : > { %v1121_v43 = vpop.f32.mrf.mxu0  ;;  %8342 = vtanh.f32 %v1119_v38  ;;  %v8329_v37 = vpop.eup %8328 }
 0x17e   : > { %v1122_v39 = vadd.f32 %v8835_v34, %v1121_v43 }
 0x17f   : > { %v7366_v48 = vpop.f32.mrf.mxu0 }
 0x180   : > { %8344 = vtanh.f32 %v1122_v39 }
 0x181   : > { %v1126_v54 = vpop.f32.mrf.mxu0  ;;  %7464 = vmatmul.mubr.bf16.gmra.mxu0 %v8021_v46  ;;  %8346 = vtanh.f32 %v1087_v47  ;;  %v8331_v60 = vpop.eup %8330 }
 0x182   : > { %7467 = vmatprep.mubr.msk.bf16.mxu0 %vm8586_vm0, %v11925_v1  ;;  %v1127_v56 = vadd.f32 %v8835_v34, %v1126_v54  ;;  %8348 = vtanh.f32 %v1082_v44 }
 0x183   : > { %v7369_v58 = vpop.f32.mrf.mxu0  ;;  %8350 = vtanh.f32 %v1074_v49 }
 0x184   : > { %8352 = vtanh.f32 %v1079_v55 }
 0x185   : > { %v8333_v31 = vpop.eup %8332  ;;  %v1129_v61 = vpop.f32.mrf.mxu0  ;;  %8354 = vtanh.f32 %v1127_v56 }
 0x186   : > { %v1130_v25 = vadd.f32 %v8835_v34, %v1129_v61  ;;  %v1494_v2 = vpack.c.bf16 %v8333_v31, %v8331_v60  ;;  %v8335_v6 = vpop.eup %8334 }
 0x187   : > { %v7370_v7 = vpop.f32.mrf.mxu0  ;;  %v1493_v8 = vpack.c.bf16 %v8329_v37, %v8335_v6  ;;  %v8337_v12 = vpop.eup %8336 }
 0x188   : > { %8356 = vtanh.f32 %v1130_v25  ;;  %6848 = vmatprep.subr.bf16.mxu1 %v1494_v2  ;;  %v8339_v21 = vpop.eup %8338  ;;  %v8033_v2 = vld [vmem:[%s11908_s3 + $0x38] ss:$28 sps:$4 sm:$0xff]  }
 0x189   : > { %v1134_v15 = vpop.f32.mrf.mxu0  ;;  %7468 = vmatmul.mubr.bf16.gmra.mxu0 %v8022_v0  ;;  %6849 = vmatpush3.bf16.msra.mxu1 %v1486_v11  ;;  %8358 = vtanh.f32 %v1071_v18  ;;  %v8341_v13 = vpop.eup %8340  ;;  %v8025_v18 = vld [vmem:[%s8736_s17 + $0x168] sm:$0xff]  }
 0x18a   : > { %6850 = vmatprep.subr.bf16.mxu1 %v1493_v8  ;;  %7471 = vmatprep.mubr.msk.bf16.mxu0 %vm8586_vm0, %v11925_v1  ;;  %v1135_v23 = vadd.f32 %v8835_v34, %v1134_v15  ;;  %v9005_v32 = vpop.eup %8342  ;;  %v1492_v36 = vpack.c.bf16 %v8337_v12, %v8341_v13  ;;  %v8027_v8 = vld [vmem:[%s8736_s17 + $0x178] sm:$0xff]   ;;  %v8034_v12 = vld [vmem:[%s11908_s3 + $0x74] ss:$28 sps:$4 sm:$0xff]  }
 0x18b   : > { %v7373_v26 = vpop.f32.mrf.mxu0 }
 0x18c   : > { %8360 = vtanh.f32 %v1135_v23 }
 0x18d   : > { %v9007_v38 = vpop.eup %8344  ;;  %v1137_v42 = vpop.f32.mrf.mxu0  ;;  %6851 = vmatpush3.bf16.msra.mxu1 %v1485_v59 }
 0x18e   : > { %v1138_v5 = vadd.f32 %v8835_v34, %v1137_v42  ;;  %6852 = vmatprep.subr.bf16.mxu1 %v1492_v36  ;;  %v1495_v11 = vpack.c.bf16 %v9007_v38, %v9005_v32  ;;  %v8347_v43 = vpop.eup %8346  ;;  %v8072_v38 = vld [vmem:[%s11908_s3 + $0x40] ss:$28 sps:$4 sm:$0xff]  }
 0x18f   : > { %v7374_v46 = vpop.f32.mrf.mxu0  ;;  %v1491_v47 = vpack.c.bf16 %v8339_v21, %v8347_v43  ;;  %v8349_v39 = vpop.eup %8348 }
 0x190   : > { %8362 = vtanh.f32 %v1138_v5  ;;  %v8351_v50 = vpop.eup %8350  ;;  %v8037_v46 = vld [vmem:[%s11908_s3 + $0xac] ss:$28 sps:$4 sm:$0xff]  }
 0x191   : > { %v1142_v48 = vpop.f32.mrf.mxu0  ;;  %7472 = vmatmul.mubr.bf16.gmra.mxu0 %v8023_v3  ;;  %6853 = vmatpush3.bf16.msra.mxu1 %v1484_v45  ;;  %v8353_v51 = vpop.eup %8352  ;;  %v8036_v3 = vld [vmem:[%s11908_s3 + $0x70] ss:$28 sps:$4 sm:$0xff]  }
 0x192   : > { %6854 = vmatprep.subr.bf16.mxu1 %v1491_v47  ;;  %7475 = vmatprep.mubr.msk.bf16.mxu0 %vm8586_vm0, %v11925_v1  ;;  %v1143_v59 = vadd.f32 %v8835_v34, %v1142_v48  ;;  %v9022_v49 = vpop.eup %8354  ;;  %v1490_v54 = vpack.c.bf16 %v8349_v39, %v8353_v51  ;;  %v8061_v47 = vld [vmem:[%s8736_s17 + $0x180] sm:$0xff]   ;;  %s8527_s17 = sshll.u32 %s8588_s22, 4  ;;  %s8528_s17 = int_to_ptr.vmem [resolvable:$false] %s8527_s17 }
 0x193   : > { %v7377_v44 = vpop.f32.mrf.mxu0  ;;  %s8529_s23 = scalar_lea.vmem %s8528_s17, 32  ;;  %p8530_p0 = scmp.lt.s32.totalorder %s11866_s16, %s8528_s17 }
 0x194   : > { %8364 = vtanh.f32 %v1143_v59  ;;  %p8531_p1 = scmp.lt.s32.totalorder %s8529_s23, %s8523_s25 }
 0x195   : > { %v9024_v55 = vpop.eup %8356  ;;  %v1145_v37 = vpop.f32.mrf.mxu0  ;;  %6855 = vmatpush3.bf16.msra.mxu1 %v1483_v35 }
 0x196   : > { %v1146_v41 = vadd.f32 %v8835_v34, %v1145_v37  ;;  %6856 = vmatprep.subr.bf16.mxu1 %v1490_v54  ;;  %v1496_v45 = vpack.c.bf16 %v9024_v55, %v9022_v49  ;;  %v8359_v56 = vpop.eup %8358  ;;  %v8039_v37 = vld [vmem:[%s11908_s3 + $0xa8] ss:$28 sps:$4 sm:$0xff]   ;;  %p8532_p2 = por %p8531_p1, %p8530_p0 }
 0x197   : > { %v7378_v58 = vpop.f32.mrf.mxu0  ;;  %v1489_v60 = vpack.c.bf16 %v8351_v50, %v8359_v56  ;;  %v8040_v56 = vld [vmem:[%s11908_s3 + $0xe4] ss:$28 sps:$4 sm:$0xff]  }
 0x198   : > { %8366 = vtanh.f32 %v1146_v41  ;;  %v8070_v49 = vld [vmem:[%s11908_s3 + $0x44] ss:$28 sps:$4 sm:$0xff]   ;;  %p8533_p3 = pnand %p8532_p2, %p8526_p13 }
 0x199   : > { %v1150_v31 = vpop.f32.mrf.mxu0  ;;  %7476 = vmatmul.mubr.bf16.gmra.mxu0 %v8024_v40  ;;  %6857 = vmatpush3.bf16.msra.mxu1 %v1482_v24  ;;  %v9039_v35 = vpop.eup %8360 }
 0x19a   : > { %6858 = vmatprep.subr.bf16.mxu1 %v1489_v60  ;;  %7479 = vmatprep.mubr.msk.bf16.mxu0 %vm8586_vm0, %v11925_v1  ;;  %v1151_v29 = vadd.f32 %v8835_v34, %v1150_v31 }
 0x19b   : > { %v7381_v30 = vpop.f32.mrf.mxu0 }
 0x19c   : > { %8368 = vtanh.f32 %v1151_v29 }
 0x19d   : > { %v9041_v61 = vpop.eup %8362  ;;  %v1153_v0 = vpop.f32.mrf.mxu0  ;;  %6859 = vmatpush3.bf16.msra.mxu1 %v1481_v14 }
 0x19e   : > { %v1154_v19 = vadd.f32 %v8835_v34, %v1153_v0  ;;  %6860 = vmatprep.subr.bf16.mxu1 %v1488_v33  ;;  %v1497_v20 = vpack.c.bf16 %v9041_v61, %v9039_v35 }
 0x19f   : > { %v7382_v24 = vpop.f32.mrf.mxu0 }
 0x1a0   : > { %8370 = vtanh.f32 %v1154_v19  ;;  %v8042_v19 = vld [vmem:[%s11908_s3 + $0xe0] ss:$28 sps:$4 sm:$0xff]  }
 0x1a1   : > { %v1158_v25 = vpop.f32.mrf.mxu0  ;;  %7480 = vmatmul.mubr.bf16.gmra.mxu0 %v8025_v18  ;;  %6861 = vmatpush3.bf16.msra.mxu1 %v1480_v4  ;;  %v9062_v14 = vpop.eup %8364  ;;  %v8031_v4 = vld [vmem:[%s11908_s3 + $0x3c] ss:$28 sps:$4 sm:$0xff]  }
 0x1a2   : > { %6862 = vmatprep.subr.bf16.mxu1 %v1487_v22  ;;  %7483 = vmatprep.mubr.msk.bf16.mxu0 %vm8586_vm0, %v11925_v1  ;;  %v1159_v9 = vadd.f32 %v8835_v34, %v1158_v25 }
 0x1a3   : > { %v7385_v10 = vpop.f32.mrf.mxu0 }
 0x1a4   : > { %8372 = vtanh.f32 %v1159_v9  ;;  %v8043_v9 = vld [vmem:[%s11908_s3 + $0x11c] ss:$28 sps:$4 sm:$0xff]  }
 0x1a5   : > { %v9067_v28 = vpop.eup %8366  ;;  %v1161_v62 = vpop.f32.mrf.mxu0  ;;  %6863 = vmatpush3.bf16.msra.mxu1 %v1479_v57 }
 0x1a6   : > { %v1162_v16 = vadd.f32 %v8835_v34, %v1161_v62  ;;  %v1498_v17 = vpack.c.bf16 %v9067_v28, %v9062_v14 }
 0x1a7   : > { %v7386_v22 = vpop.f32.mrf.mxu0 }
 0x1a8   : > { %8374 = vtanh.f32 %v1162_v16  ;;  %2145 = vmatmul.mubr.bf16.vlgmr.msra.gmra.mxu1 %v8028_v27  ;;  %v8045_v22 = vld [vmem:[%s11908_s3 + $0x118] ss:$28 sps:$4 sm:$0xff]  }
 0x1a9   : > { %v1166_v33 = vpop.f32.mrf.mxu0  ;;  %7484 = vmatmul.mubr.bf16.gmra.mxu0 %v8026_v63  ;;  %2152 = vmatprep.mubr.bf16.mxu1 %v8031_v4  ;;  %v9082_v57 = vpop.eup %8368 }
 0x1aa   : > { %7487 = vmatprep.mubr.msk.bf16.mxu0 %vm8586_vm0, %v11925_v1  ;;  %v1167_v52 = vadd.f32 %v8835_v34, %v1166_v33 }
 0x1ab   : > { %v7389_v53 = vpop.f32.mrf.mxu0 }
 0x1ac   : > { %8376 = vtanh.f32 %v1167_v52  ;;  %v8046_v53 = vld [vmem:[%s11908_s3 + $0x154] ss:$28 sps:$4 sm:$0xff]  }
 0x1ad   : > { %v9087_v6 = vpop.eup %8370  ;;  %v1169_v7 = vpop.f32.mrf.mxu0 }
 0x1ae   : > { %v1170_v15 = vadd.f32 %v8835_v34, %v1169_v7  ;;  %v1499_v21 = vpack.c.bf16 %v9087_v6, %v9082_v57 }
 0x1af   : > { %v7390_v13 = vpop.f32.mrf.mxu0 }
 0x1b0   : > { %8378 = vtanh.f32 %v1170_v15  ;;  %2153 = vmatmul.mubr.bf16.gmra.mxu1 %v8033_v2  ;;  %v8048_v13 = vld [vmem:[%s11908_s3 + $0x150] ss:$28 sps:$4 sm:$0xff]  }
 0x1b1   : > { %v1174_v23 = vpop.f32.mrf.mxu0  ;;  %7488 = vmatmul.mubr.bf16.gmra.mxu0 %v8027_v8  ;;  %2160 = vmatprep.mubr.bf16.mxu1 %v8034_v12  ;;  %v9099_v42 = vpop.eup %8372 }
 0x1b2   : > { %7491 = vmatprep.mubr.msk.bf16.mxu0 %vm8586_vm0, %v11925_v1  ;;  %v1175_v26 = vadd.f32 %v8835_v34, %v1174_v23 }
 0x1b3   : > { %v7393_v36 = vpop.f32.mrf.mxu0 }
 0x1b4   : > { %8380 = vtanh.f32 %v1175_v26  ;;  %v8049_v36 = vld [vmem:[%s11908_s3 + $0x18c] ss:$28 sps:$4 sm:$0xff]  }
 0x1b5   : > { %v9104_v5 = vpop.eup %8374  ;;  %v1177_v43 = vpop.f32.mrf.mxu0 }
 0x1b6   : > { %v1178_v39 = vadd.f32 %v8835_v34, %v1177_v43  ;;  %v1500_v48 = vpack.c.bf16 %v9104_v5, %v9099_v42 }
 0x1b7   : > { %v7394_v50 = vpop.f32.mrf.mxu0 }
 0x1b8   : > { %8382 = vtanh.f32 %v1178_v39  ;;  %2161 = vmatmul.mubr.bf16.gmra.mxu1 %v8036_v3  ;;  %v8051_v39 = vld [vmem:[%s11908_s3 + $0x188] ss:$28 sps:$4 sm:$0xff]  }
 0x1b9   : > { %v1182_v51 = vpop.f32.mrf.mxu0  ;;  %2168 = vmatprep.mubr.bf16.mxu1 %v8037_v46  ;;  %7492 = vmatmul.mubr.bf16.gmra.mxu0 %v8061_v47  ;;  %v9116_v54 = vpop.eup %8376 }
 0x1ba   : > { %7565 = vmatprep.mubr.msk.bf16.mxu0 %vm8586_vm0, %v11925_v1  ;;  %v1183_v59 = vadd.f32 %v8835_v34, %v1182_v51  ;;  %v8052_v51 = vld [vmem:[%s11908_s3 + $0x1c4] ss:$28 sps:$4 sm:$0xff]  }
 0x1bb   : > { %v7397_v44 = vpop.f32.mrf.mxu0 }
 0x1bc   : > { %8384 = vtanh.f32 %v1183_v59 }
 0x1bd   : > { %v9121_v40 = vpop.eup %8378  ;;  %v1185_v41 = vpop.f32.mrf.mxu0 }
 0x1be   : > { %v1186_v58 = vadd.f32 %v8835_v34, %v1185_v41  ;;  %v1501_v60 = vpack.c.bf16 %v9121_v40, %v9116_v54  ;;  %v8054_v41 = vld [vmem:[%s11908_s3 + $0x1c0] ss:$28 sps:$4 sm:$0xff]  }
 0x1bf   : > { %v7398_v31 = vpop.f32.mrf.mxu0 }
 0x1c0   : > { %8386 = vtanh.f32 %v1186_v58  ;;  %2169 = vmatmul.mubr.bf16.gmra.mxu1 %v8039_v37  ;;  %v8055_v58 = vld [vmem:[%s11908_s3 + $0x1fc] ss:$28 sps:$4 sm:$0xff]  }
 0x1c1   : > { %v1190_v29 = vpop.f32.mrf.mxu0  ;;  %2176 = vmatprep.mubr.bf16.mxu1 %v8040_v56  ;;  %v9130_v18 = vpop.eup %8380 }
 0x1c2   : > { %v1191_v30 = vadd.f32 %v8835_v34, %v1190_v29 }
 0x1c3   : > { %v7401_v0 = vpop.f32.mrf.mxu0 }
 0x1c4   : > { %8388 = vtanh.f32 %v1191_v30  ;;  %v8057_v0 = vld [vmem:[%s11908_s3 + $0x1f8] ss:$28 sps:$4 sm:$0xff]  }
 0x1c5   : > { %v9135_v24 = vpop.eup %8382  ;;  %v1193_v25 = vpop.f32.mrf.mxu0 }
 0x1c6   : > { %v1194_v10 = vadd.f32 %v8835_v34, %v1193_v25  ;;  %v1502_v27 = vpack.c.bf16 %v9135_v24, %v9130_v18  ;;  %v8058_v25 = vld [vmem:[%s11908_s3 + $0x234] ss:$28 sps:$4 sm:$0xff]   ;;  %v9242_v18 = vld [vmem:[%s11907_s2] ss:$0 sm:$0xff] }
 0x1c7   : > { %v7402_v62 = vpop.f32.mrf.mxu0 }
 0x1c8   : > { %8390 = vtanh.f32 %v1194_v10  ;;  %2177 = vmatmul.mubr.bf16.gmra.mxu1 %v8042_v19 }
 0x1c9   : > { %v9143_v63 = vpop.f32.mrf.mxu0  ;;  %2184 = vmatprep.mubr.bf16.mxu1 %v8043_v9  ;;  %v9145_v16 = vpop.eup %8384 }
 0x1cb   : > { %v7405_v4 = vpop.f32.mrf.mxu0 }
 0x1cd   : > { %v9150_v33 = vpop.eup %8386  ;;  %v9152_v52 = vpop.f32.mrf.mxu0 }
 0x1ce   : > { %v1503_v2 = vpack.c.bf16 %v9150_v33, %v9145_v16 }
 0x1cf   : > { %v7406_v7 = vpop.f32.mrf.mxu0 }
 0x1d0   : > { %2185 = vmatmul.mubr.bf16.gmra.mxu1 %v8045_v22 }
 0x1d1   : > { %v9159_v8 = vpop.f32.mrf.mxu0  ;;  %2192 = vmatprep.mubr.bf16.mxu1 %v8046_v53  ;;  %v9161_v15 = vpop.eup %8388  ;;  %v8060_v53 = vld [vmem:[%s11908_s3 + $0x230] ss:$28 sps:$4 sm:$0xff]  }
 0x1d3   : > { %v7409_v12 = vpop.f32.mrf.mxu0 }
 0x1d4   : > { %v8062_v12 = vld [vmem:[%s11908_s3 + $0x26c] ss:$28 sps:$4 sm:$0xff]  }
 0x1d5   : > { %v9166_v23 = vpop.eup %8390  ;;  %v9168_v26 = vpop.f32.mrf.mxu0 }
 0x1d6   : > { %v1504_v3 = vpack.c.bf16 %v9166_v23, %v9161_v15  ;;  %v8067_v15 = vld [vmem:[%s11908_s3 + $0x8] ss:$28 sps:$4 sm:$0xff]  }
 0x1d7   : > { %v7410_v43 = vpop.f32.mrf.mxu0 }
 0x1d8   : > { %2193 = vmatmul.mubr.bf16.gmra.mxu1 %v8048_v13 }
 0x1d9   : > { %v1214_v46 = vpop.f32.mrf.mxu0  ;;  %2200 = vmatprep.mubr.bf16.mxu1 %v8049_v36 }
 0x1db   : > { %v7413_v47 = vpop.f32.mrf.mxu0 }
 0x1dd   : > { %v1217_v50 = vpop.f32.mrf.mxu0 }
 0x1df   : > { %v7414_v59 = vpop.f32.mrf.mxu0 }
 0x1e0   : > { %2201 = vmatmul.mubr.bf16.gmra.mxu1 %v8051_v39  ;;  %v1218_v39 = vadd.f32 %v8835_v34, %v1217_v50 }
 0x1e1   : > { %v1222_v44 = vpop.f32.mrf.mxu0  ;;  %2208 = vmatprep.mubr.bf16.mxu1 %v8052_v51 }
 0x1e2   : > { %v1223_v59 = vadd.f32 %v8835_v34, %v1222_v44 }
 0x1e3   : > { %v7417_v37 = vpop.f32.mrf.mxu0 }
 0x1e4   : > { %v1624_v37 = vld [vmem:[%s11908_s3 + $0x2a0] sm:$0x33] }
 0x1e5   : > { %v1225_v56 = vpop.f32.mrf.mxu0  ;;  %v6282_v50 = vcombine.high %v1624_v37, %v1624_v37 }
 0x1e6   : > { %v1226_v47 = vadd.f32 %v8835_v34, %v1225_v56  ;;  %v8064_v56 = vld [vmem:[%s11908_s3 + $0x268] ss:$28 sps:$4 sm:$0xff]  }
 0x1e7   : > { %v7418_v31 = vpop.f32.mrf.mxu0 }
 0x1e8   : > { %2209 = vmatmul.mubr.bf16.gmra.mxu1 %v8054_v41 }
 0x1e9   : > { %v1230_v29 = vpop.f32.mrf.mxu0  ;;  %2216 = vmatprep.mubr.bf16.mxu1 %v8055_v58 }
 0x1ea   : > { %v1231_v13 = vadd.f32 %v8835_v34, %v1230_v29  ;;  %v1215_v29 = vadd.f32 %v8835_v34, %v1214_v46 }
 0x1eb   : > { %v7421_v30 = vpop.f32.mrf.mxu0 }
 0x1ed   : > { %v1233_v19 = vpop.f32.mrf.mxu0 }
 0x1ee   : > { %v1234_v62 = vadd.f32 %v8835_v34, %v1233_v19  ;;  %v1202_v19 = vadd.f32 %v8835_v34, %v9152_v52  ;;  %v8069_v52 = vld [vmem:[%s11908_s3 + $0xc] ss:$28 sps:$4 sm:$0xff]  }
 0x1ef   : > { %v7422_v9 = vpop.f32.mrf.mxu0 }
 0x1f0   : > { %2217 = vmatmul.mubr.bf16.gmra.mxu1 %v8057_v0  ;;  %8392 = vtanh.f32 %v1234_v62  ;;  %v1210_v0 = vadd.f32 %v8835_v34, %v9168_v26  ;;  %v1207_v9 = vadd.f32 %v8835_v34, %v9159_v8 }
 0x1f1   : > { %v1238_v10 = vpop.f32.mrf.mxu0  ;;  %2224 = vmatprep.mubr.bf16.mxu1 %v8058_v25 }
 0x1f2   : > { %v1239_v4 = vadd.f32 %v8835_v34, %v1238_v10 }
 0x1f3   : > { %v7425_v22 = vpop.f32.mrf.mxu0 }
 0x1f4   : > { %8394 = vtanh.f32 %v1239_v4  ;;  %v6281_v22 = vcombine.low %v1624_v37, %v1624_v37 }
 0x1f5   : > { %v1241_v7 = vpop.f32.mrf.mxu0 }
 0x1f6   : > { %v1242_v36 = vadd.f32 %v8835_v34, %v1241_v7  ;;  %v1199_v7 = vadd.f32 %v8835_v34, %v9143_v63 }
 0x1f7   : > { %v7426_v43 = vpop.f32.mrf.mxu0 }
 0x1f8   : > { %8396 = vtanh.f32 %v1242_v36  ;;  %2225 = vmatmul.mubr.bf16.gmra.mxu1 %v8060_v53 }
 0x1f9   : > { %v1246_v51 = vpop.f32.mrf.mxu0  ;;  %2232 = vmatprep.mubr.bf16.mxu1 %v8062_v12  ;;  %8398 = vtanh.f32 %v1231_v13 }
 0x1fa   : > { %v1247_v41 = vadd.f32 %v8835_v34, %v1246_v51  ;;  %8400 = vtanh.f32 %v1226_v47 }
 0x1fb   : > { %v7429_v58 = vpop.f32.mrf.mxu0  ;;  %8402 = vtanh.f32 %v1218_v39 }
 0x1fc   : > { %8404 = vtanh.f32 %v1223_v59 }
 0x1fd   : > { %v1249_v31 = vpop.f32.mrf.mxu0  ;;  %8406 = vtanh.f32 %v1247_v41  ;;  %v8393_v46 = vpop.eup %8392 }
 0x1fe   : > { %v1250_v44 = vadd.f32 %v8835_v34, %v1249_v31 }
 0x1ff   : > { %v7430_v30 = vpop.f32.mrf.mxu0 }
 0x200   : > { %8408 = vtanh.f32 %v1250_v44  ;;  %2233 = vmatmul.mubr.bf16.gmra.mxu1 %v8064_v56 }
 0x201   : > { %v1254_v25 = vpop.f32.mrf.mxu0  ;;  %2240 = vmatprep.mubr.bf16.mxu1 %v6282_v50  ;;  %8410 = vtanh.f32 %v1215_v29  ;;  %v8395_v4 = vpop.eup %8394 }
 0x202   : > { %v1255_v10 = vadd.f32 %v8835_v34, %v1254_v25  ;;  %8412 = vtanh.f32 %v1210_v0 }
 0x203   : > { %v7433_v62 = vpop.f32.mrf.mxu0  ;;  %8414 = vtanh.f32 %v1202_v19 }
 0x204   : > { %8416 = vtanh.f32 %v1207_v9 }
 0x205   : > { %v8397_v53 = vpop.eup %8396  ;;  %v1257_v26 = vpop.f32.mrf.mxu0  ;;  %8418 = vtanh.f32 %v1255_v10 }
 0x206   : > { %v1258_v8 = vadd.f32 %v8835_v34, %v1257_v26  ;;  %v1510_v12 = vpack.c.bf16 %v8397_v53, %v8395_v4  ;;  %v8399_v13 = vpop.eup %8398 }
 0x207   : > { %v7434_v36 = vpop.f32.mrf.mxu0  ;;  %v1509_v43 = vpack.c.bf16 %v8393_v46, %v8399_v13  ;;  %v8401_v47 = vpop.eup %8400 }
 0x208   : > { %8420 = vtanh.f32 %v1258_v8  ;;  %6942 = vmatprep.subr.bf16.mxu1 %v1510_v12  ;;  %2241 = vmatmul.mubr.bf16.gmra.mxu1 %v6281_v22  ;;  %v8403_v51 = vpop.eup %8402  ;;  %v8073_v8 = vld [vmem:[%s11908_s3 + $0x7c] ss:$28 sps:$4 sm:$0xff]  }
 0x209   : > { %v1262_v39 = vpop.f32.mrf.mxu0  ;;  %6943 = vmatpush3.bf16.msra.mxu1 %v1502_v27  ;;  %2280 = vmatprep.mubr.bf16.mxu1 %v8069_v52  ;;  %8422 = vtanh.f32 %v1199_v7  ;;  %v8405_v63 = vpop.eup %8404 }
 0x20a   : > { %6944 = vmatprep.subr.bf16.mxu1 %v1509_v43  ;;  %v1263_v59 = vadd.f32 %v8835_v34, %v1262_v39  ;;  %v9232_v41 = vpop.eup %8406  ;;  %v1508_v58 = vpack.c.bf16 %v8401_v47, %v8405_v63  ;;  %v8075_v63 = vld [vmem:[%s11908_s3 + $0x78] ss:$28 sps:$4 sm:$0xff]  }
 0x20b   : > { %v7437_v37 = vpop.f32.mrf.mxu0 }
 0x20c   : > { %8424 = vtanh.f32 %v1263_v59 }
 0x20d   : > { %v9234_v56 = vpop.eup %8408  ;;  %v1265_v31 = vpop.f32.mrf.mxu0  ;;  %6945 = vmatpush3.bf16.msra.mxu1 %v1501_v60 }
 0x20e   : > { %v1266_v24 = vadd.f32 %v9242_v18, %v1265_v31  ;;  %6946 = vmatprep.subr.bf16.mxu1 %v1508_v58  ;;  %v1511_v34 = vpack.c.bf16 %v9234_v56, %v9232_v41  ;;  %v8411_v27 = vpop.eup %8410  ;;  %v8076_v58 = vld [vmem:[%s11908_s3 + $0xb4] ss:$28 sps:$4 sm:$0xff]   ;;  %v8110_v41 = vld [vmem:[%s11908_s3 + $0x48] ss:$28 sps:$4 sm:$0xff]  }
 0x20f   : > { %v7438_v50 = vpop.f32.mrf.mxu0  ;;  %v1507_v29 = vpack.c.bf16 %v8403_v51, %v8411_v27  ;;  %v8413_v44 = vpop.eup %8412 }
 0x210   : > { %8426 = vtanh.f32 %v1266_v24  ;;  %v8415_v54 = vpop.eup %8414 }
 0x211   : > { %v1270_v30 = vpop.f32.mrf.mxu0  ;;  %6947 = vmatpush3.bf16.msra.mxu1 %v1500_v48  ;;  %v8417_v40 = vpop.eup %8416 }
 0x212   : > { %6948 = vmatprep.subr.bf16.mxu1 %v1507_v29  ;;  %v1271_v60 = vadd.f32 %v9242_v18, %v1270_v30  ;;  %v9251_v19 = vpop.eup %8418  ;;  %v1506_v25 = vpack.c.bf16 %v8413_v44, %v8417_v40 }
 0x213   : > { %v7441_v0 = vpop.f32.mrf.mxu0 }
 0x214   : > { %8428 = vtanh.f32 %v1271_v60  ;;  %v8079_v0 = vld [vmem:[%s11908_s3 + $0xec] ss:$28 sps:$4 sm:$0xff]  }
 0x215   : > { %v9253_v9 = vpop.eup %8420  ;;  %v1273_v46 = vpop.f32.mrf.mxu0  ;;  %6949 = vmatpush3.bf16.msra.mxu1 %v1499_v21 }
 0x216   : > { %v1274_v10 = vadd.f32 %v9242_v18, %v1273_v46  ;;  %6950 = vmatprep.subr.bf16.mxu1 %v1506_v25  ;;  %v1512_v42 = vpack.c.bf16 %v9253_v9, %v9251_v19  ;;  %v8423_v5 = vpop.eup %8422  ;;  %v8108_v19 = vld [vmem:[%s11908_s3 + $0x4c] ss:$28 sps:$4 sm:$0xff]  }
 0x217   : > { %v7442_v48 = vpop.f32.mrf.mxu0  ;;  %v1505_v62 = vpack.c.bf16 %v8415_v54, %v8423_v5  ;;  %v8078_v54 = vld [vmem:[%s11908_s3 + $0xb0] ss:$28 sps:$4 sm:$0xff]  }
 0x218   : > { %8430 = vtanh.f32 %v1274_v10 }
 0x219   : > { %v1278_v4 = vpop.f32.mrf.mxu0  ;;  %6951 = vmatpush3.bf16.msra.mxu1 %v1498_v17  ;;  %v9265_v21 = vpop.eup %8424 }
 0x21a   : > { %6952 = vmatprep.subr.bf16.mxu1 %v1505_v62  ;;  %v1279_v57 = vadd.f32 %v9242_v18, %v1278_v4 }
 0x21b   : > { %v7445_v6 = vpop.f32.mrf.mxu0 }
 0x21c   : > { %8432 = vtanh.f32 %v1279_v57  ;;  %v8081_v57 = vld [vmem:[%s11908_s3 + $0xe8] ss:$28 sps:$4 sm:$0xff]  }
 0x21d   : > { %v9267_v22 = vpop.eup %8426  ;;  %v1281_v53 = vpop.f32.mrf.mxu0  ;;  %6953 = vmatpush3.bf16.msra.mxu1 %v1497_v20 }
 0x21e   : > { %v1282_v26 = vadd.f32 %v9242_v18, %v1281_v53  ;;  %6954 = vmatprep.subr.bf16.mxu1 %v1504_v3  ;;  %v1513_v14 = vpack.c.bf16 %v9267_v22, %v9265_v21  ;;  %v8105_v22 = vld [vmem:[%s11908_s3 + $0x10] ss:$28 sps:$4 sm:$0xff]  }
 0x21f   : > { %v7446_v28 = vpop.f32.mrf.mxu0 }
 0x220   : > { %8434 = vtanh.f32 %v1282_v26  ;;  %v8082_v26 = vld [vmem:[%s11908_s3 + $0x124] ss:$28 sps:$4 sm:$0xff]  }
 0x221   : > { %v1286_v17 = vpop.f32.mrf.mxu0  ;;  %6955 = vmatpush3.bf16.msra.mxu1 %v1496_v45  ;;  %v9285_v20 = vpop.eup %8428 }
 0x222   : > { %6956 = vmatprep.subr.bf16.mxu1 %v1503_v2  ;;  %v1287_v35 = vadd.f32 %v9242_v18, %v1286_v17 }
 0x223   : > { %v7449_v61 = vpop.f32.mrf.mxu0 }
 0x224   : > { %8436 = vtanh.f32 %v1287_v35 }
 0x225   : > { %v9290_v23 = vpop.eup %8430  ;;  %v1289_v3 = vpop.f32.mrf.mxu0  ;;  %6957 = vmatpush3.bf16.msra.mxu1 %v1495_v11 }
 0x226   : > { %v1290_v55 = vadd.f32 %v9242_v18, %v1289_v3  ;;  %v1514_v45 = vpack.c.bf16 %v9290_v23, %v9285_v20 }
 0x227   : > { %v7450_v16 = vpop.f32.mrf.mxu0 }
 0x228   : > { %8438 = vtanh.f32 %v1290_v55  ;;  %2281 = vmatmul.mubr.bf16.vlgmr.msra.gmra.mxu1 %v8067_v15 }
 0x229   : > { %v1294_v33 = vpop.f32.mrf.mxu0  ;;  %2288 = vmatprep.mubr.bf16.mxu1 %v8070_v49  ;;  %v9302_v32 = vpop.eup %8432  ;;  %v8084_v49 = vld [vmem:[%s11908_s3 + $0x120] ss:$28 sps:$4 sm:$0xff]  }
 0x22a   : > { %v1295_v2 = vadd.f32 %v9242_v18, %v1294_v33  ;;  %v8085_v33 = vld [vmem:[%s11908_s3 + $0x15c] ss:$28 sps:$4 sm:$0xff]  }
 0x22b   : > { %v7453_v52 = vpop.f32.mrf.mxu0 }
 0x22c   : > { %8440 = vtanh.f32 %v1295_v2 }
 0x22d   : > { %v9307_v11 = vpop.eup %8434  ;;  %v1297_v7 = vpop.f32.mrf.mxu0 }
 0x22e   : > { %v1298_v12 = vadd.f32 %v9242_v18, %v1297_v7  ;;  %v1515_v13 = vpack.c.bf16 %v9307_v11, %v9302_v32 }
 0x22f   : > { %v7454_v36 = vpop.f32.mrf.mxu0 }
 0x230   : > { %8442 = vtanh.f32 %v1298_v12  ;;  %2289 = vmatmul.mubr.bf16.gmra.mxu1 %v8072_v38  ;;  %v8087_v12 = vld [vmem:[%s11908_s3 + $0x158] ss:$28 sps:$4 sm:$0xff]  }
 0x231   : > { %v1302_v43 = vpop.f32.mrf.mxu0  ;;  %2296 = vmatprep.mubr.bf16.mxu1 %v8073_v8  ;;  %v9316_v51 = vpop.eup %8436 }
 0x232   : > { %v1303_v47 = vadd.f32 %v9242_v18, %v1302_v43 }
 0x233   : > { %v7457_v39 = vpop.f32.mrf.mxu0 }
 0x234   : > { %8444 = vtanh.f32 %v1303_v47  ;;  %v8088_v47 = vld [vmem:[%s11908_s3 + $0x194] ss:$28 sps:$4 sm:$0xff]  }
 0x235   : > { %v9321_v59 = vpop.eup %8438  ;;  %v1305_v37 = vpop.f32.mrf.mxu0 }
 0x236   : > { %v1306_v31 = vadd.f32 %v9242_v18, %v1305_v37  ;;  %v1516_v24 = vpack.c.bf16 %v9321_v59, %v9316_v51  ;;  %v8126_v37 = vld [vmem:[%s11910_s5 + $0x78] sm:$0xff]  }
 0x237   : > { %v7458_v27 = vpop.f32.mrf.mxu0  ;;  %7550 = vmatpush3.bf16.msra.mxu0 %v8126_v37 }
 0x238   : > { %8446 = vtanh.f32 %v1306_v31  ;;  %2297 = vmatmul.mubr.bf16.gmra.mxu1 %v8075_v63  ;;  %7551 = vmatprep.subr.bf16.mxu0 %v11925_v1  ;;  %v8090_v27 = vld [vmem:[%s11908_s3 + $0x190] ss:$28 sps:$4 sm:$0xff]  }
 0x239   : > { %v1310_v50 = vpop.f32.mrf.mxu0  ;;  %2304 = vmatprep.mubr.bf16.mxu1 %v8076_v58  ;;  %v9330_v30 = vpop.eup %8440 }
 0x23a   : > { %v1311_v29 = vadd.f32 %v9242_v18, %v1310_v50 }
 0x23b   : > { %v7461_v44 = vpop.f32.mrf.mxu0 }
 0x23c   : > { %8448 = vtanh.f32 %v1311_v29  ;;  %v8091_v29 = vld [vmem:[%s11908_s3 + $0x1cc] ss:$28 sps:$4 sm:$0xff]  }
 0x23d   : > { %v9335_v40 = vpop.eup %8442  ;;  %v1313_v60 = vpop.f32.mrf.mxu0 }
 0x23e   : > { %v1314_v25 = vadd.f32 %v9242_v18, %v1313_v60  ;;  %v1517_v46 = vpack.c.bf16 %v9335_v40, %v9330_v30 }
 0x23f   : > { %v7462_v10 = vpop.f32.mrf.mxu0 }
 0x240   : > { %8450 = vtanh.f32 %v1314_v25  ;;  %2305 = vmatmul.mubr.bf16.gmra.mxu1 %v8078_v54  ;;  %v8094_v10 = vld [vmem:[%s11908_s3 + $0x204] ss:$28 sps:$4 sm:$0xff]  }
 0x241   : > { %v1318_v5 = vpop.f32.mrf.mxu0  ;;  %2312 = vmatprep.mubr.bf16.mxu1 %v8079_v0  ;;  %v9344_v4 = vpop.eup %8444  ;;  %v8093_v0 = vld [vmem:[%s11908_s3 + $0x1c8] ss:$28 sps:$4 sm:$0xff]  }
 0x242   : > { %v1319_v48 = vadd.f32 %v9242_v18, %v1318_v5 }
 0x243   : > { %v7465_v62 = vpop.f32.mrf.mxu0 }
 0x244   : > { %8452 = vtanh.f32 %v1319_v48 }
 0x245   : > { %v9349_v6 = vpop.eup %8446  ;;  %v1321_v53 = vpop.f32.mrf.mxu0 }
 0x246   : > { %v1322_v28 = vadd.f32 %v9242_v18, %v1321_v53  ;;  %v1518_v17 = vpack.c.bf16 %v9349_v6, %v9344_v4 }
 0x247   : > { %v7466_v35 = vpop.f32.mrf.mxu0 }
 0x248   : > { %8454 = vtanh.f32 %v1322_v28  ;;  %2313 = vmatmul.mubr.bf16.gmra.mxu1 %v8081_v57  ;;  %v8096_v28 = vld [vmem:[%s11908_s3 + $0x200] ss:$28 sps:$4 sm:$0xff]  }
 0x249   : > { %v9357_v61 = vpop.f32.mrf.mxu0  ;;  %2320 = vmatprep.mubr.bf16.mxu1 %v8082_v26  ;;  %v9359_v3 = vpop.eup %8448 }
 0x24b   : > { %v7469_v15 = vpop.f32.mrf.mxu0 }
 0x24d   : > { %v9364_v55 = vpop.eup %8450  ;;  %v9366_v16 = vpop.f32.mrf.mxu0 }
 0x24e   : > { %v1519_v2 = vpack.c.bf16 %v9364_v55, %v9359_v3 }
 0x24f   : > { %v7470_v52 = vpop.f32.mrf.mxu0 }
 0x250   : > { %2321 = vmatmul.mubr.bf16.gmra.mxu1 %v8084_v49  ;;  %v8097_v49 = vld [vmem:[%s11908_s3 + $0x23c] ss:$28 sps:$4 sm:$0xff]  }
 0x251   : > { %v9373_v38 = vpop.f32.mrf.mxu0  ;;  %2328 = vmatprep.mubr.bf16.mxu1 %v8085_v33  ;;  %v9375_v8 = vpop.eup %8452 }
 0x253   : > { %v7473_v7 = vpop.f32.mrf.mxu0 }
 0x255   : > { %v9380_v36 = vpop.eup %8454  ;;  %v9382_v43 = vpop.f32.mrf.mxu0 }
 0x256   : > { %v1520_v39 = vpack.c.bf16 %v9380_v36, %v9375_v8 }
 0x257   : > { %v7474_v63 = vpop.f32.mrf.mxu0 }
 0x258   : > { %2329 = vmatmul.mubr.bf16.gmra.mxu1 %v8087_v12 }
 0x259   : > { %v9392_v58 = vpop.f32.mrf.mxu0  ;;  %2336 = vmatprep.mubr.bf16.mxu1 %v8088_v47 }
 0x25b   : > { %v7477_v31 = vpop.f32.mrf.mxu0 }
 0x25d   : > { %v1345_v50 = vpop.f32.mrf.mxu0 }
 0x25f   : > { %v7478_v44 = vpop.f32.mrf.mxu0 }
 0x260   : > { %2337 = vmatmul.mubr.bf16.gmra.mxu1 %v8090_v27 }
 0x261   : > { %v1350_v54 = vpop.f32.mrf.mxu0  ;;  %2344 = vmatprep.mubr.bf16.mxu1 %v8091_v29  ;;  %v8099_v29 = vld [vmem:[%s11908_s3 + $0x238] ss:$28 sps:$4 sm:$0xff]  }
 0x263   : > { %v7481_v60 = vpop.f32.mrf.mxu0 }
 0x265   : > { %v1353_v25 = vpop.f32.mrf.mxu0 }
 0x267   : > { %v7482_v5 = vpop.f32.mrf.mxu0 }
 0x268   : > { %2345 = vmatmul.mubr.bf16.gmra.mxu1 %v8093_v0  ;;  %v6864_v48 = vpop.f32.mrf.mxu1  ;;  %v8100_v0 = vld [vmem:[%s11908_s3 + $0x274] ss:$28 sps:$4 sm:$0xff]  }
 0x269   : > { %v1358_v62 = vpop.f32.mrf.mxu0  ;;  %2352 = vmatprep.mubr.bf16.mxu1 %v8094_v10 }
 0x26a   : > { %v6865_v57 = vpop.f32.mrf.mxu1  ;;  %v1359_v10 = vadd.f32 %v9242_v18, %v1358_v62  ;;  %v1625_v62 = vld [vmem:[%s11908_s3 + $0x2a8] sm:$0x33] }
 0x26b   : > { %v7485_v53 = vpop.f32.mrf.mxu0  ;;  %v9407_v26 = vadd.f32 %v6865_v57, %v6864_v48 }
 0x26c   : > { %v9412_v35 = vpop.f32.mrf.mxu1  ;;  %v1354_v53 = vadd.f32 %v9242_v18, %v1353_v25  ;;  %v8102_v25 = vld [vmem:[%s11908_s3 + $0x270] ss:$28 sps:$4 sm:$0xff]  }
 0x26d   : > { %v1361_v15 = vpop.f32.mrf.mxu0 }
 0x26e   : > { %v9417_v33 = vpop.f32.mrf.mxu1  ;;  %v1362_v47 = vadd.f32 %v9242_v18, %v1361_v15 }
 0x26f   : > { %v7486_v52 = vpop.f32.mrf.mxu0 }
 0x270   : > { %2353 = vmatmul.mubr.bf16.gmra.mxu1 %v8096_v28  ;;  %v6870_v7 = vpop.f32.mrf.mxu1  ;;  %8456 = vtanh.f32 %v1362_v47  ;;  %v1346_v47 = vadd.f32 %v9242_v18, %v1345_v50 }
 0x271   : > { %v1366_v12 = vpop.f32.mrf.mxu0  ;;  %2360 = vmatprep.mubr.bf16.mxu1 %v8097_v49  ;;  %v1351_v49 = vadd.f32 %v9242_v18, %v1350_v54 }
 0x272   : > { %v6871_v63 = vpop.f32.mrf.mxu1  ;;  %v1367_v37 = vadd.f32 %v9242_v18, %v1366_v12 }
 0x273   : > { %v7489_v31 = vpop.f32.mrf.mxu0  ;;  %v9421_v27 = vadd.f32 %v6871_v63, %v6870_v7 }
 0x274   : > { %v9426_v44 = vpop.f32.mrf.mxu1  ;;  %8458 = vtanh.f32 %v1367_v37  ;;  %v6284_v37 = vcombine.high %v1625_v62, %v1625_v62  ;;  %v1343_v31 = vadd.f32 %v9242_v18, %v9392_v58 }
 0x275   : > { %v1369_v60 = vpop.f32.mrf.mxu0 }
 0x276   : > { %v1370_v5 = vadd.f32 %v9242_v18, %v1369_v60  ;;  %v9433_v48 = vpop.f32.mrf.mxu1 }
 0x277   : > { %v7490_v57 = vpop.f32.mrf.mxu0 }
 0x278   : > { %8460 = vtanh.f32 %v1370_v5  ;;  %2361 = vmatmul.mubr.bf16.gmra.mxu1 %v8099_v29  ;;  %v6876_v28 = vpop.f32.mrf.mxu1 }
 0x279   : > { %2368 = vmatprep.mubr.bf16.mxu1 %v8100_v0  ;;  %v9436_v15 = vpop.f32.mrf.mxu0  ;;  %8462 = vtanh.f32 %v1359_v10  ;;  %v1338_v0 = vadd.f32 %v9242_v18, %v9382_v43  ;;  %v1335_v10 = vadd.f32 %v9242_v18, %v9373_v38  ;;  %v1327_v38 = vadd.f32 %v9242_v18, %v9357_v61  ;;  %v8144_v61 = vld [vmem:[%s11910_s5 + $0x70] sm:$0xff]  }
 0x27a   : > { %v6877_v52 = vpop.f32.mrf.mxu1  ;;  %8464 = vtanh.f32 %v1354_v53  ;;  %7552 = vmatpush3.bf16.msra.mxu0 %v8144_v61 }
 0x27b   : > { %v9442_v7 = vadd.f32 %v6877_v52, %v6876_v28  ;;  %v7493_v12 = vpop.f32.mrf.mxu0  ;;  %8466 = vtanh.f32 %v1351_v49  ;;  %v1330_v28 = vadd.f32 %v9242_v18, %v9366_v16  ;;  %v6283_v49 = vcombine.low %v1625_v62, %v1625_v62  ;;  %7553 = vmatprep.subr.bf16.mxu0 %v11925_v1 }
 0x27c   : > { %v9448_v63 = vpop.f32.mrf.mxu1  ;;  %8468 = vtanh.f32 %v1346_v47  ;;  %v8107_v12 = vld [vmem:[%s11908_s3 + $0x14] ss:$28 sps:$4 sm:$0xff]  }
 0x27d   : > { %v1377_v54 = vpop.f32.mrf.mxu0  ;;  %8470 = vtanh.f32 %v1343_v31  ;;  %v8457_v57 = vpop.eup %8456 }
 0x27e   : > { %v9452_v29 = vpop.f32.mrf.mxu1  ;;  %8472 = vtanh.f32 %v1338_v0 }
 0x27f   : > { %v7494_v60 = vpop.f32.mrf.mxu0  ;;  %8474 = vtanh.f32 %v1335_v10 }
 0x280   : > { %2369 = vmatmul.mubr.bf16.gmra.mxu1 %v8102_v25  ;;  %v6882_v50 = vpop.f32.mrf.mxu1  ;;  %8476 = vtanh.f32 %v1330_v28  ;;  %v1375_v28 = vadd.f32 %v9242_v18, %v9436_v15 }
 0x281   : > { %2376 = vmatprep.mubr.bf16.mxu1 %v6284_v37  ;;  %v8459_v58 = vpop.eup %8458  ;;  %8478 = vtanh.f32 %v1327_v38 }
 0x282   : > { %v6883_v5 = vpop.f32.mrf.mxu1  ;;  %8480 = vtanh.f32 %v1375_v28 }
 0x283   : > { %v9458_v53 = vadd.f32 %v6883_v5, %v6882_v50 }
 0x284   : > { %v9462_v52 = vpop.f32.mrf.mxu1 }
 0x285   : > { %v8461_v43 = vpop.eup %8460 }
 0x286   : > { %v1526_v47 = vpack.c.bf16 %v8461_v43, %v8459_v58  ;;  %v9469_v25 = vpop.f32.mrf.mxu1  ;;  %v8463_v37 = vpop.eup %8462  ;;  %v1378_v43 = vadd.f32 %v9242_v18, %v1377_v54 }
 0x287   : > { %v1525_v16 = vpack.c.bf16 %v8457_v57, %v8463_v37  ;;  %v8465_v31 = vpop.eup %8464 }
 0x288   : > { %2377 = vmatmul.mubr.bf16.gmra.mxu1 %v6283_v49  ;;  %7036 = vmatprep.subr.bf16.mxu1 %v1526_v47  ;;  %v6888_v62 = vpop.f32.mrf.mxu1  ;;  %v8467_v0 = vpop.eup %8466  ;;  %8482 = vtanh.f32 %v1378_v43 }
 0x289   : > { %7037 = vmatpush3.bf16.msra.mxu1 %v1518_v17  ;;  %2416 = vmatprep.mubr.bf16.mxu1 %v8107_v12  ;;  %v1524_v10 = vpack.c.bf16 %v8465_v31, %v8467_v0  ;;  %v8469_v57 = vpop.eup %8468  ;;  %v8116_v31 = vld [vmem:[%s11908_s3 + $0xbc] ss:$28 sps:$4 sm:$0xff]  }
 0x28a   : > { %7038 = vmatprep.subr.bf16.mxu1 %v1525_v16  ;;  %v6889_v60 = vpop.f32.mrf.mxu1  ;;  %v8471_v6 = vpop.eup %8470  ;;  %v8111_v16 = vld [vmem:[%s11908_s3 + $0x80] ss:$28 sps:$4 sm:$0xff]  }
 0x28b   : > { %v9477_v50 = vadd.f32 %v6889_v60, %v6888_v62  ;;  %v1523_v17 = vpack.c.bf16 %v8469_v57, %v8471_v6  ;;  %v8473_v49 = vpop.eup %8472  ;;  %v8114_v57 = vld [vmem:[%s11908_s3 + $0xb8] ss:$28 sps:$4 sm:$0xff]  }
 0x28c   : > { %v9479_v5 = vpop.f32.mrf.mxu1  ;;  %v8475_v30 = vpop.eup %8474 }
 0x28d   : > { %7039 = vmatpush3.bf16.msra.mxu1 %v1517_v46  ;;  %v1522_v46 = vpack.c.bf16 %v8473_v49, %v8475_v30  ;;  %v8477_v47 = vpop.eup %8476  ;;  %v8117_v30 = vld [vmem:[%s11908_s3 + $0xf0] ss:$28 sps:$4 sm:$0xff]  }
 0x28e   : > { %7040 = vmatprep.subr.bf16.mxu1 %v1524_v10  ;;  %v9485_v4 = vpop.f32.mrf.mxu1  ;;  %v8479_v59 = vpop.eup %8478 }
 0x28f   : > { %v1521_v18 = vpack.c.bf16 %v8477_v47, %v8479_v59  ;;  %v8122_v47 = vld [vmem:[%s11908_s3 + $0x12c] ss:$28 sps:$4 sm:$0xff]  }
 0x290   : > { %v6894_v58 = vpop.f32.mrf.mxu1 }
 0x291   : > { %7041 = vmatpush3.bf16.msra.mxu1 %v1516_v24 }
 0x292   : > { %7042 = vmatprep.subr.bf16.mxu1 %v1523_v17  ;;  %v6895_v12 = vpop.f32.mrf.mxu1  ;;  %v8119_v17 = vld [vmem:[%s11908_s3 + $0xf4] ss:$28 sps:$4 sm:$0xff]  }
 0x293   : > { %v9493_v40 = vadd.f32 %v6895_v12, %v6894_v58  ;;  %v8151_v58 = vld [vmem:[%s11910_s5 + $0x68] sm:$0xff]  }
 0x294   : > { %v9495_v38 = vpop.f32.mrf.mxu1  ;;  %7554 = vmatpush3.bf16.msra.mxu0 %v8151_v58  ;;  %v6869_v58 = vadd.f32 %v9417_v33, %v9412_v35  ;;  %v8141_v35 = vld [vmem:[%s11908_s3 + $0x27c] ss:$28 sps:$4 sm:$0xff]  }
 0x295   : > { %7043 = vmatpush3.bf16.msra.mxu1 %v1515_v13  ;;  %v8481_v13 = vpop.eup %8480  ;;  %7555 = vmatprep.subr.bf16.mxu0 %v11925_v1 }
 0x296   : > { %7044 = vmatprep.subr.bf16.mxu1 %v1522_v46  ;;  %v9500_v51 = vpop.f32.mrf.mxu1  ;;  %v8483_v20 = vpop.eup %8482 }
 0x297   : > { %v1527_v9 = vpack.c.bf16 %v8483_v20, %v8481_v13  ;;  %v8125_v20 = vld [vmem:[%s11908_s3 + $0x164] ss:$28 sps:$4 sm:$0xff]  }
 0x298   : > { %v6900_v24 = vpop.f32.mrf.mxu1 }
 0x299   : > { %7045 = vmatpush3.bf16.msra.mxu1 %v1514_v45 }
 0x29a   : > { %7046 = vmatprep.subr.bf16.mxu1 %v1521_v18  ;;  %v6901_v15 = vpop.f32.mrf.mxu1 }
 0x29b   : > { %v9505_v54 = vadd.f32 %v6901_v15, %v6900_v24 }
 0x29c   : > { %v9507_v37 = vpop.f32.mrf.mxu1 }
 0x29d   : > { %7047 = vmatpush3.bf16.msra.mxu1 %v1513_v14 }
 0x29e   : > { %7048 = vmatprep.subr.bf16.mxu1 %v1520_v39  ;;  %v9515_v32 = vpop.f32.mrf.mxu1 }
 0x2a0   : > { %v6906_v11 = vpop.f32.mrf.mxu1 }
 0x2a1   : > { %7049 = vmatpush3.bf16.msra.mxu1 %v1512_v42 }
 0x2a2   : > { %7050 = vmatprep.subr.bf16.mxu1 %v1519_v2  ;;  %v6907_v23 = vpop.f32.mrf.mxu1 }
 0x2a3   : > { %v9523_v21 = vadd.f32 %v6907_v23, %v6906_v11  ;;  %v8120_v11 = vld [vmem:[%s11908_s3 + $0x128] ss:$28 sps:$4 sm:$0xff]  }
 0x2a4   : > { %v9528_v14 = vpop.f32.mrf.mxu1 }
 0x2a5   : > { %7051 = vmatpush3.bf16.msra.mxu1 %v1511_v34  ;;  %v8113_v34 = vld [vmem:[%s11908_s3 + $0x84] ss:$28 sps:$4 sm:$0xff]  }
 0x2a6   : > { %v9536_v42 = vpop.f32.mrf.mxu1  ;;  %7495 = vmatprep.subr.bf16.mxu1 %v11925_v1 }
 0x2a8   : > { %2417 = vmatmul.mubr.bf16.vlgmr.msra.gmra.mxu1 %v8105_v22  ;;  %v6912_v45 = vpop.f32.mrf.mxu1  ;;  %v8123_v22 = vld [vmem:[%s11908_s3 + $0x160] ss:$28 sps:$4 sm:$0xff]  }
 0x2a9   : > { %2424 = vmatprep.mubr.bf16.mxu1 %v8108_v19  ;;  %7496 = vmatpush3.bf16.msra.mxu1 %v1527_v9  ;;  %v8129_v19 = vld [vmem:[%s11908_s3 + $0x19c] ss:$28 sps:$4 sm:$0xff]  }
 0x2aa   : > { %v6913_v3 = vpop.f32.mrf.mxu1  ;;  %7601 = vmatprep.subr.bf16.mxu1 %v11925_v1  ;;  %v8127_v9 = vld [vmem:[%s11908_s3 + $0x198] ss:$28 sps:$4 sm:$0xff]  }
 0x2ab   : > { %v9540_v55 = vadd.f32 %v6913_v3, %v6912_v45  ;;  %v8132_v45 = vld [vmem:[%s11908_s3 + $0x1d4] ss:$28 sps:$4 sm:$0xff]  }
 0x2ac   : > { %v9545_v56 = vpop.f32.mrf.mxu1  ;;  %v8130_v3 = vld [vmem:[%s11908_s3 + $0x1d0] ss:$28 sps:$4 sm:$0xff]  }
 0x2ae   : > { %v9550_v2 = vpop.f32.mrf.mxu1 }
 0x2b0   : > { %2425 = vmatmul.mubr.bf16.gmra.mxu1 %v8110_v41  ;;  %v6918_v8 = vpop.f32.mrf.mxu1  ;;  %v8135_v41 = vld [vmem:[%s11908_s3 + $0x20c] ss:$28 sps:$4 sm:$0xff]  }
 0x2b1   : > { %2432 = vmatprep.mubr.bf16.mxu1 %v8113_v34 }
 0x2b2   : > { %v6919_v36 = vpop.f32.mrf.mxu1 }
 0x2b3   : > { %v9552_v39 = vadd.f32 %v6919_v36, %v6918_v8 }
 0x2b4   : > { %v9557_v62 = vpop.f32.mrf.mxu1 }
 0x2b6   : > { %v9562_v61 = vpop.f32.mrf.mxu1 }
 0x2b8   : > { %2433 = vmatmul.mubr.bf16.gmra.mxu1 %v8111_v16  ;;  %v6924_v60 = vpop.f32.mrf.mxu1  ;;  %v8158_v16 = vld [vmem:[%s11910_s5 + $0x60] sm:$0xff]  }
 0x2b9   : > { %2440 = vmatprep.mubr.bf16.mxu1 %v8116_v31  ;;  %7556 = vmatpush3.bf16.msra.mxu0 %v8158_v16 }
 0x2ba   : > { %v6925_v0 = vpop.f32.mrf.mxu1  ;;  %7557 = vmatprep.subr.bf16.mxu0 %v11925_v1 }
 0x2bb   : > { %v9564_v10 = vadd.f32 %v6925_v0, %v6924_v60  ;;  %v8133_v60 = vld [vmem:[%s11908_s3 + $0x208] ss:$28 sps:$4 sm:$0xff]  }
 0x2bc   : > { %v9569_v6 = vpop.f32.mrf.mxu1 }
 0x2be   : > { %v9577_v28 = vpop.f32.mrf.mxu1 }
 0x2c0   : > { %2441 = vmatmul.mubr.bf16.gmra.mxu1 %v8114_v57  ;;  %v6930_v49 = vpop.f32.mrf.mxu1  ;;  %v8138_v57 = vld [vmem:[%s11908_s3 + $0x244] ss:$28 sps:$4 sm:$0xff]  }
 0x2c1   : > { %2448 = vmatprep.mubr.bf16.mxu1 %v8119_v17 }
 0x2c2   : > { %v6931_v43 = vpop.f32.mrf.mxu1 }
 0x2c3   : > { %v9580_v12 = vadd.f32 %v6931_v43, %v6930_v49 }
 0x2c4   : > { %v9585_v46 = vpop.f32.mrf.mxu1 }
 0x2c6   : > { %v9590_v59 = vpop.f32.mrf.mxu1 }
 0x2c8   : > { %2449 = vmatmul.mubr.bf16.gmra.mxu1 %v8117_v30  ;;  %v6936_v18 = vpop.f32.mrf.mxu1 }
 0x2c9   : > { %2456 = vmatprep.mubr.bf16.mxu1 %v8122_v47 }
 0x2ca   : > { %v6937_v24 = vpop.f32.mrf.mxu1 }
 0x2cb   : > { %v9592_v15 = vadd.f32 %v6937_v24, %v6936_v18  ;;  %v8136_v24 = vld [vmem:[%s11908_s3 + $0x240] ss:$28 sps:$4 sm:$0xff]  }
 0x2cc   : > { %v6939_v13 = vpop.f32.mrf.mxu1 }
 0x2cd   : > { %v6875_v13 = vadd.f32 %v9433_v48, %v9426_v44 }
 0x2ce   : > { %v6940_v23 = vpop.f32.mrf.mxu1 }
 0x2d0   : > { %2457 = vmatmul.mubr.bf16.gmra.mxu1 %v8120_v11 }
 0x2d1   : > { %2464 = vmatprep.mubr.bf16.mxu1 %v8125_v20 }
 0x2d8   : > { %2465 = vmatmul.mubr.bf16.gmra.mxu1 %v8123_v22 }
 0x2d9   : > { %2472 = vmatprep.mubr.bf16.mxu1 %v8129_v19 }
 0x2e0   : > { %2473 = vmatmul.mubr.bf16.gmra.mxu1 %v8127_v9 }
 0x2e1   : > { %2480 = vmatprep.mubr.bf16.mxu1 %v8132_v45 }
 0x2e8   : > { %v6958_v34 = vpop.f32.mrf.mxu1  ;;  %2481 = vmatmul.mubr.bf16.gmra.mxu1 %v8130_v3  ;;  %v8139_v3 = vld [vmem:[%s11908_s3 + $0x278] ss:$28 sps:$4 sm:$0xff]  }
 0x2e9   : > { %2488 = vmatprep.mubr.bf16.mxu1 %v8135_v41 }
 0x2ea   : > { %v6959_v8 = vpop.f32.mrf.mxu1 }
 0x2eb   : > { %v6960_v36 = vadd.f32 %v6959_v8, %v6958_v34  ;;  %v6881_v34 = vadd.f32 %v9452_v29, %v9448_v63 }
 0x2ec   : > { %v6961_v31 = vpop.f32.mrf.mxu1 }
 0x2ed   : > { %v9625_v0 = vadd.f32 %v6960_v36, %v9407_v26 }
 0x2ee   : > { %v6962_v17 = vpop.f32.mrf.mxu1 }
 0x2ef   : > { %v6963_v49 = vadd.f32 %v6962_v17, %v6961_v31 }
 0x2f0   : > { %v6964_v43 = vpop.f32.mrf.mxu1  ;;  %2489 = vmatmul.mubr.bf16.gmra.mxu1 %v8133_v60 }
 0x2f1   : > { %v9633_v30 = vadd.f32 %v6963_v49, %v6869_v58  ;;  %2496 = vmatprep.mubr.bf16.mxu1 %v8138_v57  ;;  %v6887_v49 = vadd.f32 %v9469_v25, %v9462_v52  ;;  %v6893_v25 = vadd.f32 %v9485_v4, %v9479_v5  ;;  %v6899_v4 = vadd.f32 %v9500_v51, %v9495_v38  ;;  %v8160_v38 = vld [vmem:[%s11910_s5 + $0x58] sm:$0xff]  }
 0x2f2   : > { %v6965_v47 = vpop.f32.mrf.mxu1  ;;  %7558 = vmatpush3.bf16.msra.mxu0 %v8160_v38 }
 0x2f3   : > { %v6966_v26 = vadd.f32 %v6965_v47, %v6964_v43  ;;  %7559 = vmatprep.subr.bf16.mxu0 %v11925_v1 }
 0x2f4   : > { %v6967_v18 = vpop.f32.mrf.mxu1 }
 0x2f5   : > { %v9639_v11 = vadd.f32 %v6966_v26, %v9421_v27  ;;  %v1626_v27 = vld [vmem:[%s11908_s3 + $0x2b0] sm:$0x33] }
 0x2f6   : > { %v6968_v33 = vpop.f32.mrf.mxu1  ;;  %v6286_v44 = vcombine.high %v1626_v27, %v1626_v27  ;;  %v6285_v17 = vcombine.low %v1626_v27, %v1626_v27 }
 0x2f7   : > { %v6969_v20 = vadd.f32 %v6968_v33, %v6967_v18 }
 0x2f8   : > { %v6970_v23 = vpop.f32.mrf.mxu1  ;;  %2497 = vmatmul.mubr.bf16.gmra.mxu1 %v8136_v24 }
 0x2f9   : > { %v9646_v22 = vadd.f32 %v6969_v20, %v6875_v13  ;;  %2504 = vmatprep.mubr.bf16.mxu1 %v8141_v35 }
 0x2fa   : > { %v6971_v19 = vpop.f32.mrf.mxu1 }
 0x2fb   : > { %v6972_v9 = vadd.f32 %v6971_v19, %v6970_v23 }
 0x2fc   : > { %v6973_v45 = vpop.f32.mrf.mxu1 }
 0x2fd   : > { %v9655_v41 = vadd.f32 %v6972_v9, %v9442_v7 }
 0x2fe   : > { %v6974_v48 = vpop.f32.mrf.mxu1 }
 0x2ff   : > { %v6975_v8 = vadd.f32 %v6974_v48, %v6973_v45 }
 0x300   : > { %v6976_v36 = vpop.f32.mrf.mxu1  ;;  %2505 = vmatmul.mubr.bf16.gmra.mxu1 %v8139_v3 }
 0x301   : > { %v9659_v16 = vadd.f32 %v6975_v8, %v6881_v34  ;;  %2512 = vmatprep.mubr.bf16.mxu1 %v6286_v44 }
 0x302   : > { %v6977_v31 = vpop.f32.mrf.mxu1 }
 0x303   : > { %v6978_v60 = vadd.f32 %v6977_v31, %v6976_v36  ;;  %v6905_v36 = vadd.f32 %v9515_v32, %v9507_v37 }
 0x304   : > { %v6979_v57 = vpop.f32.mrf.mxu1 }
 0x305   : > { %v9662_v58 = vadd.f32 %v6978_v60, %v9458_v53  ;;  %v8145_v53 = vld [vmem:[%s11908_s3 + $0x18] ss:$28 sps:$4 sm:$0xff]  }
 0x306   : > { %v6980_v7 = vpop.f32.mrf.mxu1 }
 0x307   : > { %v6981_v43 = vadd.f32 %v6980_v7, %v6979_v57 }
 0x308   : > { %v6982_v47 = vpop.f32.mrf.mxu1  ;;  %2513 = vmatmul.mubr.bf16.gmra.mxu1 %v6285_v17 }
 0x309   : > { %v9666_v63 = vadd.f32 %v6981_v43, %v6887_v49  ;;  %7497 = vmatprep.mubr.msk.bf16.mxu1 %vm8586_vm0, %v11925_v1  ;;  %v8148_v49 = vld [vmem:[%s11908_s3 + $0xc0] ss:$28 sps:$4 sm:$0xff]   ;;  %v6911_v43 = vadd.f32 %v9536_v42, %v9528_v14  ;;  %v6917_v42 = vadd.f32 %v9550_v2, %v9545_v56  ;;  %v6923_v2 = vadd.f32 %v9562_v61, %v9557_v62 }
 0x30a   : > { %v6983_v29 = vpop.f32.mrf.mxu1  ;;  %v6929_v61 = vadd.f32 %v9577_v28, %v9569_v6  ;;  %v6935_v28 = vadd.f32 %v9590_v59, %v9585_v46  ;;  %v8161_v46 = vld [vmem:[%s11910_s5 + $0x50] sm:$0xff]  }
 0x30b   : > { %v6984_v26 = vadd.f32 %v6983_v29, %v6982_v47  ;;  %7560 = vmatpush3.bf16.msra.mxu0 %v8161_v46 }
 0x30c   : > { %v6985_v18 = vpop.f32.mrf.mxu1  ;;  %7561 = vmatprep.subr.bf16.mxu0 %v11925_v1 }
 0x30d   : > { %v9674_v24 = vadd.f32 %v6984_v26, %v9477_v50  ;;  %v8146_v50 = vld [vmem:[%s11908_s3 + $0x50] ss:$28 sps:$4 sm:$0xff]  }
 0x30e   : > { %v6986_v52 = vpop.f32.mrf.mxu1 }
 0x30f   : > { %v6987_v35 = vadd.f32 %v6986_v52, %v6985_v18 }
 0x310   : > { %v6988_v33 = vpop.f32.mrf.mxu1  ;;  %7498 = vmatmul.mubr.msk.bf16.vlgmr.msra.gmra.mxu1 %vm2072_vm1, %v8145_v53 }
 0x311   : > { %v9679_v13 = vadd.f32 %v6987_v35, %v6893_v25  ;;  %7501 = vmatprep.mubr.msk.bf16.mxu1 %vm8586_vm0, %v11925_v1 }
 0x312   : > { %v6989_v20 = vpop.f32.mrf.mxu1 }
 0x313   : > { %v6990_v23 = vadd.f32 %v6989_v20, %v6988_v33 }
 0x314   : > { %v6991_v19 = vpop.f32.mrf.mxu1 }
 0x315   : > { %v9687_v27 = vadd.f32 %v6990_v23, %v9493_v40  ;;  %v8147_v40 = vld [vmem:[%s11908_s3 + $0x88] ss:$28 sps:$4 sm:$0xff]  }
 0x316   : > { %v6992_v5 = vpop.f32.mrf.mxu1 }
 0x317   : > { %v6993_v9 = vadd.f32 %v6992_v5, %v6991_v19 }
 0x318   : > { %v6994_v45 = vpop.f32.mrf.mxu1  ;;  %7502 = vmatmul.mubr.msk.bf16.gmra.mxu1 %vm2072_vm1, %v8146_v50 }
 0x319   : > { %v9692_v3 = vadd.f32 %v6993_v9, %v6899_v4  ;;  %7505 = vmatprep.mubr.msk.bf16.mxu1 %vm8586_vm0, %v11925_v1 }
 0x31a   : > { %v6995_v44 = vpop.f32.mrf.mxu1 }
 0x31b   : > { %v6996_v48 = vadd.f32 %v6995_v44, %v6994_v45 }
 0x31c   : > { %v6997_v34 = vpop.f32.mrf.mxu1 }
 0x31d   : > { %v9703_v51 = vadd.f32 %v6996_v48, %v9505_v54 }
 0x31e   : > { %v6998_v8 = vpop.f32.mrf.mxu1 }
 0x31f   : > { %v6999_v31 = vadd.f32 %v6998_v8, %v6997_v34 }
 0x320   : > { %v7000_v60 = vpop.f32.mrf.mxu1  ;;  %7506 = vmatmul.mubr.msk.bf16.gmra.mxu1 %vm2072_vm1, %v8147_v40 }
 0x321   : > { %v9709_v57 = vadd.f32 %v6999_v31, %v6905_v36  ;;  %7509 = vmatprep.mubr.msk.bf16.mxu1 %vm8586_vm0, %v11925_v1 }
 0x322   : > { %v7001_v17 = vpop.f32.mrf.mxu1 }
 0x323   : > { %v7002_v7 = vadd.f32 %v7001_v17, %v7000_v60 }
 0x324   : > { %v7003_v54 = vpop.f32.mrf.mxu1 }
 0x325   : > { %v9717_v37 = vadd.f32 %v7002_v7, %v9523_v21  ;;  %v8149_v21 = vld [vmem:[%s11908_s3 + $0xf8] ss:$28 sps:$4 sm:$0xff]  }
 0x326   : > { %v7004_v32 = vpop.f32.mrf.mxu1 }
 0x327   : > { %v7005_v47 = vadd.f32 %v7004_v32, %v7003_v54 }
 0x328   : > { %v7006_v29 = vpop.f32.mrf.mxu1  ;;  %7510 = vmatmul.mubr.msk.bf16.gmra.mxu1 %vm2072_vm1, %v8148_v49 }
 0x329   : > { %v9722_v26 = vadd.f32 %v7005_v47, %v6911_v43  ;;  %7513 = vmatprep.mubr.msk.bf16.mxu1 %vm8586_vm0, %v11925_v1 }
 0x32a   : > { %v7007_v18 = vpop.f32.mrf.mxu1 }
 0x32b   : > { %v7008_v53 = vadd.f32 %v7007_v18, %v7006_v29 }
 0x32c   : > { %v7009_v52 = vpop.f32.mrf.mxu1 }
 0x32d   : > { %v9730_v25 = vadd.f32 %v7008_v53, %v9540_v55  ;;  %v8150_v55 = vld [vmem:[%s11908_s3 + $0x130] ss:$28 sps:$4 sm:$0xff]  }
 0x32e   : > { %v7010_v14 = vpop.f32.mrf.mxu1  ;;  %v8155_v53 = vld [vmem:[%s11908_s3 + $0x210] ss:$28 sps:$4 sm:$0xff]  }
 0x32f   : > { %v7011_v35 = vadd.f32 %v7010_v14, %v7009_v52  ;;  %v8157_v52 = vld [vmem:[%s11908_s3 + $0x280] ss:$28 sps:$4 sm:$0xff]  }
 0x330   : > { %v7012_v33 = vpop.f32.mrf.mxu1  ;;  %7514 = vmatmul.mubr.msk.bf16.gmra.mxu1 %vm2072_vm1, %v8149_v21 }
 0x331   : > { %v9735_v20 = vadd.f32 %v7011_v35, %v6917_v42  ;;  %7517 = vmatprep.mubr.msk.bf16.mxu1 %vm8586_vm0, %v11925_v1 }
 0x332   : > { %v7013_v23 = vpop.f32.mrf.mxu1 }
 0x333   : > { %v7014_v19 = vadd.f32 %v7013_v23, %v7012_v33  ;;  %v8159_v33 = vld [vmem:[%s11908_s3 + $0x2b8] ss:$0 sps:$4 sm:$0x33]  }
 0x334   : > { %v7015_v50 = vpop.f32.mrf.mxu1 }
 0x335   : > { %v9743_v5 = vadd.f32 %v7014_v19, %v9552_v39  ;;  %v8152_v39 = vld [vmem:[%s11908_s3 + $0x168] ss:$28 sps:$4 sm:$0xff]  }
 0x336   : > { %v7016_v56 = vpop.f32.mrf.mxu1 }
 0x337   : > { %v7017_v4 = vadd.f32 %v7016_v56, %v7015_v50 }
 0x338   : > { %v7018_v9 = vpop.f32.mrf.mxu1  ;;  %7518 = vmatmul.mubr.msk.bf16.gmra.mxu1 %vm2072_vm1, %v8150_v55 }
 0x339   : > { %v9748_v45 = vadd.f32 %v7017_v4, %v6923_v2  ;;  %7521 = vmatprep.mubr.msk.bf16.mxu1 %vm8586_vm0, %v11925_v1 }
 0x33a   : > { %v7019_v44 = vpop.f32.mrf.mxu1 }
 0x33b   : > { %v7020_v48 = vadd.f32 %v7019_v44, %v7018_v9 }
 0x33c   : > { %v7021_v34 = vpop.f32.mrf.mxu1 }
 0x33d   : > { %v9756_v40 = vadd.f32 %v7020_v48, %v9564_v10  ;;  %v8153_v10 = vld [vmem:[%s11908_s3 + $0x1a0] ss:$28 sps:$4 sm:$0xff]  }
 0x33e   : > { %v7022_v62 = vpop.f32.mrf.mxu1 }
 0x33f   : > { %v7023_v38 = vadd.f32 %v7022_v62, %v7021_v34 }
 0x340   : > { %v7024_v8 = vpop.f32.mrf.mxu1  ;;  %7522 = vmatmul.mubr.msk.bf16.gmra.mxu1 %vm2072_vm1, %v8152_v39 }
 0x341   : > { %v9761_v36 = vadd.f32 %v7023_v38, %v6929_v61  ;;  %7525 = vmatprep.mubr.msk.bf16.mxu1 %vm8586_vm0, %v11925_v1 }
 0x342   : > { %v7025_v31 = vpop.f32.mrf.mxu1 }
 0x343   : > { %v7026_v60 = vadd.f32 %v7025_v31, %v7024_v8 }
 0x344   : > { %v7027_v17 = vpop.f32.mrf.mxu1 }
 0x345   : > { %v9769_v7 = vadd.f32 %v7026_v60, %v9580_v12  ;;  %v8154_v12 = vld [vmem:[%s11908_s3 + $0x1d8] ss:$28 sps:$4 sm:$0xff]  }
 0x346   : > { %v7028_v6 = vpop.f32.mrf.mxu1 }
 0x347   : > { %v7029_v54 = vadd.f32 %v7028_v6, %v7027_v17 }
 0x348   : > { %v7030_v49 = vpop.f32.mrf.mxu1  ;;  %7526 = vmatmul.mubr.msk.bf16.gmra.mxu1 %vm2072_vm1, %v8153_v10 }
 0x349   : > { %v9774_v32 = vadd.f32 %v7029_v54, %v6935_v28  ;;  %7529 = vmatprep.mubr.msk.bf16.mxu1 %vm8586_vm0, %v11925_v1 }
 0x34a   : > { %v7031_v43 = vpop.f32.mrf.mxu1 }
 0x34b   : > { %v7032_v47 = vadd.f32 %v7031_v43, %v7030_v49 }
 0x34c   : > { %v7033_v29 = vpop.f32.mrf.mxu1 }
 0x34d   : > { %v9785_v59 = vadd.f32 %v7032_v47, %v9592_v15  ;;  %v8156_v15 = vld [vmem:[%s11908_s3 + $0x248] ss:$28 sps:$4 sm:$0xff]  }
 0x34e   : > { %v7034_v18 = vpop.f32.mrf.mxu1  ;;  %v8164_v47 = vld [vmem:[%s11910_s5 + $0x28] sm:$0xff]  }
 0x350   : > { %7530 = vmatmul.mubr.msk.bf16.gmra.mxu1 %vm2072_vm1, %v8154_v12 }
 0x351   : > { %7533 = vmatprep.mubr.msk.bf16.mxu1 %vm8586_vm0, %v11925_v1 }
 0x358   : > { %7534 = vmatmul.mubr.msk.bf16.gmra.mxu1 %vm2072_vm1, %v8155_v53 }
 0x359   : > { %7537 = vmatprep.mubr.msk.bf16.mxu1 %vm8586_vm0, %v11925_v1 }
 0x360   : > { %7538 = vmatmul.mubr.msk.bf16.gmra.mxu1 %vm2072_vm1, %v8156_v15 }
 0x361   : > { %7541 = vmatprep.mubr.msk.bf16.mxu1 %vm8586_vm0, %v11925_v1 }
 0x368   : > { %v7052_v21 = vpop.f32.mrf.mxu1  ;;  %7542 = vmatmul.mubr.msk.bf16.gmra.mxu1 %vm2072_vm1, %v8157_v52 }
 0x369   : > { %7545 = vmatprep.mubr.msk.bf16.mxu1 %vm8586_vm0, %v11925_v1 }
 0x36a   : > { %v7053_v14 = vpop.f32.mrf.mxu1 }
 0x36b   : > { %v7054_v42 = vadd.f32 %v7053_v14, %v7052_v21 }
 0x36c   : > { %v7055_v35 = vpop.f32.mrf.mxu1 }
 0x36d   : > { %v9813_v23 = vadd.f32 %v7054_v42, %v9625_v0 }
 0x36e   : > { %v7056_v19 = vpop.f32.mrf.mxu1 }
 0x36f   : > { %v7057_v50 = vadd.f32 %v7056_v19, %v7055_v35  ;;  %v8166_v35 = vld [vmem:[%s11910_s5 + $0x18] sm:$0xff]  }
 0x370   : > { %v7058_v55 = vpop.f32.mrf.mxu1  ;;  %7546 = vmatmul.mubr.msk.bf16.gmra.mxu1 %vm2072_vm1, %v8159_v33  ;;  %vm4439_vm1 = vcmask 1045504  }
 0x371   : > { %v9817_v56 = vadd.f32 %v7057_v50, %v9633_v30  ;;  %7617 = vmatprep.mubr.msk.bf16.mxu1 %vm8586_vm0, %v11925_v1  ;;  %v8162_v30 = vld [vmem:[%s11910_s5 + $0x38] sm:$0xff]  }
 0x372   : > { %v7059_v2 = vpop.f32.mrf.mxu1  ;;  %7602 = vmatpush3.bf16.msra.mxu1 %v8162_v30 }
 0x373   : > { %v7060_v4 = vadd.f32 %v7059_v2, %v7058_v55  ;;  %7603 = vmatprep.subr.bf16.mxu1 %v11925_v1 }
 0x374   : > { %v7061_v9 = vpop.f32.mrf.mxu1 }
 0x375   : > { %v9822_v44 = vadd.f32 %v7060_v4, %v9639_v11 }
 0x376   : > { %v7062_v48 = vpop.f32.mrf.mxu1 }
 0x377   : > { %v7063_v0 = vadd.f32 %v7062_v48, %v7061_v9 }
 0x378   : > { %v7064_v34 = vpop.f32.mrf.mxu1 }
 0x379   : > { %v9825_v39 = vadd.f32 %v7063_v0, %v9646_v22  ;;  %v8163_v22 = vld [vmem:[%s11910_s5 + $0x30] sm:$0xff]  }
 0x37a   : > { %v7065_v62 = vpop.f32.mrf.mxu1  ;;  %7604 = vmatpush3.bf16.msra.mxu1 %v8163_v22 }
 0x37b   : > { %v7066_v61 = vadd.f32 %v7065_v62, %v7064_v34  ;;  %7605 = vmatprep.subr.bf16.mxu1 %v11925_v1  ;;  %v8168_v62 = vld [vmem:[%s11910_s5 + $0x8] sm:$0xff]  }
 0x37c   : > { %v7067_v38 = vpop.f32.mrf.mxu1 }
 0x37d   : > { %v9831_v8 = vadd.f32 %v7066_v61, %v9655_v41 }
 0x37e   : > { %v7068_v31 = vpop.f32.mrf.mxu1  ;;  %7606 = vmatpush3.bf16.msra.mxu1 %v8164_v47 }
 0x37f   : > { %v7069_v11 = vadd.f32 %v7068_v31, %v7067_v38  ;;  %7607 = vmatprep.subr.bf16.mxu1 %v11925_v1 }
 0x380   : > { %v7070_v60 = vpop.f32.mrf.mxu1 }
 0x381   : > { %v9838_v17 = vadd.f32 %v7069_v11, %v9659_v16 }
 0x382   : > { %v7071_v10 = vpop.f32.mrf.mxu1 }
 0x383   : > { %v7072_v6 = vadd.f32 %v7071_v10, %v7070_v60 }
 0x384   : > { %v7073_v41 = vpop.f32.mrf.mxu1 }
 0x385   : > { %v9842_v28 = vadd.f32 %v7072_v6, %v9662_v58  ;;  %v8165_v58 = vld [vmem:[%s11910_s5 + $0x20] sm:$0xff]  }
 0x386   : > { %v7074_v54 = vpop.f32.mrf.mxu1  ;;  %7608 = vmatpush3.bf16.msra.mxu1 %v8165_v58 }
 0x387   : > { %v7075_v49 = vadd.f32 %v7074_v54, %v7073_v41  ;;  %7609 = vmatprep.subr.bf16.mxu1 %v11925_v1 }
 0x388   : > { %v7076_v43 = vpop.f32.mrf.mxu1 }
 0x389   : > { %v9848_v12 = vadd.f32 %v7075_v49, %v9666_v63 }
 0x38a   : > { %v7077_v16 = vpop.f32.mrf.mxu1  ;;  %7610 = vmatpush3.bf16.msra.mxu1 %v8166_v35 }
 0x38b   : > { %v7078_v29 = vadd.f32 %v7077_v16, %v7076_v43  ;;  %7611 = vmatprep.subr.bf16.mxu1 %v11925_v1 }
 0x38c   : > { %v7079_v46 = vpop.f32.mrf.mxu1 }
 0x38d   : > { %v9855_v18 = vadd.f32 %v7078_v29, %v9674_v24 }
 0x38e   : > { %v7080_v53 = vpop.f32.mrf.mxu1 }
 0x38f   : > { %v7081_v15 = vadd.f32 %v7080_v53, %v7079_v46 }
 0x390   : > { %v7082_v63 = vpop.f32.mrf.mxu1 }
 0x391   : > { %v9859_v52 = vadd.f32 %v7081_v15, %v9679_v13  ;;  %v8167_v13 = vld [vmem:[%s11910_s5 + $0x10] sm:$0xff]  }
 0x392   : > { %v7083_v21 = vpop.f32.mrf.mxu1  ;;  %7612 = vmatpush3.bf16.msra.mxu1 %v8167_v13 }
 0x393   : > { %v7084_v14 = vadd.f32 %v7083_v21, %v7082_v63  ;;  %7613 = vmatprep.subr.bf16.mxu1 %v11925_v1 }
 0x394   : > { %v7085_v42 = vpop.f32.mrf.mxu1 }
 0x395   : > { %v9865_v33 = vadd.f32 %v7084_v14, %v9687_v27 }
 0x396   : > { %v7086_v24 = vpop.f32.mrf.mxu1  ;;  %7614 = vmatpush3.bf16.msra.mxu1 %v8168_v62 }
 0x397   : > { %v7087_v19 = vadd.f32 %v7086_v24, %v7085_v42  ;;  %7615 = vmatprep.subr.bf16.mxu1 %v11925_v1 }
 0x398   : > { %v7088_v50 = vpop.f32.mrf.mxu1 }
 0x399   : > { %v9872_v55 = vadd.f32 %v7087_v19, %v9692_v3 }
 0x39a   : > { %v7089_v2 = vpop.f32.mrf.mxu1 }
 0x39b   : > { %v7090_v4 = vadd.f32 %v7089_v2, %v7088_v50 }
 0x39c   : > { %v7091_v27 = vpop.f32.mrf.mxu1 }
 0x39d   : > { %v9876_v9 = vadd.f32 %v7090_v4, %v9703_v51  ;;  %v8170_v51 = vld [vmem:[%s11910_s5] sm:$0xff]  }
 0x39e   : > { %v7092_v48 = vpop.f32.mrf.mxu1  ;;  %7616 = vmatpush3.bf16.msra.mxu1 %v8170_v51 }
 0x39f   : > { %v7093_v0 = vadd.f32 %v7092_v48, %v7091_v27  ;;  %7705 = vmatprep.subr.bf16.mxu1 %v11925_v1 }
 0x3a0   : > { %v7094_v34 = vpop.f32.mrf.mxu1 }
 0x3a1   : > { %v9882_v61 = vadd.f32 %v7093_v0, %v9709_v57 }
 0x3a2   : > { %v7095_v3 = vpop.f32.mrf.mxu1 }
 0x3a3   : > { %v7096_v38 = vadd.f32 %v7095_v3, %v7094_v34  ;;  %v2810_v3 = vlaneseq }
 0x3a4   : > { %v7097_v30 = vpop.f32.mrf.mxu1 }
 0x3a5   : > { %v9889_v31 = vadd.f32 %v7096_v38, %v9717_v37 }
 0x3a6   : > { %v7098_v11 = vpop.f32.mrf.mxu1 }
 0x3a7   : > { %v7099_v60 = vadd.f32 %v7098_v11, %v7097_v30  ;;  %v2806_v30 = vld [vmem:[%s11909_s4] sm:$0x1]  ;;  %v9932_v11 = vshrl.u32 %v2810_v3, 7 }
 0x3a8   : > { %v7100_v57 = vpop.f32.mrf.mxu1 }
 0x3a9   : > { %v9893_v22 = vadd.f32 %v7099_v60, %v9722_v26  ;;  %v8169_v26 = vld [vmem:[%s11910_s5 + $0x48] sm:$0xff]   ;;  %12012 = vst [vmem:[#allocation19_spill] sm:$0xff] %v9932_v11 }
 0x3aa   : > { %v7101_v10 = vpop.f32.mrf.mxu1  ;;  %7562 = vmatpush3.bf16.msra.mxu0 %v8169_v26 }
 0x3ab   : > { %v7102_v6 = vadd.f32 %v7101_v10, %v7100_v57  ;;  %7563 = vmatprep.subr.bf16.mxu0 %v11925_v1 }
 0x3ac   : > { %v7103_v41 = vpop.f32.mrf.mxu1 }
 0x3ad   : > { %v9896_v54 = vadd.f32 %v7102_v6, %v9730_v25 }
 0x3ae   : > { %v7104_v49 = vpop.f32.mrf.mxu1 }
 0x3af   : > { %v7105_v43 = vadd.f32 %v7104_v49, %v7103_v41  ;;  %v9937_v41 = vsub.s32 0, %v9932_v11 }
 0x3b0   : > { %v7106_v47 = vpop.f32.mrf.mxu1 }
 0x3b1   : > { %v9899_v37 = vadd.f32 %v7105_v43, %v9735_v20  ;;  %12013 = vst [vmem:[#allocation20_spill] sm:$0xff] %v9937_v41  ;;  %v9940_v43 = vsub.s32 1, %v9932_v11 }
 0x3b2   : > { %v7107_v16 = vpop.f32.mrf.mxu1 }
 0x3b3   : > { %v7108_v29 = vadd.f32 %v7107_v16, %v7106_v47  ;;  %12014 = vst [vmem:[#allocation21_spill] sm:$0xff] %v9940_v43 }
 0x3b4   : > { %v7109_v46 = vpop.f32.mrf.mxu1 }
 0x3b5   : > { %v9905_v58 = vadd.f32 %v7108_v29, %v9743_v5 }
 0x3b6   : > { %v7110_v53 = vpop.f32.mrf.mxu1 }
 0x3b7   : > { %12005 = vst [vmem:[#allocation12_spill] sm:$0xff] %v9905_v58  ;;  %v7111_v25 = vadd.f32 %v7110_v53, %v7109_v46 }
 0x3b8   : > { %v7112_v15 = vpop.f32.mrf.mxu1 }
 0x3b9   : > { %v9909_v63 = vadd.f32 %v7111_v25, %v9748_v45 }
 0x3ba   : > { %v7113_v20 = vpop.f32.mrf.mxu1 }
 0x3bb   : > { %12006 = vst [vmem:[#allocation13_spill] sm:$0xff] %v9909_v63  ;;  %v7114_v21 = vadd.f32 %v7113_v20, %v7112_v15 }
 0x3bc   : > { %v7115_v14 = vpop.f32.mrf.mxu1 }
 0x3bd   : > { %v9912_v42 = vadd.f32 %v7114_v21, %v9756_v40  ;;  %v3698_v21 = vld [vmem:[%s11909_s4] sm:$0x4] }
 0x3be   : > { %v7116_v35 = vpop.f32.mrf.mxu1 }
 0x3bf   : > { %12007 = vst [vmem:[#allocation14_spill] sm:$0xff] %v9912_v42  ;;  %v7117_v24 = vadd.f32 %v7116_v35, %v7115_v14 }
 0x3c0   : > { %v7118_v19 = vpop.f32.mrf.mxu1 }
 0x3c1   : > { %v9915_v5 = vadd.f32 %v7117_v24, %v9761_v36  ;;  %v2808_v24 = vpack.i.b16 %v2806_v30, %v2806_v30 }
 0x3c2   : > { %v7119_v50 = vpop.f32.mrf.mxu1 }
 0x3c3   : > { %12008 = vst [vmem:[#allocation15_spill] sm:$0xff] %v9915_v5  ;;  %v7120_v13 = vadd.f32 %v7119_v50, %v7118_v19  ;;  %v2813_v3 = vrot.slane %v2808_v24, %v9937_v41 }
 0x3c4   : > { %v7121_v2 = vpop.f32.mrf.mxu1 }
 0x3c5   : > { %v9918_v4 = vadd.f32 %v7120_v13, %v9769_v7  ;;  %v3175_v7 = vld [vmem:[%s11909_s4] sm:$0x2]  ;;  %v9958_v13 = vsub.s32 2, %v9932_v11 }
 0x3c6   : > { %v7122_v45 = vpop.f32.mrf.mxu1  ;;  %v3362_v57 = vshrl.u32 %v3175_v7, 16 }
 0x3c7   : > { %12009 = vst [vmem:[#allocation16_spill] sm:$0xff] %v9918_v4  ;;  %v7123_v27 = vadd.f32 %v7122_v45, %v7121_v2  ;;  %12015 = vst [vmem:[#allocation22_spill] sm:$0xff] %v9958_v13 }
 0x3c8   : > { %v7124_v48 = vpop.f32.mrf.mxu1  ;;  %v3363_v47 = vpack.i.b16 %v3362_v57, %v3362_v57 }
 0x3c9   : > { %v9921_v0 = vadd.f32 %v7123_v27, %v9774_v32  ;;  %v2843_v32 = vshrl.u32 %v2806_v30, 16 }
 0x3ca   : > { %v7125_v40 = vpop.f32.mrf.mxu1  ;;  %v3368_v53 = vrot.slane %v3363_v47, %v9940_v43 }
 0x3cb   : > { %12010 = vst [vmem:[#allocation17_spill] sm:$0xff] %v9921_v0  ;;  %v7126_v34 = vadd.f32 %v7125_v40, %v7124_v48  ;;  %v2844_v49 = vpack.i.b16 %v2843_v32, %v2843_v32 }
 0x3cc   : > { %v7127_v62 = vpop.f32.mrf.mxu1  ;;  %v9955_v19 = vcombine.low %v3368_v53, %v3368_v53 }
 0x3cd   : > { %v9924_v38 = vadd.f32 %v7126_v34, %v9785_v59  ;;  %v2849_v26 = vrot.slane %v2844_v49, %v9937_v41 }
 0x3ce   : > { %v7128_v36 = vpop.f32.mrf.mxu1 }
 0x3cf   : > { %12011 = vst [vmem:[#allocation18_spill] sm:$0xff] %v9924_v38  ;;  %v9947_v20 = vcombine.low %v2849_v26, %v2849_v26 }
 0x3d0   : > { %v2554_v51 = vpop.f32.mrf.mxu1 }
 0x3d1   : > { %v2555_v6 = vadd.f32 %v2554_v51, %v9813_v23  ;;  %v8174_v23 = vld [vmem:[%s11910_s5 + $0x40] sm:$0xff]  }
 0x3d2   : > { %v7499_v60 = vpop.f32.mrf.mxu1  ;;  %7564 = vmatpush3.bf16.msra.mxu0 %v8174_v23 }
 0x3d3   : > { %7653 = vmatprep.subr.bf16.mxu0 %v11925_v1 }
 0x3d4   : > { %v2557_v10 = vpop.f32.mrf.mxu1 }
 0x3d5   : > { %v2558_v59 = vadd.f32 %v2557_v10, %v9817_v56  ;;  %v3177_v56 = vpack.i.b16 %v3175_v7, %v3175_v7 }
 0x3d6   : > { %v7500_v16 = vpop.f32.mrf.mxu1 }
 0x3d7   : > { %v6629_v29 = vpack.c.bf16 %v2558_v59, %v2555_v6  ;;  %v3182_v40 = vrot.slane %v3177_v56, %v9940_v43 }
 0x3d8   : > { %v2562_v46 = vpop.f32.mrf.mxu1 }
 0x3d9   : > { %6630 = vst [vmem:[#allocation2] sm:$0xff] %v6629_v29   ;;  %v2563_v14 = vadd.f32 %v2562_v46, %v9822_v44  ;;  %v3700_v44 = vpack.i.b16 %v3698_v21, %v3698_v21  ;;  %v9973_v57 = vcombine.low %v3182_v40, %v3182_v40 }
 0x3da   : > { %v7503_v25 = vpop.f32.mrf.mxu1 }
 0x3db   : > { %v3705_v59 = vrot.slane %v3700_v44, %v9958_v13  ;;  %v9980_v25 = vcombine.low %v2813_v3, %v2813_v3 }
 0x3dc   : > { %v2565_v15 = vpop.f32.mrf.mxu1 }
 0x3dd   : > { %v2566_v35 = vadd.f32 %v2565_v15, %v9825_v39 }
 0x3de   : > { %v7504_v50 = vpop.f32.mrf.mxu1 }
 0x3df   : > { %v6634_v2 = vpack.c.bf16 %v2566_v35, %v2563_v14  ;;  %v9983_v14 = vcombine.low %v3705_v59, %v3705_v59 }
 0x3e0   : > { %v9960_v45 = vld [vmem:[#allocation2] sm:$0xf]  ;;  %v9962_v27 = vld [vmem:[#allocation2 + $0x4] sm:$0xf]  ;;  %v9965_v34 = vpop.f32.mrf.mxu1 }
 0x3e1   : > { %v3174_v48 = vld [vmem:[#allocation2] sm:$0xe]  ;;  %v2854_v39 = vmul.bf16 %v9947_v20, %v9960_v45  ;;  %v2855_v62 = vmul.bf16 %v9947_v20, %v9962_v27  ;;  %6756 = vst [vmem:[#allocation2 + $0x8] sm:$0xff] %v6634_v2   ;;  %v3374_v26 = vmul.bf16 %v9955_v19, %v9962_v27 }
 0x3e2   : > { %v3373_v36 = vmul.bf16 %v9955_v19, %v3174_v48  ;;  %v7507_v30 = vpop.f32.mrf.mxu1  ;;  %v3187_v56 = vmul.bf16 %v9973_v57, %v3174_v48  ;;  %v3188_v48 = vmul.bf16 %v9973_v57, %v9962_v27 }
 0x3e3   : > { %v2883_v7 = vshrl.u32 %v2854_v39, 16  ;;  %v2886_v51 = vshll.u32 %v2854_v39, 16  ;;  %v2892_v32 = vshll.u32 %v2855_v62, 16  ;;  %v2896_v60 = vshrl.u32 %v2855_v62, 16  ;;  %v3697_v39 = vld [vmem:[#allocation2] sm:$0xc] }
 0x3e4   : > { %v3402_v10 = vshrl.u32 %v3373_v36, 16  ;;  %v3405_v6 = vshll.u32 %v3373_v36, 16  ;;  %v9976_v49 = vpop.f32.mrf.mxu1  ;;  %v3411_v44 = vshrl.u32 %v3374_v26, 16  ;;  %v3414_v3 = vshll.u32 %v3374_v26, 16 }
 0x3e5   : > { %v2885_v47 = vrot.slane %v2883_v7, 4  ;;  %v2888_v16 = vrot.slane %v2886_v51, 5  ;;  %v2894_v29 = vrot.slane %v2892_v32, 5  ;;  %v2898_v46 = vrot.slane %v2896_v60, 4 }
 0x3e6   : > { %v7508_v53 = vpop.f32.mrf.mxu1  ;;  %v3404_v15 = vrot.slane %v3402_v10, 5  ;;  %v3407_v21 = vrot.slane %v3405_v6, 6  ;;  %v2818_v30 = vmul.bf16 %v9980_v25, %v9960_v45  ;;  %v6329_v51 = vrot.slane %v3187_v56, 9 }
 0x3e7   : > { %v2889_v23 = vor.u32 %v2888_v16, %v2885_v47  ;;  %v2899_v40 = vor.u32 %v2898_v46, %v2894_v29  ;;  %v3710_v10 = vmul.bf16 %v9983_v14, %v3697_v39  ;;  %v3711_v6 = vmul.bf16 %v9983_v14, %v9962_v27 }
 0x3e8   : > { %v9985_v35 = vld [vmem:[#allocation2 + $0x8] sm:$0xf]  ;;  %v9987_v24 = vpop.f32.mrf.mxu1  ;;  %v3408_v32 = vor.u32 %v3407_v21, %v3404_v15  ;;  %v3242_v46 = vrot.slane %v3188_v48, 5  ;;  %v3413_v26 = vrot.slane %v3411_v44, 5  ;;  %v3416_v56 = vrot.slane %v3414_v3, 6 }
 0x3e9   : > { %v2890_v2 = vrot.slane %v2889_v23, 4  ;;  %v2856_v36 = vmul.bf16 %v9947_v20, %v9985_v35  ;;  %v2900_v16 = vrot.slane %v2899_v40, 4  ;;  %v3189_v53 = vmul.bf16 %v9973_v57, %v9985_v35  ;;  %v10013_v15 = vld [vmem:[#allocation2 + $0xc] sm:$0xf] }
 0x3ea   : > { %v7511_v62 = vpop.f32.mrf.mxu1  ;;  %v2819_v40 = vmul.bf16 %v9980_v25, %v9962_v27  ;;  %v3409_v48 = vrot.slane %v3408_v32, 4  ;;  %v2857_v32 = vmul.bf16 %v9947_v20, %v10013_v15 }
 0x3eb   : > { %v2895_v7 = vsel %vm9990_vm4, %v2890_v2, %v2894_v29  ;;  %v2902_v59 = vshll.u32 %v2856_v36, 16  ;;  %v2906_v47 = vshrl.u32 %v2856_v36, 16  ;;  %v3375_v2 = vmul.bf16 %v9955_v19, %v9985_v35 }
 0x3ec   : > { %v2581_v60 = vpop.f32.mrf.mxu1  ;;  %v3150_v23 = vadd.bf16 %v2895_v7, %v2818_v30  ;;  %v6332_v62 = vrot.slane %v3710_v10, 10  ;;  %v3765_v36 = vrot.slane %v3711_v6, 6  ;;  %v3243_v7 = vsel %vm10009_vm11, %v6329_v51, %v3242_v46 }
 0x3ed   : > { %v2904_v21 = vrot.slane %v2902_v59, 5  ;;  %v2908_v30 = vrot.slane %v2906_v47, 4  ;;  %v10037_v59 = vrot.slane %v3189_v53, 5  ;;  %v3244_v47 = vrot.slane %v3242_v46, 4 }
 0x3ee   : > { %v7512_v45 = vpop.f32.mrf.mxu1  ;;  %v3337_v6 = vadd.bf16 %v3243_v7, %v3150_v23  ;;  %v3424_v13 = vshll.u32 %v3375_v2, 16  ;;  %v2571_v51 = vadd.f32 %v9965_v34, %v9831_v8  ;;  %v3766_v41 = vsel %vm10031_vm13, %v6332_v62, %v3765_v36 }
 0x3ef   : > { %v2905_v3 = vsel %vm9990_vm4, %v2900_v16, %v2904_v21  ;;  %v3417_v45 = vor.u32 %v3416_v56, %v3413_v26  ;;  %v3421_v16 = vshrl.u32 %v3375_v2, 16  ;;  %v2909_v38 = vor.u32 %v2908_v30, %v2904_v21 }
 0x3f0   : > { %v2586_v44 = vpop.f32.mrf.mxu1  ;;  %v3151_v1 = vadd.bf16 %v2905_v3, %v2819_v40  ;;  %v2912_v0 = vshll.u32 %v2857_v32, 16  ;;  %v3246_v26 = vsel %vm10009_vm11, %v3244_v47, %v10037_v59  ;;  %v3426_v23 = vrot.slane %v3424_v13, 6 }
 0x3f1   : > { %v3418_v43 = vsel %vm10021_vm12, %v3409_v48, %v3417_v45  ;;  %v3423_v53 = vrot.slane %v3421_v16, 5  ;;  %v3712_v46 = vmul.bf16 %v9983_v14, %v9985_v35  ;;  %v3376_v2 = vmul.bf16 %v9955_v19, %v10013_v15 }
 0x3f2   : > { %v7515_v10 = vpop.f32.mrf.mxu1  ;;  %v3673_v8 = vadd.bf16 %v3418_v43, %v3337_v6  ;;  %v3338_v34 = vadd.bf16 %v3246_v26, %v3151_v1  ;;  %v2574_v40 = vadd.f32 %v9976_v49, %v9838_v17  ;;  %v3419_v21 = vrot.slane %v3417_v45, 4 }
 0x3f3   : > { %v10054_v48 = vor.u32 %v3426_v23, %v3423_v53  ;;  %v10056_v62 = vrot.slane %v3712_v46, 6  ;;  %v2582_v3 = vadd.f32 %v2581_v60, %v9848_v12  ;;  %v3767_v30 = vrot.slane %v3765_v36, 4 }
 0x3f4   : > { %v2589_v11 = vpop.f32.mrf.mxu1  ;;  %v2910_v7 = vrot.slane %v2909_v38, 4  ;;  %v6639_v10 = vpack.c.bf16 %v2574_v40, %v2571_v51  ;;  %v2579_v1 = vadd.f32 %v9987_v24, %v9842_v28  ;;  %v2914_v43 = vrot.slane %v2912_v0, 5 }
 0x3f5   : > { %v2916_v6 = vshrl.u32 %v2857_v32, 16  ;;  %v3190_v16 = vmul.bf16 %v9973_v57, %v10013_v15  ;;  %v3428_v17 = vsel %vm10021_vm12, %v3419_v21, %v10054_v48  ;;  %v3860_v45 = vadd.bf16 %v3766_v41, %v3673_v8 }
 0x3f6   : > { %v7516_v56 = vpop.f32.mrf.mxu1  ;;  %v3431_v47 = vshrl.u32 %v3376_v2, 16  ;;  %v3674_v12 = vadd.bf16 %v3428_v17, %v3338_v34  ;;  %6757 = vst [vmem:[#allocation2 + $0x10] sm:$0xff] %v6639_v10   ;;  %v6644_v60 = vpack.c.bf16 %v2582_v3, %v2579_v1  ;;  %v3434_v38 = vshll.u32 %v3376_v2, 16 }
 0x3f7   : > { %v3769_v28 = vsel %vm10031_vm13, %v3767_v30, %v10056_v62  ;;  %v2587_v0 = vadd.f32 %v2586_v44, %v9855_v18  ;;  %v2590_v24 = vadd.f32 %v2589_v11, %v9859_v52  ;;  %v2915_v32 = vsel %vm9990_vm4, %v2910_v7, %v2914_v43 }
 0x3f8   : > { %v2594_v13 = vpop.f32.mrf.mxu1  ;;  %v3861_v51 = vadd.bf16 %v3769_v28, %v3674_v12  ;;  %6758 = vst [vmem:[#allocation2 + $0x18] sm:$0xff] %v6644_v60   ;;  %v2820_v26 = vmul.bf16 %v9980_v25, %v9985_v35  ;;  %v3247_v56 = vrot.slane %v10037_v59, 4  ;;  %v2918_v52 = vrot.slane %v2916_v6, 4 }
 0x3f9   : > { %v2595_v41 = vadd.f32 %v2594_v13, %v9865_v33  ;;  %v6649_v23 = vpack.c.bf16 %v2590_v24, %v2587_v0  ;;  %v3433_v8 = vrot.slane %v3431_v47, 5  ;;  %v3436_v34 = vrot.slane %v3434_v38, 6 }
 0x3fa   : > { %v7519_v49 = vpop.f32.mrf.mxu1  ;;  %v6767_v18 = vcombine.low %v3860_v45, %v3861_v51  ;;  %v3152_v11 = vadd.bf16 %v2915_v32, %v2820_v26  ;;  %v3248_v40 = vrot.slane %v3190_v16, 5  ;;  %v3713_v33 = vmul.bf16 %v9983_v14, %v10013_v15 }
 0x3fb   : > { %6759 = vst [vmem:[#allocation2 + $0x20] sm:$0xff] %v6649_v23   ;;  %v2919_v7 = vor.u32 %v2918_v52, %v2914_v43  ;;  %v10091_v1 = vor.u32 %v3436_v34, %v3433_v8  ;;  %v3770_v45 = vrot.slane %v10056_v62, 4 }
 0x3fc   : > { %v2597_v36 = vpop.f32.mrf.mxu1  ;;  %6690 = vst [vmem:[#allocation3] sm:$0xff] %v6767_v18   ;;  %v3249_v3 = vsel %vm10009_vm11, %v3247_v56, %v3248_v40  ;;  %v3250_v32 = vrot.slane %v3248_v40, 4 }
 0x3fd   : > { %v2598_v53 = vadd.f32 %v2597_v36, %v9872_v55  ;;  %v3429_v55 = vrot.slane %v10054_v48, 4  ;;  %v10081_v35 = vld [vmem:[#allocation2 + $0x10] sm:$0xf]  ;;  %v10083_v21 = vld [vmem:[#allocation2 + $0x14] sm:$0xf]  ;;  %v3339_v10 = vadd.bf16 %v3249_v3, %v3152_v11  ;;  %v10095_v48 = vrot.slane %v3713_v33, 6 }
 0x3fe   : > { %v7520_v46 = vpop.f32.mrf.mxu1  ;;  %12024 = vst [vmem:[#allocation23_spill] sm:$0xff] %v10083_v21  ;;  %v2858_v13 = vmul.bf16 %v9947_v20, %v10081_v35  ;;  %v2859_v30 = vmul.bf16 %v9947_v20, %v10083_v21  ;;  %v3191_v49 = vmul.bf16 %v9973_v57, %v10081_v35  ;;  %v3192_v47 = vmul.bf16 %v9973_v57, %v10083_v21 }
 0x3ff   : > { %v6654_v44 = vpack.c.bf16 %v2598_v53, %v2595_v41  ;;  %v3377_v43 = vmul.bf16 %v9955_v19, %v10081_v35  ;;  %v3438_v60 = vsel %vm10021_vm12, %v3429_v55, %v10091_v1  ;;  %v10109_v36 = vrot.slane %v2919_v7, 4  ;;  %v10124_v33 = vld [vmem:[#allocation2 + $0x18] sm:$0xf] }
 0x400   : > { %v2602_v2 = vpop.f32.mrf.mxu1  ;;  %v2922_v16 = vshll.u32 %v2858_v13, 16  ;;  %v2926_v17 = vshrl.u32 %v2858_v13, 16  ;;  %v2932_v0 = vshll.u32 %v2859_v30, 16  ;;  %v2936_v24 = vshrl.u32 %v2859_v30, 16  ;;  %v10137_v30 = vld [vmem:[#allocation2 + $0x1c] sm:$0xf] }
 0x401   : > { %6760 = vst [vmem:[#allocation2 + $0x28] sm:$0xff] %v6654_v44   ;;  %v10114_v53 = vadd.bf16 %v3438_v60, %v3339_v10  ;;  %v3251_v46 = vrot.slane %v3191_v49, 5  ;;  %v3378_v56 = vmul.bf16 %v9955_v19, %v10083_v21  ;;  %v3441_v44 = vshrl.u32 %v3377_v43, 16  ;;  %12028 = vst [vmem:[#allocation26_spill] sm:$0xff] %v10137_v30 }
 0x402   : > { %v7523_v59 = vpop.f32.mrf.mxu1  ;;  %v10107_v38 = vrot.slane %v2922_v16, 5  ;;  %v2928_v28 = vrot.slane %v2926_v17, 4  ;;  %v3444_v52 = vshll.u32 %v3377_v43, 16  ;;  %v2934_v8 = vrot.slane %v2932_v0, 5 }
 0x403   : > { %v8171_v51 = vld [vmem:[#allocation3] sm:$0xff]   ;;  %12025 = vst [vmem:[#allocation24_spill] sm:$0xff] %v10114_v53  ;;  %v2938_v34 = vrot.slane %v2936_v24, 4  ;;  %v10122_v40 = vrot.slane %v3192_v47, 5  ;;  %v12026_v55 = vmov 0.0   ;;  %v10131_v59 = vsel %vm10031_vm13, %v3770_v45, %v10095_v48 }
 0x404   : > { %v10093_v6 = vpop.f32.mrf.mxu1  ;;  %v2929_v23 = vor.u32 %v2928_v28, %v10107_v38  ;;  %7618 = vmatmul.mubr.bf16.vlgmr.msra.gmra.mxu1 %v8171_v51  ;;  %12027 = vst [vmem:[#allocation25_spill] sm:$0xff] %v10131_v59  ;;  %v2822_v3 = vmul.bf16 %v9980_v25, %v10081_v35  ;;  %v10140_v7 = vadd.f32 %v2602_v2, %v9876_v9  ;;  %v3451_v45 = vshrl.u32 %v3378_v56, 16 }
 0x405   : > { %7621 = vmatprep.mubr.msk.bf16.mxu1 %vm8586_vm0, %v12026_v55  ;;  %v10148_v49 = vsel %vm10009_vm11, %v3250_v32, %v3251_v46  ;;  %v3454_v47 = vshll.u32 %v3378_v56, 16  ;;  %v3253_v43 = vrot.slane %v3251_v46, 4  ;;  %v3446_v60 = vrot.slane %v3444_v52, 6 }
 0x406   : > { %v7524_v12 = vpop.f32.mrf.mxu1  ;;  %v2930_v17 = vrot.slane %v2929_v23, 4  ;;  %v2860_v28 = vmul.bf16 %v9947_v20, %v10124_v33  ;;  %v2939_v0 = vor.u32 %v2938_v34, %v2934_v8  ;;  %v3256_v24 = vrot.slane %v10122_v40, 4 }
 0x407   : > { %v3443_v12 = vrot.slane %v3441_v44, 5  ;;  %v2861_v32 = vmul.bf16 %v9947_v20, %v10137_v30  ;;  %v3714_v51 = vmul.bf16 %v9983_v14, %v10081_v35  ;;  %v3715_v23 = vmul.bf16 %v9983_v14, %v10083_v21 }
 0x408   : > { %v10112_v41 = vpop.f32.mrf.mxu1  ;;  %v2942_v46 = vshll.u32 %v2860_v28, 16  ;;  %v2946_v56 = vshrl.u32 %v2860_v28, 16  ;;  %v2935_v52 = vsel %vm9990_vm4, %v2930_v17, %v2934_v8  ;;  %v3456_v34 = vrot.slane %v3454_v47, 6  ;;  %v10293_v21 = vld [vmem:[#allocation2 + $0x2c] sm:$0xf] }
 0x409   : > { %v10169_v16 = vor.u32 %v3446_v60, %v3443_v12  ;;  %v3194_v26 = vmul.bf16 %v9973_v57, %v10137_v30  ;;  %v10178_v28 = vsel %vm10009_vm11, %v3253_v43, %v10122_v40  ;;  %v2952_v8 = vshll.u32 %v2861_v32, 16 }
 0x40a   : > { %v7527_v11 = vpop.f32.mrf.mxu1  ;;  %v10171_v13 = vrot.slane %v2942_v46, 5  ;;  %v2948_v35 = vrot.slane %v2946_v56, 4  ;;  %12030 = vst [vmem:[#allocation28_spill] sm:$0xff] %v10178_v28  ;;  %v2956_v17 = vshrl.u32 %v2861_v32, 16  ;;  %v10182_v47 = vadd.bf16 %v2935_v52, %v2822_v3 }
 0x40b   : > { %v3453_v11 = vrot.slane %v3451_v45, 5  ;;  %v3379_v45 = vmul.bf16 %v9955_v19, %v10124_v33  ;;  %v10184_v12 = vrot.slane %v3714_v51, 6  ;;  %v10186_v60 = vrot.slane %v3715_v23, 6 }
 0x40c   : > { %v10142_v10 = vpop.f32.mrf.mxu1  ;;  %12029 = vst [vmem:[#allocation27_spill] sm:$0xff] %v10171_v13  ;;  %12031 = vst [vmem:[#allocation29_spill] sm:$0xff] %v10182_v47  ;;  %v2949_v46 = vor.u32 %v2948_v35, %v10171_v13  ;;  %v3380_v43 = vmul.bf16 %v9955_v19, %v10137_v30  ;;  %v2824_v3 = vmul.bf16 %v9980_v25, %v10124_v33  ;;  %v10202_v23 = vrot.slane %v3194_v26, 5  ;;  %v8179_v47 = vld [vmem:[%s11910_s5 + $0xf8] sm:$0xff]  }
 0x40d   : > { %12032 = vst [vmem:[#allocation30_spill] sm:$0xff] %v10186_v60  ;;  %v10193_v2 = vor.u32 %v3456_v34, %v3453_v11  ;;  %v2954_v35 = vrot.slane %v2952_v8, 5  ;;  %v3461_v18 = vshrl.u32 %v3379_v45, 16  ;;  %v3464_v11 = vshll.u32 %v3379_v45, 16  ;;  %v10204_v34 = vld [vmem:[#allocation2 + $0x20] sm:$0xf]  ;;  %7706 = vmatpush3.bf16.msra.mxu1 %v8179_v47 }
 0x40e   : > { %v7528_v9 = vpop.f32.mrf.mxu1  ;;  %v2950_v5 = vrot.slane %v2949_v46, 4  ;;  %v3474_v45 = vshll.u32 %v3380_v43, 16  ;;  %v2862_v4 = vmul.bf16 %v9947_v20, %v10204_v34  ;;  %7707 = vmatprep.subr.bf16.mxu1 %v12026_v55 }
 0x40f   : > { %v3193_v9 = vmul.bf16 %v9973_v57, %v10124_v33  ;;  %12034 = vst [vmem:[#allocation32_spill] sm:$0xff] %v10193_v2  ;;  %v3463_v60 = vrot.slane %v3461_v18, 5 }
 0x410   : > { %v10163_v44 = vpop.f32.mrf.mxu1  ;;  %v2955_v51 = vsel %vm9990_vm4, %v2950_v5, %v2954_v35  ;;  %v2962_v46 = vshll.u32 %v2862_v4, 16  ;;  %v2966_v28 = vshrl.u32 %v2862_v4, 16  ;;  %v3476_v18 = vrot.slane %v3474_v45, 6 }
 0x411   : > { %v3257_v40 = vrot.slane %v3193_v9, 5  ;;  %v3381_v5 = vmul.bf16 %v9955_v19, %v10204_v34  ;;  %v10250_v45 = vadd.bf16 %v2955_v51, %v2824_v3 }
 0x412   : > { %v7531_v62 = vpop.f32.mrf.mxu1 }
 0x413   : > { %v10191_v62 = vrot.slane %v2939_v0, 4  ;;  %v2958_v0 = vrot.slane %v2956_v17, 4  ;;  %v10215_v8 = vsel %vm10009_vm11, %v3256_v24, %v3257_v40  ;;  %v3471_v17 = vshrl.u32 %v3380_v43, 16  ;;  %12039 = vst [vmem:[#allocation37_spill] sm:$0xff] %v10250_v45 }
 0x414   : > { %v10189_v56 = vpop.f32.mrf.mxu1  ;;  %12036 = vst [vmem:[#allocation34_spill] sm:$0xff] %v10215_v8  ;;  %v3259_v32 = vrot.slane %v3257_v40, 4  ;;  %v3466_v24 = vrot.slane %v3464_v11, 6  ;;  %v3716_v43 = vmul.bf16 %v9983_v14, %v10124_v33  ;;  %v3717_v11 = vmul.bf16 %v9983_v14, %v10137_v30 }
 0x415   : > { %12033 = vst [vmem:[#allocation31_spill] sm:$0xff] %v10191_v62  ;;  %v2959_v9 = vor.u32 %v2958_v0, %v2954_v35  ;;  %v3473_v0 = vrot.slane %v3471_v17, 5  ;;  %v3195_v33 = vmul.bf16 %v9973_v57, %v10204_v34  ;;  %v2968_v8 = vrot.slane %v2966_v28, 4  ;;  %v8180_v28 = vld [vmem:[%s11910_s5 + $0xf0] sm:$0xff]  }
 0x416   : > { %v7532_v52 = vpop.f32.mrf.mxu1  ;;  %v10255_v47 = vsel %vm10009_vm11, %v3259_v32, %v10202_v23  ;;  %v10262_v30 = vor.u32 %v3466_v24, %v3463_v60  ;;  %v10269_v51 = vrot.slane %v3717_v11, 6  ;;  %7708 = vmatpush3.bf16.msra.mxu1 %v8180_v28  ;;  %v3481_v60 = vshrl.u32 %v3381_v5, 16 }
 0x417   : > { %v10217_v52 = vld [vmem:[#allocation2 + $0x24] sm:$0xf]  ;;  %v10248_v17 = vrot.slane %v2959_v9, 4  ;;  %12040 = vst [vmem:[#allocation38_spill] sm:$0xff] %v10255_v47  ;;  %v10267_v3 = vor.u32 %v3476_v18, %v3473_v0  ;;  %v3484_v24 = vshll.u32 %v3381_v5, 16  ;;  %7709 = vmatprep.subr.bf16.mxu1 %v12026_v55 }
 0x418   : > { %v10210_v42 = vpop.f32.mrf.mxu1  ;;  %12037 = vst [vmem:[#allocation35_spill] sm:$0xff] %v10217_v52  ;;  %v2863_v40 = vmul.bf16 %v9947_v20, %v10217_v52  ;;  %v3382_v4 = vmul.bf16 %v9955_v19, %v10217_v52  ;;  %12043 = vst [vmem:[#allocation41_spill] sm:$0xff] %v10269_v51  ;;  %v3196_v32 = vmul.bf16 %v9973_v57, %v10217_v52 }
 0x419   : > { %12035 = vst [vmem:[#allocation33_spill] sm:$0xff] %v10210_v42  ;;  %v3486_v13 = vrot.slane %v3484_v24, 6 }
 0x41a   : > { %v7535_v26 = vpop.f32.mrf.mxu1  ;;  %v2972_v53 = vshll.u32 %v2863_v40, 16  ;;  %v2976_v9 = vshrl.u32 %v2863_v40, 16  ;;  %v3491_v63 = vshrl.u32 %v3382_v4, 16  ;;  %v3494_v11 = vshll.u32 %v3382_v4, 16 }
 0x41b   : > { %v10241_v26 = vrot.slane %v2962_v46, 5  ;;  %v10257_v46 = vrot.slane %v3716_v43, 6  ;;  %v3263_v43 = vrot.slane %v3195_v33, 5  ;;  %v8182_v33 = vld [vmem:[%s11910_s5 + $0xe8] sm:$0xff]   ;;  %v10291_v0 = vrot.slane %v3196_v32, 5 }
 0x41c   : > { %v10235_v2 = vpop.f32.mrf.mxu1  ;;  %v2978_v42 = vrot.slane %v2976_v9, 4  ;;  %7710 = vmatpush3.bf16.msra.mxu1 %v8182_v33  ;;  %v3493_v62 = vrot.slane %v3491_v63, 5  ;;  %v3496_v40 = vrot.slane %v3494_v11, 6  ;;  %v3718_v32 = vmul.bf16 %v9983_v14, %v10204_v34  ;;  %v8183_v63 = vld [vmem:[%s11910_s5 + $0xe0] sm:$0xff]  }
 0x41d   : > { %12038 = vst [vmem:[#allocation36_spill] sm:$0xff] %v10235_v2  ;;  %12041 = vst [vmem:[#allocation39_spill] sm:$0xff] %v10257_v46  ;;  %v2826_v2 = vmul.bf16 %v9980_v25, %v10204_v34  ;;  %v3265_v4 = vrot.slane %v3263_v43, 4  ;;  %v3483_v46 = vrot.slane %v3481_v60, 5  ;;  %7711 = vmatprep.subr.bf16.mxu1 %v12026_v55  ;;  %v3719_v60 = vmul.bf16 %v9983_v14, %v10217_v52 }
 0x41e   : > { %v7536_v35 = vpop.f32.mrf.mxu1  ;;  %v12045_v33 = vrot.slane %v10202_v23, 4 }
 0x41f   : > { %v2969_v35 = vor.u32 %v2968_v8, %v10241_v26  ;;  %v10322_v28 = vsel %vm10009_vm11, %v3265_v4, %v10291_v0  ;;  %v10337_v4 = vrot.slane %v3718_v32, 6  ;;  %v10339_v52 = vrot.slane %v3719_v60, 6 }
 0x420   : > { %v10265_v59 = vpop.f32.mrf.mxu1  ;;  %12047 = vst [vmem:[#allocation44_spill] sm:$0xff] %v10322_v28  ;;  %7712 = vmatpush3.bf16.msra.mxu1 %v8183_v63 }
 0x421   : > { %12042 = vst [vmem:[#allocation40_spill] sm:$0xff] %v10265_v59  ;;  %v2970_v18 = vrot.slane %v2969_v35, 4  ;;  %v10279_v59 = vld [vmem:[#allocation2 + $0x28] sm:$0xf]  ;;  %7713 = vmatprep.subr.bf16.mxu1 %v12026_v55  ;;  %12049 = vst [vmem:[#allocation46_spill] sm:$0xff] %v10339_v52 }
 0x422   : > { %v7539_v8 = vpop.f32.mrf.mxu1  ;;  %v2864_v5 = vmul.bf16 %v9947_v20, %v10279_v59  ;;  %v3383_v23 = vmul.bf16 %v9955_v19, %v10279_v59 }
 0x423   : > { %v2974_v8 = vrot.slane %v2972_v53, 5 }
 0x424   : > { %v10287_v58 = vpop.f32.mrf.mxu1  ;;  %v2982_v35 = vshll.u32 %v2864_v5, 16  ;;  %v3501_v60 = vshrl.u32 %v3383_v23, 16 }
 0x425   : > { %12044 = vst [vmem:[#allocation42_spill] sm:$0xff] %v10287_v58  ;;  %v2975_v9 = vsel %vm9990_vm4, %v2970_v18, %v2974_v8  ;;  %v2979_v24 = vor.u32 %v2978_v42, %v2974_v8  ;;  %v2986_v18 = vshrl.u32 %v2864_v5, 16  ;;  %v2865_v42 = vmul.bf16 %v9947_v20, %v10293_v21 }
 0x426   : > { %v7540_v53 = vpop.f32.mrf.mxu1  ;;  %v10330_v5 = vor.u32 %v3486_v13, %v3483_v46  ;;  %v10332_v8 = vrot.slane %v2982_v35, 5  ;;  %v3197_v58 = vmul.bf16 %v9973_v57, %v10279_v59  ;;  %v3268_v13 = vrot.slane %v10291_v0, 4 }
 0x427   : > { %v10311_v53 = vsel %vm10009_vm11, %v12045_v33, %v3263_v43  ;;  %v10328_v43 = vadd.bf16 %v2975_v9, %v2826_v2  ;;  %v2988_v33 = vrot.slane %v2986_v18, 4  ;;  %v10343_v63 = vrot.slane %v2979_v24, 4 }
 0x428   : > { %v10313_v11 = vpop.f32.mrf.mxu1  ;;  %v3384_v46 = vmul.bf16 %v9955_v19, %v10293_v21  ;;  %v2992_v9 = vshll.u32 %v2865_v42, 16  ;;  %v2996_v32 = vshrl.u32 %v2865_v42, 16  ;;  %v3269_v47 = vrot.slane %v3197_v58, 5  ;;  %v8187_v42 = vld [vmem:[%s11910_s5 + $0xd0] sm:$0xff]  }
 0x429   : > { %12046 = vst [vmem:[#allocation43_spill] sm:$0xff] %v10313_v11  ;;  %12048 = vst [vmem:[#allocation45_spill] sm:$0xff] %v10328_v43  ;;  %v10335_v11 = vor.u32 %v3496_v40, %v3493_v62  ;;  %v2989_v2 = vor.u32 %v2988_v33, %v10332_v8  ;;  %v8185_v62 = vld [vmem:[%s11910_s5 + $0xd8] sm:$0xff]   ;;  %v2828_v40 = vmul.bf16 %v9980_v25, %v10279_v59  ;;  %v3503_v45 = vrot.slane %v3501_v60, 5 }
 0x42a   : > { %v7543_v34 = vpop.f32.mrf.mxu1  ;;  %7714 = vmatpush3.bf16.msra.mxu1 %v8185_v62  ;;  %v3198_v18 = vmul.bf16 %v9973_v57, %v10293_v21  ;;  %v2606_v62 = vadd.f32 %v10093_v6, %v9882_v61  ;;  %v2994_v51 = vrot.slane %v2992_v9, 5  ;;  %v3514_v58 = vshll.u32 %v3384_v46, 16 }
 0x42b   : > { %v3504_v34 = vshll.u32 %v3383_v23, 16  ;;  %7715 = vmatprep.subr.bf16.mxu1 %v12026_v55  ;;  %v2990_v0 = vrot.slane %v2989_v2, 4  ;;  %v3511_v23 = vshrl.u32 %v3384_v46, 16  ;;  %v2611_v43 = vadd.f32 %v10112_v41, %v9889_v31 }
 0x42c   : > { %v10349_v35 = vpop.f32.mrf.mxu1  ;;  %v6659_v52 = vpack.c.bf16 %v2606_v62, %v10140_v7  ;;  %v2614_v2 = vadd.f32 %v10142_v10, %v9893_v22  ;;  %v10381_v61 = vsel %vm10009_vm11, %v3268_v13, %v3269_v47  ;;  %v3271_v6 = vrot.slane %v3269_v47, 4  ;;  %v12063_v62 = vld [vmem:[#allocation33_spill] sm:$0xff] }
 0x42d   : > { %12050 = vst [vmem:[#allocation47_spill] sm:$0xff] %v10349_v35  ;;  %v2998_v35 = vrot.slane %v2996_v32, 4  ;;  %v3506_v24 = vrot.slane %v3504_v34, 6  ;;  %v3720_v9 = vmul.bf16 %v9983_v14, %v10279_v59  ;;  %v12052_v46 = vmul.bf16 %v9980_v25, %v10013_v15  ;;  %v8190_v15 = vld [vmem:[%s11910_s5 + $0xc8] sm:$0xff]  }
 0x42e   : > { %v7544_v33 = vpop.f32.mrf.mxu1  ;;  %7716 = vmatpush3.bf16.msra.mxu1 %v8187_v42  ;;  %v12053_v31 = vsel %vm9990_vm4, %v10109_v36, %v10107_v38  ;;  %v2995_v22 = vsel %vm9990_vm4, %v2990_v0, %v2994_v51  ;;  %v3513_v7 = vrot.slane %v3511_v23, 5  ;;  %v3721_v10 = vmul.bf16 %v9983_v14, %v10293_v21  ;;  %6761 = vst [vmem:[#allocation2 + $0x30] sm:$0xff] %v6659_v52   ;;  %v12062_v23 = vld [vmem:[#allocation12_spill] sm:$0xff] }
 0x42f   : > { %v3153_v41 = vadd.bf16 %v12053_v31, %v12052_v46  ;;  %7717 = vmatprep.subr.bf16.mxu1 %v12026_v55  ;;  %v6664_v59 = vpack.c.bf16 %v2614_v2, %v2611_v43  ;;  %v2619_v36 = vadd.f32 %v10163_v44, %v9896_v54  ;;  %v2622_v13 = vadd.f32 %v10189_v56, %v9899_v37  ;;  %v8192_v56 = vld [vmem:[%s11910_s5 + $0xc0] sm:$0xff]  }
 0x430   : > { %v10372_v33 = vpop.f32.mrf.mxu1  ;;  %v2999_v32 = vor.u32 %v2998_v35, %v2994_v51  ;;  %v10406_v60 = vrot.slane %v3198_v18, 5  ;;  %v10408_v0 = vor.u32 %v3506_v24, %v3503_v45  ;;  %v12054_v52 = vrot.slane %v10091_v1, 4  ;;  %v12057_v51 = vld [vmem:[#allocation23_spill] sm:$0xff]  ;;  %v12064_v2 = vld [vmem:[#allocation13_spill] sm:$0xff] }
 0x431   : > { %12051 = vst [vmem:[#allocation48_spill] sm:$0xff] %v10372_v33  ;;  %v3340_v38 = vadd.bf16 %v10148_v49, %v3153_v41  ;;  %6762 = vst [vmem:[#allocation2 + $0x38] sm:$0xff] %v6664_v59   ;;  %v10415_v34 = vadd.bf16 %v2995_v22, %v2828_v40  ;;  %v10417_v54 = vrot.slane %v3720_v9, 6  ;;  %v6669_v37 = vpack.c.bf16 %v2622_v13, %v2619_v36  ;;  %v12059_v40 = vld [vmem:[#allocation31_spill] sm:$0xff]  ;;  %v12065_v9 = vld [vmem:[#allocation36_spill] sm:$0xff] }
 0x432   : > { %v7547_v28 = vpop.f32.mrf.mxu1  ;;  %v3448_v43 = vsel %vm10021_vm12, %v12054_v52, %v10169_v16  ;;  %7718 = vmatpush3.bf16.msra.mxu1 %v8190_v15  ;;  %v12056_v1 = vrot.slane %v10095_v48, 4  ;;  %v12058_v35 = vmul.bf16 %v9980_v25, %v12057_v51  ;;  %v12060_v24 = vld [vmem:[#allocation27_spill] sm:$0xff]  ;;  %v2630_v46 = vadd.f32 %v12065_v9, %v12064_v2  ;;  %v12071_v13 = vld [vmem:[#allocation25_spill] sm:$0xff] }
 0x433   : > { %v3516_v28 = vrot.slane %v3514_v58, 6  ;;  %12055 = vst [vmem:[#allocation49_spill] sm:$0xff] %v10415_v34  ;;  %v3676_v44 = vadd.bf16 %v3448_v43, %v3340_v38  ;;  %7719 = vmatprep.subr.bf16.mxu1 %v12026_v55  ;;  %v12061_v18 = vsel %vm9990_vm4, %v12059_v40, %v12060_v24  ;;  %v2627_v58 = vadd.f32 %v12063_v62, %v12062_v23  ;;  %v12079_v23 = vld [vmem:[#allocation28_spill] sm:$0xff]  ;;  %v12080_v62 = vld [vmem:[#allocation29_spill] sm:$0xff] }
 0x434   : > { %v2653_v47 = vpop.f32.mrf.mxu1  ;;  %v3775_v45 = vsel %vm10031_vm13, %v12056_v1, %v10184_v12  ;;  %v3155_v42 = vadd.bf16 %v12061_v18, %v12058_v35  ;;  %v10446_v41 = vrot.slane %v3721_v10, 6  ;;  %6763 = vst [vmem:[#allocation2 + $0x40] sm:$0xff] %v6669_v37   ;;  %v10448_v59 = vrot.slane %v2999_v32, 4  ;;  %v12072_v32 = vld [vmem:[#allocation24_spill] sm:$0xff] }
 0x435   : > { %v10444_v31 = vor.u32 %v3516_v28, %v3513_v7  ;;  %v3863_v22 = vadd.bf16 %v3775_v45, %v3676_v44  ;;  %v10453_v15 = vsel %vm10009_vm11, %v3271_v6, %v10406_v60  ;;  %v3274_v47 = vrot.slane %v10406_v60, 4  ;;  %v10459_v10 = vld [vmem:[#allocation2 + $0x30] sm:$0xf]  ;;  %v10461_v28 = vld [vmem:[#allocation2 + $0x34] sm:$0xf] }
 0x436   : > { %v7548_v49 = vpop.f32.mrf.mxu1  ;;  %12067 = vst [vmem:[#allocation31_spill] sm:$0xff] %v10446_v41  ;;  %12068 = vst [vmem:[#allocation27_spill] sm:$0xff] %v10448_v59  ;;  %v6674_v38 = vpack.c.bf16 %v2630_v46, %v2627_v58  ;;  %7720 = vmatpush3.bf16.msra.mxu1 %v8192_v56  ;;  %v12073_v52 = vadd.bf16 %v12071_v13, %v12072_v32  ;;  %v12075_v6 = vld [vmem:[#allocation40_spill] sm:$0xff]  ;;  %v2866_v37 = vmul.bf16 %v9947_v20, %v10459_v10  ;;  %v12076_v56 = vld [vmem:[#allocation34_spill] sm:$0xff] }
 0x437   : > { %12066 = vst [vmem:[#allocation23_spill] sm:$0xff] %v10444_v31  ;;  %12069 = vst [vmem:[#allocation12_spill] sm:$0xff] %v10453_v15  ;;  %v12074_v49 = vld [vmem:[#allocation14_spill] sm:$0xff]  ;;  %v3342_v1 = vadd.bf16 %v12076_v56, %v3155_v42  ;;  %v12077_v45 = vld [vmem:[#allocation32_spill] sm:$0xff]  ;;  %v12078_v51 = vrot.slane %v10169_v16, 4  ;;  %v2867_v18 = vmul.bf16 %v9947_v20, %v10461_v28  ;;  %v12081_v58 = vadd.bf16 %v12079_v23, %v12080_v62 }
 0x438   : > { %12070 = vst [vmem:[#allocation33_spill] sm:$0xff] %v10461_v28  ;;  %v6768_v43 = vcombine.low %v12073_v52, %v3863_v22  ;;  %v10468_v44 = vadd.f32 %v12075_v6, %v12074_v49  ;;  %6764 = vst [vmem:[#allocation2 + $0x48] sm:$0xff] %v6674_v38   ;;  %v3002_v42 = vshll.u32 %v2866_v37, 16  ;;  %v3006_v9 = vshrl.u32 %v2866_v37, 16  ;;  %v12083_v13 = vld [vmem:[#allocation30_spill] sm:$0xff] }
 0x439   : > { %v3458_v35 = vsel %vm10021_vm12, %v12078_v51, %v12077_v45  ;;  %v3385_v16 = vmul.bf16 %v9955_v19, %v10459_v10  ;;  %v12082_v46 = vrot.slane %v12077_v45, 4  ;;  %v3199_v38 = vmul.bf16 %v9973_v57, %v10459_v10  ;;  %v12087_v37 = vld [vmem:[#allocation26_spill] sm:$0xff] }
 0x43a   : > { %6769 = vst [vmem:[#allocation3 + $0x8] sm:$0xff] %v6768_v43   ;;  %v10486_v2 = vadd.bf16 %v3458_v35, %v12081_v58  ;;  %v12084_v32 = vrot.slane %v10184_v12, 4  ;;  %v12085_v43 = vld [vmem:[#allocation39_spill] sm:$0xff]  ;;  %v12086_v49 = vrot.slane %v12083_v13, 4  ;;  %v12088_v56 = vmul.bf16 %v9980_v25, %v12087_v37  ;;  %v12093_v37 = vld [vmem:[#allocation38_spill] sm:$0xff] }
 0x43b   : > { %v3468_v22 = vsel %vm10021_vm12, %v12082_v46, %v10262_v30  ;;  %v12089_v45 = vsel %vm9990_vm4, %v10248_v17, %v10241_v26  ;;  %v10521_v51 = vrot.slane %v3002_v42, 5  ;;  %v3008_v35 = vrot.slane %v3006_v9, 4  ;;  %v10640_v59 = vld [vmem:[#allocation2 + $0x44] sm:$0xf] }
 0x43c   : > { %v10502_v52 = vsel %vm10031_vm13, %v12084_v32, %v12083_v13  ;;  %v10509_v6 = vsel %vm10031_vm13, %v12086_v49, %v12085_v43  ;;  %v10519_v12 = vadd.bf16 %v12089_v45, %v12088_v56  ;;  %v3200_v23 = vmul.bf16 %v9973_v57, %v10461_v28  ;;  %v12094_v56 = vld [vmem:[#allocation37_spill] sm:$0xff]  ;;  %12108 = vst [vmem:[#allocation30_spill] sm:$0xff] %v10640_v59 }
 0x43d   : > { %12090 = vst [vmem:[#allocation13_spill] sm:$0xff] %v10521_v51  ;;  %v10525_v62 = vadd.bf16 %v3468_v22, %v3342_v1  ;;  %v3012_v58 = vshll.u32 %v2867_v18, 16  ;;  %v3016_v46 = vshrl.u32 %v2867_v18, 16  ;;  %v12091_v32 = vrot.slane %v10262_v30, 4 }
 0x43e   : > { %v3386_v17 = vmul.bf16 %v9955_v19, %v10461_v28  ;;  %v3521_v42 = vshrl.u32 %v3385_v16, 16  ;;  %v3524_v9 = vshll.u32 %v3385_v16, 16  ;;  %v12092_v1 = vrot.slane %v10267_v3, 4  ;;  %v10553_v16 = vld [vmem:[#allocation2 + $0x38] sm:$0xf] }
 0x43f   : > { %v3478_v26 = vsel %vm10021_vm12, %v12091_v32, %v10267_v3  ;;  %v3009_v22 = vor.u32 %v3008_v35, %v10521_v51  ;;  %v3275_v49 = vrot.slane %v3199_v38, 5  ;;  %v12095_v45 = vadd.bf16 %v12093_v37, %v12094_v56 }
 0x440   : > { %v10541_v18 = vsel %vm10021_vm12, %v12092_v1, %v10330_v5  ;;  %v10551_v24 = vrot.slane %v3200_v23, 5  ;;  %v12096_v1 = vld [vmem:[#allocation41_spill] sm:$0xff]  ;;  %v12097_v60 = vrot.slane %v12085_v43, 4  ;;  %v2830_v23 = vmul.bf16 %v9980_v25, %v10459_v10 }
 0x441   : > { %v10549_v32 = vadd.bf16 %v3478_v26, %v12095_v45  ;;  %v12098_v35 = vrot.slane %v12096_v1, 4  ;;  %v3014_v56 = vrot.slane %v3012_v58, 5  ;;  %v3018_v45 = vrot.slane %v3016_v46, 4  ;;  %v10575_v43 = vld [vmem:[#allocation2 + $0x3c] sm:$0xf] }
 0x442   : > { %v10562_v38 = vsel %vm10031_vm13, %v12097_v60, %v12096_v1  ;;  %12099 = vst [vmem:[#allocation36_spill] sm:$0xff] %v10575_v43  ;;  %v3523_v36 = vrot.slane %v3521_v42, 5  ;;  %v3526_v60 = vrot.slane %v3524_v9, 6  ;;  %v3531_v40 = vshrl.u32 %v3386_v17, 16 }
 0x443   : > { %v10569_v26 = vsel %vm10031_vm13, %v12098_v35, %v10337_v4  ;;  %v3534_v7 = vshll.u32 %v3386_v17, 16  ;;  %v3010_v48 = vrot.slane %v3009_v22, 4  ;;  %v10579_v1 = vsel %vm10009_vm11, %v3274_v47, %v3275_v49 }
 0x444   : > { %12100 = vst [vmem:[#allocation25_spill] sm:$0xff] %v10579_v1  ;;  %v3277_v35 = vrot.slane %v3275_v49, 4  ;;  %v2868_v30 = vmul.bf16 %v9947_v20, %v10553_v16  ;;  %v3280_v46 = vrot.slane %v10551_v24, 4  ;;  %v2869_v42 = vmul.bf16 %v9947_v20, %v10575_v43 }
 0x445   : > { %v3201_v17 = vmul.bf16 %v9973_v57, %v10553_v16  ;;  %v3722_v47 = vmul.bf16 %v9983_v14, %v10459_v10  ;;  %v3723_v9 = vmul.bf16 %v9983_v14, %v10461_v28  ;;  %v3019_v37 = vor.u32 %v3018_v45, %v3014_v56 }
 0x446   : > { %v3022_v22 = vshll.u32 %v2868_v30, 16  ;;  %v3026_v49 = vshrl.u32 %v2868_v30, 16  ;;  %v10596_v13 = vor.u32 %v3526_v60, %v3523_v36  ;;  %v3533_v58 = vrot.slane %v3531_v40, 5 }
 0x447   : > { %v3536_v3 = vrot.slane %v3534_v7, 6  ;;  %v3015_v41 = vsel %vm9990_vm4, %v3010_v48, %v3014_v56  ;;  %v3202_v31 = vmul.bf16 %v9973_v57, %v10575_v43  ;;  %v3032_v10 = vshll.u32 %v2869_v42, 16 }
 0x448   : > { %12101 = vst [vmem:[#allocation24_spill] sm:$0xff] %v10596_v13  ;;  %v10600_v34 = vrot.slane %v3022_v22, 5  ;;  %v3028_v15 = vrot.slane %v3026_v49, 4  ;;  %v3036_v1 = vshrl.u32 %v2869_v42, 16  ;;  %v3281_v33 = vrot.slane %v3201_v17, 5 }
 0x449   : > { %v3387_v30 = vmul.bf16 %v9955_v19, %v10553_v16  ;;  %v10609_v36 = vsel %vm10009_vm11, %v3277_v35, %v10551_v24  ;;  %v10611_v7 = vrot.slane %v3722_v47, 6  ;;  %v10613_v48 = vrot.slane %v3723_v9, 6  ;;  %v10638_v13 = vld [vmem:[#allocation2 + $0x40] sm:$0xf] }
 0x44a   : > { %12102 = vst [vmem:[#allocation14_spill] sm:$0xff] %v10600_v34  ;;  %12103 = vst [vmem:[#allocation40_spill] sm:$0xff] %v10609_v36  ;;  %v3029_v40 = vor.u32 %v3028_v15, %v10600_v34  ;;  %v10616_v56 = vrot.slane %v3019_v37, 4  ;;  %v10618_v45 = vadd.bf16 %v3015_v41, %v2830_v23  ;;  %v2832_v60 = vmul.bf16 %v9980_v25, %v10553_v16  ;;  %v3910_v15 = vld [vmem:[#allocation3 + $0x8] sm:$0xf] }
 0x44b   : > { %12104 = vst [vmem:[#allocation34_spill] sm:$0xff] %v10611_v7  ;;  %12105 = vst [vmem:[#allocation32_spill] sm:$0xff] %v10613_v48  ;;  %v3388_v42 = vmul.bf16 %v9955_v19, %v10575_v43  ;;  %v10625_v24 = vor.u32 %v3536_v3, %v3533_v58  ;;  %v10629_v47 = vrot.slane %v3202_v31, 5  ;;  %v10631_v37 = vld [vmem:[#allocation3 + $0xc] sm:$0xf]  ;;  %v3034_v41 = vrot.slane %v3032_v10, 5 }
 0x44c   : > { %12106 = vst [vmem:[#allocation28_spill] sm:$0xff] %v10618_v45  ;;  %v3038_v23 = vrot.slane %v3036_v1, 4  ;;  %v3283_v9 = vrot.slane %v3281_v33, 4  ;;  %v3541_v22 = vshrl.u32 %v3387_v30, 16  ;;  %v3030_v51 = vrot.slane %v3029_v40, 4 }
 0x44d   : > { %12107 = vst [vmem:[#allocation29_spill] sm:$0xff] %v10625_v24  ;;  %v3544_v17 = vshll.u32 %v3387_v30, 16  ;;  %v3551_v58 = vshrl.u32 %v3388_v42, 16  ;;  %v3554_v35 = vshll.u32 %v3388_v42, 16  ;;  %v6367_v31 = vcombine.low %v3910_v15, %v10631_v37 }
 0x44e   : > { %v10649_v30 = vsel %vm10009_vm11, %v3280_v46, %v3281_v33  ;;  %v3724_v40 = vmul.bf16 %v9983_v14, %v10553_v16  ;;  %v3039_v42 = vor.u32 %v3038_v23, %v3034_v41  ;;  %v10656_v28 = vsel %vm10009_vm11, %v3283_v9, %v10629_v47  ;;  %v3941_v9 = vld [vmem:[#allocation3 + $0x4] sm:$0x8] }
 0x44f   : > { %12109 = vst [vmem:[#allocation39_spill] sm:$0xff] %v10649_v30  ;;  %12110 = vst [vmem:[#allocation26_spill] sm:$0xff] %v10656_v28  ;;  %v3286_v49 = vrot.slane %v10629_v47, 4  ;;  %v3543_v3 = vrot.slane %v3541_v22, 5  ;;  %7622 = vmatmul.mubr.bf16.gmra.mxu1 %v6367_v31  ;;  %v3035_v1 = vsel %vm9990_vm4, %v3030_v51, %v3034_v41  ;;  %v3546_v10 = vrot.slane %v3544_v17, 6 }
 0x450   : > { %7625 = vmatprep.mubr.msk.bf16.mxu1 %vm8586_vm0, %v12026_v55  ;;  %v2870_v33 = vmul.bf16 %v9947_v20, %v10638_v13  ;;  %v2871_v16 = vmul.bf16 %v9947_v20, %v10640_v59  ;;  %v3553_v46 = vrot.slane %v3551_v58, 5  ;;  %v3556_v23 = vrot.slane %v3554_v35, 6 }
 0x451   : > { %v3725_v47 = vmul.bf16 %v9983_v14, %v10575_v43  ;;  %v3389_v22 = vmul.bf16 %v9955_v19, %v10638_v13  ;;  %v10671_v51 = vrot.slane %v3724_v40, 6  ;;  %v6349_v17 = vcombine.low %v3941_v9, %v3910_v15 }
 0x452   : > { %v3042_v41 = vshll.u32 %v2870_v33, 16  ;;  %v3046_v31 = vshrl.u32 %v2870_v33, 16  ;;  %v10673_v48 = vadd.bf16 %v3035_v1, %v2832_v60  ;;  %v3052_v45 = vshll.u32 %v2871_v16, 16 }
 0x453   : > { %v3056_v36 = vshrl.u32 %v2871_v16, 16  ;;  %v3203_v58 = vmul.bf16 %v9973_v57, %v10638_v13  ;;  %v3561_v43 = vshrl.u32 %v3389_v22, 16  ;;  %v3564_v24 = vshll.u32 %v3389_v22, 16 }
 0x454   : > { %12111 = vst [vmem:[#allocation38_spill] sm:$0xff] %v10673_v48  ;;  %v10677_v35 = vrot.slane %v3042_v41, 5  ;;  %v3048_v30 = vrot.slane %v3046_v31, 4  ;;  %v10679_v7 = vrot.slane %v3039_v42, 4  ;;  %v10681_v34 = vor.u32 %v3546_v10, %v3543_v3  ;;  %v10716_v10 = vld [vmem:[#allocation2 + $0x4c] sm:$0xf] }
 0x455   : > { %v10683_v40 = vrot.slane %v3725_v47, 6  ;;  %v3204_v60 = vmul.bf16 %v9973_v57, %v10640_v59  ;;  %v10687_v15 = vor.u32 %v3556_v23, %v3553_v46  ;;  %v10690_v33 = vrot.slane %v6349_v17, 3 }
 0x456   : > { %v3049_v16 = vor.u32 %v3048_v30, %v10677_v35  ;;  %v3054_v9 = vrot.slane %v3052_v45, 5  ;;  %v3058_v41 = vrot.slane %v3056_v36, 4  ;;  %v3287_v22 = vrot.slane %v3203_v58, 5  ;;  %v10710_v58 = vld [vmem:[#allocation2 + $0x48] sm:$0xf] }
 0x457   : > { %12112 = vst [vmem:[#allocation37_spill] sm:$0xff] %v10683_v40  ;;  %v3390_v3 = vmul.bf16 %v9955_v19, %v10640_v59  ;;  %v2834_v42 = vmul.bf16 %v9980_v25, %v10638_v13  ;;  %v3563_v46 = vrot.slane %v3561_v43, 5  ;;  %v3566_v23 = vrot.slane %v3564_v24, 6 }
 0x458   : > { %v10700_v17 = vrot.slane %v3204_v60, 5  ;;  %v3726_v45 = vmul.bf16 %v9983_v14, %v10638_v13  ;;  %v12113_v36 = vadd.bf16 %v10509_v6, %v10525_v62  ;;  %v12114_v30 = vadd.bf16 %v10502_v52, %v10486_v2 }
 0x459   : > { %v3050_v60 = vrot.slane %v3049_v16, 4  ;;  %v3059_v13 = vor.u32 %v3058_v41, %v3054_v9  ;;  %v10720_v6 = vsel %vm10009_vm11, %v3286_v49, %v3287_v22  ;;  %v3571_v62 = vshrl.u32 %v3390_v3, 16 }
 0x45a   : > { %v6770_v31 = vcombine.low %v12114_v30, %v12113_v36  ;;  %12115 = vst [vmem:[#allocation41_spill] sm:$0xff] %v10720_v6  ;;  %v3574_v2 = vshll.u32 %v3390_v3, 16  ;;  %v3289_v52 = vrot.slane %v3287_v22, 4  ;;  %v10722_v36 = vor.u32 %v3566_v23, %v3563_v46 }
 0x45b   : > { %v3727_v30 = vmul.bf16 %v9983_v14, %v10640_v59  ;;  %v2872_v16 = vmul.bf16 %v9947_v20, %v10710_v58  ;;  %v10733_v24 = vrot.slane %v3726_v45, 6  ;;  %v2873_v22 = vmul.bf16 %v9947_v20, %v10716_v10 }
 0x45c   : > { %6771 = vst [vmem:[#allocation3 + $0x10] sm:$0xff] %v6770_v31   ;;  %12116 = vst [vmem:[#allocation50_spill] sm:$0xff] %v10722_v36  ;;  %v3055_v3 = vsel %vm9990_vm4, %v3050_v60, %v3054_v9  ;;  %v3205_v31 = vmul.bf16 %v9973_v57, %v10710_v58  ;;  %v10741_v43 = vrot.slane %v3059_v13, 4  ;;  %v3573_v1 = vrot.slane %v3571_v62, 5 }
 0x45d   : > { %12117 = vst [vmem:[#allocation51_spill] sm:$0xff] %v10733_v24  ;;  %v3062_v46 = vshll.u32 %v2872_v16, 16  ;;  %v3066_v23 = vshrl.u32 %v2872_v16, 16  ;;  %v3576_v47 = vrot.slane %v3574_v2, 6  ;;  %v3391_v41 = vmul.bf16 %v9955_v19, %v10710_v58 }
 0x45e   : > { %v10746_v49 = vrot.slane %v3727_v30, 6  ;;  %v10750_v9 = vadd.bf16 %v3055_v3, %v2834_v42  ;;  %v3072_v16 = vshll.u32 %v2873_v22, 16  ;;  %v3206_v13 = vmul.bf16 %v9973_v57, %v10716_v10 }
 0x45f   : > { %v10748_v59 = vrot.slane %v3062_v46, 5  ;;  %v3068_v40 = vrot.slane %v3066_v23, 4  ;;  %v10758_v62 = vsel %vm10009_vm11, %v3289_v52, %v10700_v17  ;;  %v3076_v30 = vshrl.u32 %v2873_v22, 16 }
 0x460   : > { %12118 = vst [vmem:[#allocation52_spill] sm:$0xff] %v10746_v49  ;;  %12119 = vst [vmem:[#allocation53_spill] sm:$0xff] %v10750_v9  ;;  %v10762_v46 = vrot.slane %v3205_v31, 5  ;;  %v3392_v42 = vmul.bf16 %v9955_v19, %v10716_v10  ;;  %v3581_v60 = vshrl.u32 %v3391_v41, 16  ;;  %v3584_v24 = vshll.u32 %v3391_v41, 16  ;;  %v12122_v9 = vld [vmem:[#allocation15_spill] sm:$0xff] }
 0x461   : > { %12120 = vst [vmem:[#allocation54_spill] sm:$0xff] %v10758_v62  ;;  %v10768_v48 = vor.u32 %v3576_v47, %v3573_v1  ;;  %v2836_v28 = vmul.bf16 %v9980_v25, %v10710_v58  ;;  %v3069_v22 = vor.u32 %v3068_v40, %v10748_v59  ;;  %v8186_v1 = vld [vmem:[%s11910_s5 + $0xb8] sm:$0xff]   ;;  %v3074_v47 = vrot.slane %v3072_v16, 5  ;;  %v12123_v62 = vld [vmem:[#allocation42_spill] sm:$0xff] }
 0x462   : > { %v3078_v40 = vrot.slane %v3076_v30, 4  ;;  %v3295_v41 = vrot.slane %v10762_v46, 4  ;;  %v3583_v52 = vrot.slane %v3581_v60, 5  ;;  %v3586_v31 = vrot.slane %v3584_v24, 6 }
 0x463   : > { %v3912_v2 = vld [vmem:[#allocation3 + $0x10] sm:$0xf]  ;;  %v10760_v45 = vld [vmem:[#allocation3 + $0x14] sm:$0xf]  ;;  %v3070_v49 = vrot.slane %v3069_v22, 4  ;;  %v3866_v16 = vadd.bf16 %v10562_v38, %v10549_v32  ;;  %v2638_v36 = vadd.f32 %v12123_v62, %v12122_v9  ;;  %v12126_v32 = vsel %vm9990_vm4, %v10343_v63, %v10332_v8 }
 0x464   : > { %v6350_v3 = vcombine.low %v10631_v37, %v3912_v2  ;;  %v6368_v23 = vcombine.low %v3912_v2, %v10760_v45  ;;  %v10780_v2 = vrot.slane %v3206_v13, 5  ;;  %v3591_v37 = vshrl.u32 %v3392_v42, 16 }
 0x465   : > { %v6679_v60 = vpack.c.bf16 %v2638_v36, %v10468_v44  ;;  %v12127_v62 = vrot.slane %v10330_v5, 4  ;;  %v10824_v22 = vor.u32 %v3586_v31, %v3583_v52  ;;  %v3075_v44 = vsel %vm9990_vm4, %v3070_v49, %v3074_v47  ;;  %v12132_v52 = vld [vmem:[#allocation16_spill] sm:$0xff]  ;;  %v12133_v31 = vld [vmem:[#allocation43_spill] sm:$0xff] }
 0x466   : > { %v10776_v6 = vrot.slane %v6350_v3, 3  ;;  %7626 = vmatmul.mubr.bf16.gmra.mxu1 %v6368_v23  ;;  %v12121_v3 = vadd.bf16 %v10311_v53, %v10519_v12  ;;  %v3594_v53 = vshll.u32 %v3392_v42, 16  ;;  %v3728_v12 = vmul.bf16 %v9983_v14, %v10710_v58 }
 0x467   : > { %7629 = vmatprep.mubr.msk.bf16.mxu1 %vm8586_vm0, %v12026_v55  ;;  %v3079_v58 = vor.u32 %v3078_v40, %v3074_v47  ;;  %v3498_v42 = vsel %vm10021_vm12, %v12127_v62, %v10335_v11  ;;  %v3593_v8 = vrot.slane %v3591_v37, 5  ;;  %6765 = vst [vmem:[#allocation2 + $0x50] sm:$0xff] %v6679_v60   ;;  %v12131_v5 = vrot.slane %v10335_v11, 4  ;;  %v8191_v11 = vld [vmem:[%s11910_s5 + $0xa8] sm:$0xff]   ;;  %v12142_v60 = vld [vmem:[#allocation13_spill] sm:$0xff] }
 0x468   : > { %v3680_v23 = vadd.bf16 %v10541_v18, %v12121_v3  ;;  %v4009_v13 = vsel %vm4006_vm14, %v10690_v33, %v10776_v6  ;;  %v3729_v18 = vmul.bf16 %v9983_v14, %v10716_v10  ;;  %v12124_v33 = vld [vmem:[#allocation35_spill] sm:$0xff]  ;;  %v12129_v3 = vld [vmem:[#allocation45_spill] sm:$0xff]  ;;  %v2643_v37 = vadd.f32 %v12133_v31, %v12132_v52  ;;  %v12137_v47 = vld [vmem:[#allocation46_spill] sm:$0xff] }
 0x469   : > { %7566 = vmatmul.mubr.bf16.vlgmr.msra.gmra.mxu0 %v4009_v13  ;;  %v12125_v24 = vmul.bf16 %v9980_v25, %v12124_v33  ;;  %v3508_v36 = vsel %vm10021_vm12, %v12131_v5, %v10408_v0  ;;  %v12134_v13 = vld [vmem:[#allocation17_spill] sm:$0xff]  ;;  %v10841_v33 = vrot.slane %v3728_v12, 6  ;;  %v12147_v52 = vrot.slane %v10700_v17, 4 }
 0x46a   : > { %v3867_v30 = vadd.bf16 %v10569_v26, %v3680_v23  ;;  %7569 = vmatprep.mubr.msk.bf16.mxu0 %vm8586_vm0, %v12026_v55  ;;  %7654 = vmatpush3.bf16.msra.mxu0 %v8186_v1  ;;  %v8189_v26 = vld [vmem:[%s11910_s5 + $0xb0] sm:$0xff]   ;;  %v8193_v17 = vld [vmem:[%s11910_s5 + $0xa0] sm:$0xff]  }
 0x46b   : > { %v3159_v38 = vadd.bf16 %v12126_v32, %v12125_v24  ;;  %7655 = vmatprep.subr.bf16.mxu0 %v12026_v55  ;;  %v12128_v1 = vld [vmem:[#allocation44_spill] sm:$0xff]  ;;  %v10843_v24 = vrot.slane %v3729_v18, 6  ;;  %v12138_v32 = vrot.slane %v10337_v4, 4  ;;  %v12140_v18 = vmul.bf16 %v9980_v25, %v10293_v21 }
 0x46c   : > { %v6772_v9 = vcombine.low %v3866_v16, %v3867_v30  ;;  %v12130_v23 = vadd.bf16 %v12128_v1, %v12129_v3  ;;  %v3596_v30 = vrot.slane %v3594_v53, 6  ;;  %v10867_v4 = vadd.bf16 %v3075_v44, %v2836_v28  ;;  %v12145_v3 = vld [vmem:[#allocation18_spill] sm:$0xff] }
 0x46d   : > { %v3346_v63 = vadd.bf16 %v10381_v61, %v3159_v38  ;;  %v12135_v61 = vld [vmem:[#allocation47_spill] sm:$0xff]  ;;  %12136 = vst [vmem:[#allocation15_spill] sm:$0xff] %v10843_v24  ;;  %v3790_v38 = vsel %vm10031_vm13, %v12138_v32, %v12137_v47  ;;  %v10881_v31 = vsel %vm10009_vm11, %v12147_v52, %v10762_v46  ;;  %v3298_v28 = vrot.slane %v10780_v2, 4  ;;  %v12157_v52 = vld [vmem:[#allocation12_spill] sm:$0xff] }
 0x46e   : > { %v3681_v40 = vadd.bf16 %v3498_v42, %v12130_v23  ;;  %6773 = vst [vmem:[#allocation3 + $0x18] sm:$0xff] %v6772_v9   ;;  %v2646_v16 = vadd.f32 %v12135_v61, %v12134_v13  ;;  %7656 = vmatpush3.bf16.msra.mxu0 %v8189_v26  ;;  %v12139_v9 = vrot.slane %v12137_v47, 4  ;;  %v12141_v26 = vld [vmem:[#allocation27_spill] sm:$0xff]  ;;  %12144 = vst [vmem:[#allocation42_spill] sm:$0xff] %v10867_v4  ;;  %v12146_v23 = vld [vmem:[#allocation48_spill] sm:$0xff] }
 0x46f   : > { %v3682_v49 = vadd.bf16 %v3508_v36, %v3346_v63  ;;  %v12143_v62 = vsel %vm9990_vm4, %v12141_v26, %v12142_v60  ;;  %7657 = vmatprep.subr.bf16.mxu0 %v12026_v55  ;;  %v2651_v5 = vadd.f32 %v12146_v23, %v12145_v3  ;;  %v10889_v44 = vsel %vm10009_vm11, %v3295_v41, %v10780_v2 }
 0x470   : > { %v3793_v53 = vsel %vm10031_vm13, %v12139_v9, %v10417_v54  ;;  %v6684_v12 = vpack.c.bf16 %v2646_v16, %v2643_v37  ;;  %v3161_v42 = vadd.bf16 %v12143_v62, %v12140_v18  ;;  %v3868_v63 = vadd.bf16 %v3790_v38, %v3681_v40  ;;  %v10905_v38 = vld [vmem:[#allocation2 + $0x50] sm:$0xf]  ;;  %v12151_v18 = vld [vmem:[#allocation24_spill] sm:$0xff] }
 0x471   : > { %v3869_v1 = vadd.bf16 %v3793_v53, %v3682_v49  ;;  %v10884_v40 = vrot.slane %v3079_v58, 4  ;;  %v6621_v13 = vpack.c.bf16 %v2651_v5, %v2651_v5  ;;  %v12148_v58 = vld [vmem:[#allocation25_spill] sm:$0xff]  ;;  %v10901_v47 = vor.u32 %v3596_v30, %v3593_v8  ;;  %v12149_v9 = vld [vmem:[#allocation23_spill] sm:$0xff]  ;;  %v12169_v16 = vld [vmem:[#allocation28_spill] sm:$0xff] }
 0x472   : > { %6766 = vst [vmem:[#allocation2 + $0x58] sm:$0xff] %v6684_v12   ;;  %7658 = vmatpush3.bf16.msra.mxu0 %v8191_v11  ;;  %v3348_v49 = vadd.bf16 %v12148_v58, %v3161_v42  ;;  %v12150_v53 = vrot.slane %v10408_v0, 4  ;;  %v12152_v26 = vrot.slane %v12149_v9, 4  ;;  %v10919_v62 = vld [vmem:[#allocation2 + $0x54] sm:$0xf]  ;;  %v2874_v42 = vmul.bf16 %v9947_v20, %v10905_v38  ;;  %v12153_v0 = vld [vmem:[#allocation33_spill] sm:$0xff] }
 0x473   : > { %v6774_v37 = vcombine.low %v3868_v63, %v3869_v1  ;;  %7659 = vmatprep.subr.bf16.mxu0 %v12026_v55  ;;  %2781 = vst [vmem:[#allocation2 + $0x60] sm:$0x3] %v6621_v13  ;;  %v12154_v63 = vmul.bf16 %v9980_v25, %v12153_v0  ;;  %v12155_v1 = vld [vmem:[#allocation14_spill] sm:$0xff]  ;;  %v2875_v5 = vmul.bf16 %v9947_v20, %v10919_v62  ;;  %v12160_v58 = vld [vmem:[#allocation31_spill] sm:$0xff] }
 0x474   : > { %v3518_v12 = vsel %vm10021_vm12, %v12150_v53, %v12149_v9  ;;  %v3528_v60 = vsel %vm10021_vm12, %v12152_v26, %v12151_v18  ;;  %v12156_v3 = vsel %vm9990_vm4, %v10616_v56, %v12155_v1  ;;  %v12162_v53 = vld [vmem:[#allocation34_spill] sm:$0xff]  ;;  %v12163_v26 = vrot.slane %v12160_v58, 4 }
 0x475   : > { %v3914_v11 = vld [vmem:[#allocation3 + $0x18] sm:$0xf]  ;;  %v10903_v32 = vld [vmem:[#allocation3 + $0x1c] sm:$0xf]  ;;  %6775 = vst [vmem:[#allocation3 + $0x20] sm:$0xff] %v6774_v37   ;;  %v3163_v23 = vadd.bf16 %v12156_v3, %v12154_v63  ;;  %v3086_v63 = vshrl.u32 %v2874_v42, 16  ;;  %v10954_v1 = vadd.bf16 %v3528_v60, %v3348_v49 }
 0x476   : > { %v6369_v8 = vcombine.low %v3914_v11, %v10903_v32  ;;  %v6351_v30 = vcombine.low %v10760_v45, %v3914_v11  ;;  %v12158_v37 = vld [vmem:[#allocation49_spill] sm:$0xff]  ;;  %v12161_v11 = vrot.slane %v10417_v54, 4  ;;  %v10950_v56 = vsel %vm10031_vm13, %v12163_v26, %v12162_v53  ;;  %7660 = vmatpush3.bf16.msra.mxu0 %v8193_v17 }
 0x477   : > { %v12159_v45 = vadd.bf16 %v12157_v52, %v12158_v37  ;;  %7661 = vmatprep.subr.bf16.mxu0 %v12026_v55  ;;  %v8197_v54 = vld [vmem:[%s11910_s5 + $0x98] sm:$0xff]   ;;  %v3092_v3 = vshll.u32 %v2875_v5, 16  ;;  %v3096_v52 = vshrl.u32 %v2875_v5, 16  ;;  %v3207_v17 = vmul.bf16 %v9973_v57, %v10905_v38 }
 0x478   : > { %v10943_v9 = vsel %vm10031_vm13, %v12161_v11, %v12160_v58  ;;  %7630 = vmatmul.mubr.bf16.gmra.mxu1 %v6369_v8  ;;  %v10952_v0 = vrot.slane %v6351_v30, 3  ;;  %v12164_v8 = vld [vmem:[#allocation29_spill] sm:$0xff]  ;;  %v12165_v30 = vrot.slane %v12151_v18, 4  ;;  %v3088_v37 = vrot.slane %v3086_v63, 4 }
 0x479   : > { %v10936_v13 = vadd.bf16 %v3518_v12, %v12159_v45  ;;  %v3082_v12 = vshll.u32 %v2874_v42, 16  ;;  %7633 = vmatprep.mubr.msk.bf16.mxu1 %vm8586_vm0, %v12026_v55  ;;  %v12166_v45 = vld [vmem:[#allocation39_spill] sm:$0xff]  ;;  %v3393_v5 = vmul.bf16 %v9955_v19, %v10905_v38  ;;  %v12167_v18 = vrot.slane %v12164_v8, 4 }
 0x47a   : > { %v3538_v49 = vsel %vm10021_vm12, %v12165_v30, %v12164_v8  ;;  %v4011_v60 = vsel %vm4006_vm14, %v10776_v6, %v10952_v0  ;;  %v3350_v58 = vadd.bf16 %v12166_v45, %v3163_v23  ;;  %v12168_v30 = vld [vmem:[#allocation40_spill] sm:$0xff]  ;;  %v12172_v8 = vrot.slane %v12162_v53, 4  ;;  %7662 = vmatpush3.bf16.msra.mxu0 %v8197_v54 }
 0x47b   : > { %v3084_v42 = vrot.slane %v3082_v12, 5  ;;  %7570 = vmatmul.mubr.bf16.gmra.mxu0 %v4011_v60  ;;  %v3548_v26 = vsel %vm10021_vm12, %v12167_v18, %v10681_v34  ;;  %v12170_v6 = vadd.bf16 %v12168_v30, %v12169_v16  ;;  %v12171_v45 = vld [vmem:[#allocation32_spill] sm:$0xff]  ;;  %v3299_v30 = vrot.slane %v3207_v17, 5  ;;  %7663 = vmatprep.subr.bf16.mxu0 %v12026_v55 }
 0x47c   : > { %7573 = vmatprep.mubr.msk.bf16.mxu0 %vm8586_vm0, %v12026_v55  ;;  %v10997_v18 = vsel %vm10031_vm13, %v12172_v8, %v12171_v45  ;;  %v8198_v16 = vld [vmem:[%s11910_s5 + $0x90] sm:$0xff]   ;;  %v3208_v53 = vmul.bf16 %v9973_v57, %v10919_v62  ;;  %v3916_v8 = vld [vmem:[#allocation3 + $0x20] sm:$0xf]  ;;  %v11011_v61 = vld [vmem:[#allocation3 + $0x24] sm:$0xf]  ;;  %v11013_v54 = vadd.bf16 %v3548_v26, %v3350_v58  ;;  %v12176_v23 = vsel %vm9990_vm4, %v10679_v7, %v10677_v35 }
 0x47d   : > { %v10985_v12 = vadd.bf16 %v3538_v49, %v12170_v6  ;;  %v3089_v63 = vor.u32 %v3088_v37, %v3084_v42  ;;  %v11002_v49 = vrot.slane %v3092_v3, 5  ;;  %v11004_v37 = vrot.slane %v3096_v52, 4  ;;  %v12174_v17 = vld [vmem:[#allocation36_spill] sm:$0xff] }
 0x47e   : > { %v3394_v6 = vmul.bf16 %v9955_v19, %v10919_v62  ;;  %v12173_v3 = vrot.slane %v12171_v45, 4  ;;  %v12175_v41 = vmul.bf16 %v9980_v25, %v12174_v17  ;;  %v3601_v36 = vshrl.u32 %v3393_v5, 16  ;;  %7664 = vmatpush3.bf16.msra.mxu0 %v8198_v16 }
 0x47f   : > { %v3604_v58 = vshll.u32 %v3393_v5, 16  ;;  %v12177_v45 = vrot.slane %v10681_v34, 4  ;;  %v2838_v17 = vmul.bf16 %v9980_v25, %v10905_v38  ;;  %v3085_v7 = vsel %vm9990_vm4, %v10884_v40, %v3084_v42  ;;  %v8200_v34 = vld [vmem:[%s11910_s5 + $0x88] sm:$0xff]   ;;  %v11059_v42 = vld [vmem:[#allocation2 + $0x58] sm:$0xf]  ;;  %7665 = vmatprep.subr.bf16.mxu0 %v12026_v55 }
 0x480   : > { %v11020_v52 = vsel %vm10031_vm13, %v12173_v3, %v10671_v51  ;;  %v11030_v46 = vadd.bf16 %v12176_v23, %v12175_v41  ;;  %v3090_v35 = vrot.slane %v3089_v63, 4  ;;  %v12178_v41 = vld [vmem:[#allocation50_spill] sm:$0xff]  ;;  %v12179_v5 = vrot.slane %v10687_v15, 4 }
 0x481   : > { %v11039_v3 = vsel %vm10021_vm12, %v12177_v45, %v10687_v15  ;;  %v3611_v21 = vshrl.u32 %v3394_v6, 16  ;;  %v3614_v26 = vshll.u32 %v3394_v6, 16  ;;  %v6370_v40 = vcombine.low %v3916_v8, %v11011_v61  ;;  %v11071_v45 = vld [vmem:[#allocation2 + $0x5c] sm:$0xf] }
 0x482   : > { %v11051_v23 = vsel %vm10021_vm12, %v12179_v5, %v12178_v41  ;;  %v11066_v15 = vsel %vm10009_vm11, %v3298_v28, %v3299_v30  ;;  %v3301_v63 = vrot.slane %v3299_v30, 4  ;;  %v11068_v16 = vrot.slane %v3208_v53, 5  ;;  %7666 = vmatpush3.bf16.msra.mxu0 %v8200_v34 }
 0x483   : > { %v6352_v5 = vcombine.low %v10903_v32, %v3916_v8  ;;  %v3099_v6 = vor.u32 %v11004_v37, %v11002_v49  ;;  %v12180_v11 = vmul.bf16 %v9980_v25, %v10716_v10  ;;  %v3603_v2 = vrot.slane %v3601_v36, 5  ;;  %7634 = vmatmul.mubr.bf16.gmra.mxu1 %v6370_v40  ;;  %v8201_v36 = vld [vmem:[%s11910_s5 + $0x80] sm:$0xff]   ;;  %7667 = vmatprep.subr.bf16.mxu0 %v12026_v55 }
 0x484   : > { %v3606_v24 = vrot.slane %v3604_v58, 6  ;;  %v3095_v28 = vsel %vm9990_vm4, %v3090_v35, %v11002_v49  ;;  %v3730_v32 = vmul.bf16 %v9983_v14, %v10905_v38  ;;  %7637 = vmatprep.mubr.msk.bf16.mxu1 %vm8586_vm0, %v12026_v55  ;;  %v2876_v10 = vmul.bf16 %v9947_v20, %v11059_v42 }
 0x485   : > { %v11078_v60 = vadd.bf16 %v3085_v7, %v12180_v11  ;;  %v11085_v30 = vrot.slane %v6352_v5, 3  ;;  %v3613_v11 = vrot.slane %v3611_v21, 5  ;;  %v3616_v37 = vrot.slane %v3614_v26, 6 }
 0x486   : > { %v2877_v49 = vmul.bf16 %v9947_v20, %v11071_v45  ;;  %v3209_v38 = vmul.bf16 %v9973_v57, %v11059_v42  ;;  %v3731_v53 = vmul.bf16 %v9983_v14, %v10919_v62  ;;  %v3102_v58 = vshll.u32 %v2876_v10, 16  ;;  %7668 = vmatpush3.bf16.msra.mxu0 %v8201_v36 }
 0x487   : > { %12181 = vst [vmem:[#allocation35_spill] sm:$0xff] %v11078_v60  ;;  %v4013_v8 = vsel %vm4006_vm14, %v10952_v0, %v11085_v30  ;;  %v3106_v7 = vshrl.u32 %v2876_v10, 16  ;;  %v11104_v35 = vadd.bf16 %v3095_v28, %v2838_v17  ;;  %v11109_v21 = vsel %vm10009_vm11, %v3301_v63, %v11068_v16  ;;  %7757 = vmatprep.subr.bf16.mxu0 %v12026_v55  ;;  %v11152_v60 = vld [vmem:[#allocation2 + $0x60] sm:$0x3] }
 0x488   : > { %12183 = vst [vmem:[#allocation45_spill] sm:$0xff] %v11109_v21  ;;  %7574 = vmatmul.mubr.bf16.gmra.mxu0 %v4013_v8  ;;  %v3112_v26 = vshll.u32 %v2877_v49, 16  ;;  %v3116_v34 = vshrl.u32 %v2877_v49, 16  ;;  %v3304_v40 = vrot.slane %v11068_v16, 4  ;;  %v11112_v5 = vor.u32 %v3606_v24, %v3603_v2 }
 0x489   : > { %12182 = vst [vmem:[#allocation44_spill] sm:$0xff] %v11104_v35  ;;  %v3210_v4 = vmul.bf16 %v9973_v57, %v11071_v45  ;;  %v3395_v0 = vmul.bf16 %v9955_v19, %v11059_v42  ;;  %7577 = vmatprep.mubr.msk.bf16.mxu0 %vm8586_vm0, %v12026_v55  ;;  %v3100_v17 = vrot.slane %v3099_v6, 4  ;;  %v11122_v28 = vrot.slane %v3730_v32, 6 }
 0x48a   : > { %v3305_v10 = vrot.slane %v3209_v38, 5  ;;  %v11125_v24 = vor.u32 %v3616_v37, %v3613_v11  ;;  %v11127_v16 = vrot.slane %v3731_v53, 6  ;;  %v3104_v2 = vrot.slane %v3102_v58, 5  ;;  %v2842_v53 = vld [vmem:[#allocation2 + $0x60] sm:$0x1] }
 0x48b   : > { %v3108_v49 = vrot.slane %v3106_v7, 4  ;;  %v11133_v36 = vrot.slane %v3112_v26, 5  ;;  %v3118_v63 = vrot.slane %v3116_v34, 4  ;;  %v11136_v38 = vrot.slane %v3210_v4, 5 }
 0x48c   : > { %v3396_v11 = vmul.bf16 %v9955_v19, %v11071_v45  ;;  %v3621_v37 = vshrl.u32 %v3395_v0, 16  ;;  %v3307_v8 = vrot.slane %v3305_v10, 4  ;;  %v12184_v26 = vadd.bf16 %v10950_v56, %v10954_v1 }
 0x48d   : > { %v12185_v34 = vadd.bf16 %v10943_v9, %v10936_v13  ;;  %v3105_v6 = vsel %vm9990_vm4, %v3100_v17, %v3104_v2  ;;  %v3109_v35 = vor.u32 %v3108_v49, %v3104_v2  ;;  %v3624_v21 = vshll.u32 %v3395_v0, 16 }
 0x48e   : > { %v11157_v7 = vsel %vm10009_vm11, %v3304_v40, %v3305_v10  ;;  %v2878_v56 = vmul.bf16 %v9947_v20, %v2842_v53  ;;  %v3119_v13 = vor.u32 %v3118_v63, %v11133_v36  ;;  %v3310_v9 = vrot.slane %v11136_v38, 4 }
 0x48f   : > { %v6776_v32 = vcombine.low %v12185_v34, %v12184_v26  ;;  %v3623_v1 = vrot.slane %v3621_v37, 5  ;;  %v3631_v26 = vshrl.u32 %v3396_v11, 16  ;;  %v3634_v17 = vshll.u32 %v3396_v11, 16 }
 0x490   : > { %v12186_v0 = vmul.bf16 %v9980_v25, %v10919_v62  ;;  %v11170_v40 = vsel %vm10009_vm11, %v3307_v8, %v11136_v38  ;;  %v3122_v10 = vshll.u32 %v2878_v56, 16  ;;  %v3397_v20 = vmul.bf16 %v9955_v19, %v11152_v60  ;;  %v12187_v8 = vld [vmem:[#allocation41_spill] sm:$0xff] }
 0x491   : > { %6777 = vst [vmem:[#allocation3 + $0x28] sm:$0xff] %v6776_v32   ;;  %v3110_v63 = vrot.slane %v3109_v35, 4  ;;  %v3626_v49 = vrot.slane %v3624_v21, 6  ;;  %v3120_v32 = vrot.slane %v3119_v13, 4  ;;  %v3873_v11 = vadd.bf16 %v11020_v52, %v11013_v54  ;;  %v12189_v21 = vld [vmem:[#allocation26_spill] sm:$0xff] }
 0x492   : > { %v11165_v2 = vadd.bf16 %v3105_v6, %v12186_v0  ;;  %v3732_v62 = vmul.bf16 %v9983_v14, %v11059_v42  ;;  %v3733_v6 = vmul.bf16 %v9983_v14, %v11071_v45  ;;  %v3124_v37 = vrot.slane %v3122_v10, 5  ;;  %v12190_v13 = vld [vmem:[#allocation38_spill] sm:$0xff] }
 0x493   : > { %v3352_v38 = vadd.bf16 %v12187_v8, %v11030_v46  ;;  %v3633_v34 = vrot.slane %v3631_v26, 5  ;;  %v3636_v56 = vrot.slane %v3634_v17, 6  ;;  %v12188_v19 = vadd.bf16 %v10997_v18, %v10985_v12 }
 0x494   : > { %v12191_v0 = vadd.bf16 %v12189_v21, %v12190_v13  ;;  %v3211_v52 = vmul.bf16 %v9973_v57, %v2842_v53  ;;  %v3641_v58 = vshrl.u32 %v3397_v20, 16  ;;  %v3644_v4 = vshll.u32 %v3397_v20, 16  ;;  %v12192_v20 = vld [vmem:[#allocation37_spill] sm:$0xff] }
 0x495   : > { %v6778_v35 = vcombine.low %v12188_v19, %v3873_v11  ;;  %v3688_v10 = vadd.bf16 %v11051_v23, %v3352_v38  ;;  %v3115_v46 = vsel %vm9990_vm4, %v3110_v63, %v11133_v36  ;;  %v3358_v26 = vadd.bf16 %v11157_v7, %v11165_v2  ;;  %v12194_v63 = vld [vmem:[#allocation51_spill] sm:$0xff] }
 0x496   : > { %v3687_v54 = vadd.bf16 %v11039_v3, %v12191_v0  ;;  %v11196_v12 = vor.u32 %v3626_v49, %v3623_v1  ;;  %v3125_v3 = vsel %vm9990_vm4, %v3120_v32, %v3124_v37  ;;  %v12193_v23 = vrot.slane %v10671_v51, 4  ;;  %v12196_v32 = vld [vmem:[#allocation30_spill] sm:$0xff] }
 0x497   : > { %6779 = vst [vmem:[#allocation3 + $0x30] sm:$0xff] %v6778_v35   ;;  %v12195_v11 = vrot.slane %v12192_v20, 4  ;;  %v12197_v37 = vmul.bf16 %v9980_v25, %v12196_v32  ;;  %v12199_v38 = vrot.slane %v12178_v41, 4  ;;  %v11224_v35 = vrot.slane %v3732_v62, 6  ;;  %v12200_v0 = vld [vmem:[#allocation54_spill] sm:$0xff] }
 0x498   : > { %v3918_v18 = vld [vmem:[#allocation3 + $0x28] sm:$0xf]  ;;  %v3919_v17 = vld [vmem:[#allocation3 + $0x2c] sm:$0xf]  ;;  %v3808_v36 = vsel %vm10031_vm13, %v12193_v23, %v12192_v20  ;;  %v3311_v13 = vrot.slane %v3211_v52, 5  ;;  %v12203_v50 = vmul.bf16 %v9980_v25, %v11059_v42  ;;  %v12204_v52 = vmul.bf16 %v9980_v25, %v11071_v45 }
 0x499   : > { %v6371_v57 = vcombine.low %v3918_v18, %v3919_v17  ;;  %v6353_v53 = vcombine.low %v11011_v61, %v3918_v18  ;;  %v3811_v1 = vsel %vm10031_vm13, %v12195_v11, %v12194_v63  ;;  %v3874_v49 = vadd.bf16 %v3808_v36, %v3687_v54  ;;  %v12201_v54 = vld [vmem:[#allocation53_spill] sm:$0xff]  ;;  %v12206_v36 = vld [vmem:[#allocation52_spill] sm:$0xff] }
 0x49a   : > { %v3875_v8 = vadd.bf16 %v3811_v1, %v3688_v10  ;;  %v12198_v61 = vsel %vm9990_vm4, %v10741_v43, %v10748_v59  ;;  %v3578_v19 = vsel %vm10021_vm12, %v12199_v38, %v10768_v48  ;;  %v12202_v10 = vadd.bf16 %v12200_v0, %v12201_v54 }
 0x49b   : > { %v3167_v51 = vadd.bf16 %v12198_v61, %v12197_v37  ;;  %7638 = vmatmul.mubr.bf16.gmra.mxu1 %v6371_v57  ;;  %v4014_v21 = vrot.slane %v6353_v53, 3  ;;  %v11232_v59 = vadd.bf16 %v3115_v46, %v12203_v50  ;;  %v3643_v43 = vrot.slane %v3641_v58, 5  ;;  %v12211_v61 = vld [vmem:[#allocation42_spill] sm:$0xff] }
 0x49c   : > { %v3689_v18 = vadd.bf16 %v3578_v19, %v12202_v10  ;;  %7641 = vmatprep.mubr.msk.bf16.mxu1 %vm8586_vm0, %v12026_v55  ;;  %v6780_v41 = vcombine.low %v3874_v49, %v3875_v8  ;;  %v3173_v53 = vadd.bf16 %v3125_v3, %v12204_v52  ;;  %v3646_v20 = vrot.slane %v3644_v4, 6 }
 0x49d   : > { %v3354_v62 = vadd.bf16 %v10881_v31, %v3167_v51  ;;  %v4015_v57 = vsel %vm4006_vm14, %v11085_v30, %v4014_v21  ;;  %v12205_v42 = vrot.slane %v10768_v48, 4  ;;  %v3637_v46 = vor.u32 %v3636_v56, %v3633_v34 }
 0x49e   : > { %7578 = vmatmul.mubr.bf16.gmra.mxu0 %v4015_v57  ;;  %v3734_v23 = vmul.bf16 %v9983_v14, %v11152_v60  ;;  %6781 = vst [vmem:[#allocation3 + $0x38] sm:$0xff] %v6780_v41   ;;  %v12207_v30 = vrot.slane %v12194_v63, 4  ;;  %v3312_v4 = vsel %vm10009_vm11, %v3310_v9, %v3311_v13  ;;  %v3920_v48 = vld [vmem:[#allocation3 + $0x30] sm:$0xf]  ;;  %v3921_v3 = vld [vmem:[#allocation3 + $0x34] sm:$0xf]  ;;  %v3647_v37 = vor.u32 %v3646_v20, %v3643_v43 }
 0x49f   : > { %v3588_v58 = vsel %vm10021_vm12, %v12205_v42, %v10824_v22  ;;  %7581 = vmatprep.mubr.msk.bf16.mxu0 %vm8586_vm0, %v12026_v55  ;;  %v12208_v34 = vrot.slane %v12206_v36, 4  ;;  %v12209_v63 = vrot.slane %v10824_v22, 4  ;;  %v6372_v29 = vcombine.low %v3920_v48, %v3921_v3  ;;  %v12213_v22 = vld [vmem:[#allocation35_spill] sm:$0xff] }
 0x4a0   : > { %v3690_v31 = vadd.bf16 %v3588_v58, %v3354_v62  ;;  %v3814_v25 = vsel %vm10031_vm13, %v12207_v30, %v12206_v36  ;;  %v6354_v9 = vcombine.low %v3919_v17, %v3920_v48  ;;  %v12210_v49 = vrot.slane %v10901_v47, 4  ;;  %v12215_v17 = vld [vmem:[#allocation15_spill] sm:$0xff]  ;;  %v12220_v30 = vld [vmem:[#allocation45_spill] sm:$0xff] }
 0x4a1   : > { %v3817_v60 = vsel %vm10031_vm13, %v12208_v34, %v10841_v33  ;;  %v3876_v56 = vadd.bf16 %v3814_v25, %v3689_v18  ;;  %v3598_v11 = vsel %vm10021_vm12, %v12209_v63, %v10901_v47  ;;  %v3360_v32 = vadd.bf16 %v3312_v4, %v3173_v53  ;;  %v12221_v25 = vld [vmem:[#allocation44_spill] sm:$0xff] }
 0x4a2   : > { %v3877_v1 = vadd.bf16 %v3817_v60, %v3690_v31  ;;  %v3608_v8 = vsel %vm10021_vm12, %v12210_v49, %v11112_v5  ;;  %v12212_v51 = vadd.bf16 %v10889_v44, %v12211_v61  ;;  %v12214_v19 = vadd.bf16 %v11066_v15, %v12213_v22 }
 0x4a3   : > { %v4016_v0 = vrot.slane %v6354_v9, 3  ;;  %v12216_v10 = vrot.slane %v10841_v33, 4  ;;  %v12217_v18 = vrot.slane %v12215_v17, 4  ;;  %v3639_v44 = vrot.slane %v3637_v46, 4  ;;  %7642 = vmatmul.mubr.bf16.gmra.mxu1 %v6372_v29 }
 0x4a4   : > { %v3691_v38 = vadd.bf16 %v3598_v11, %v12212_v51  ;;  %v3692_v13 = vadd.bf16 %v3608_v8, %v12214_v19  ;;  %v6782_v54 = vcombine.low %v3876_v56, %v3877_v1  ;;  %v3831_v15 = vrot.slane %v3733_v6, 6  ;;  %7645 = vmatprep.mubr.msk.bf16.mxu1 %vm8586_vm0, %v12026_v55  ;;  %v8195_v8 = vld [vmem:[#allocation3 + $0x1c] sm:$0xff]   ;;  %v8199_v19 = vld [vmem:[#allocation3 + $0x24] sm:$0xff]  }
 0x4a5   : > { %v3820_v47 = vsel %vm10031_vm13, %v12216_v10, %v12215_v17  ;;  %v3823_v50 = vsel %vm10031_vm13, %v12217_v18, %v11122_v28  ;;  %v3629_v62 = vrot.slane %v11196_v12, 4  ;;  %v3830_v33 = vrot.slane %v11224_v35, 4  ;;  %v3922_v45 = vld [vmem:[#allocation3 + $0x38] sm:$0xf]  ;;  %v3923_v6 = vld [vmem:[#allocation3 + $0x3c] sm:$0xf] }
 0x4a6   : > { %v3878_v43 = vadd.bf16 %v3820_v47, %v3691_v38  ;;  %v3879_v41 = vadd.bf16 %v3823_v50, %v3692_v13  ;;  %v3834_v57 = vrot.slane %v3734_v23, 6  ;;  %v4017_v52 = vsel %vm4006_vm14, %v4014_v21, %v4016_v0  ;;  %6783 = vst [vmem:[#allocation3 + $0x40] sm:$0xff] %v6782_v54   ;;  %v8202_v17 = vld [vmem:[#allocation3 + $0x2c] sm:$0xff]   ;;  %v8204_v10 = vld [vmem:[#allocation3 + $0x14] sm:$0xff]  }
 0x4a7   : > { %v3359_v53 = vadd.bf16 %v11170_v40, %v11232_v59  ;;  %v3648_v14 = vsel %vm10021_vm12, %v3639_v44, %v3647_v37  ;;  %7582 = vmatmul.mubr.bf16.gmra.mxu0 %v4017_v52  ;;  %v6355_v58 = vcombine.low %v3921_v3, %v3922_v45  ;;  %v12218_v23 = vrot.slane %v11112_v5, 4  ;;  %v8194_v37 = vld [vmem:[#allocation3 + $0x14] sm:$0xfe]   ;;  %v8203_v18 = vld [vmem:[#allocation3 + $0xc] sm:$0xfc]   ;;  %v8206_v52 = vld [vmem:[#allocation3 + $0x1c] sm:$0xff]  }
 0x4a8   : > { %v6784_v20 = vcombine.low %v3878_v43, %v3879_v41  ;;  %v3696_v42 = vadd.bf16 %v3648_v14, %v3360_v32  ;;  %v12219_v31 = vrot.slane %v11125_v24, 4  ;;  %v3833_v59 = vrot.slane %v3831_v15, 4  ;;  %7585 = vmatprep.mubr.msk.bf16.mxu0 %vm8586_vm0, %v12026_v55  ;;  %v8205_v43 = vld [vmem:[#allocation3 + $0x34] sm:$0xff]  }
 0x4a9   : > { %v3618_v21 = vsel %vm10021_vm12, %v12218_v23, %v11125_v24  ;;  %v6373_v36 = vcombine.low %v3922_v45, %v3923_v6  ;;  %v12222_v4 = vadd.bf16 %v12220_v30, %v12221_v25  ;;  %v4018_v3 = vrot.slane %v6355_v58, 3  ;;  %v8216_v45 = vld [vmem:[%s11910_s5 + $0x130] sm:$0xff]   ;;  %v8218_v23 = vld [vmem:[%s11910_s5 + $0x128] sm:$0xff]  }
 0x4aa   : > { %v3628_v40 = vsel %vm10021_vm12, %v12219_v31, %v11196_v12  ;;  %6785 = vst [vmem:[#allocation3 + $0x48] sm:$0xff] %v6784_v20   ;;  %v12223_v24 = vrot.slane %v11122_v28, 4  ;;  %v12224_v34 = vrot.slane %v11127_v16, 4  ;;  %v3835_v56 = vsel %vm10031_vm13, %v3833_v59, %v3834_v57  ;;  %v8208_v31 = vld [vmem:[#allocation3 + $0x24] sm:$0xff]   ;;  %v8219_v59 = vld [vmem:[%s11910_s5 + $0x120] sm:$0xff]  }
 0x4ab   : > { %v3693_v48 = vadd.bf16 %v3618_v21, %v12222_v4  ;;  %v3694_v5 = vadd.bf16 %v3628_v40, %v3358_v26  ;;  %v3638_v7 = vsel %vm10021_vm12, %v3629_v62, %v3637_v46  ;;  %v3883_v2 = vadd.bf16 %v3835_v56, %v3696_v42  ;;  %7646 = vmatmul.mubr.bf16.gmra.mxu1 %v6373_v36  ;;  %v8215_v62 = vld [vmem:[%s11910_s5 + $0x138] sm:$0xff]   ;;  %v8223_v56 = vld [vmem:[%s11910_s5 + $0x108] sm:$0xff]  }
 0x4ac   : > { %v3826_v12 = vsel %vm10031_vm13, %v12223_v24, %v11127_v16  ;;  %v3829_v60 = vsel %vm10031_vm13, %v12224_v34, %v11224_v35  ;;  %v3695_v26 = vadd.bf16 %v3638_v7, %v3359_v53  ;;  %v4019_v28 = vsel %vm4006_vm14, %v4016_v0, %v4018_v3  ;;  %7649 = vmatprep.mubr.msk.bf16.mxu1 %vm8586_vm0, %v12026_v55  ;;  %v8221_v4 = vld [vmem:[%s11910_s5 + $0x118] sm:$0xff]   ;;  %v8222_v24 = vld [vmem:[%s11910_s5 + $0x110] sm:$0xff]  }
 0x4ad   : > { %v3880_v63 = vadd.bf16 %v3826_v12, %v3693_v48  ;;  %v3881_v11 = vadd.bf16 %v3829_v60, %v3694_v5  ;;  %v3924_v29 = vld [vmem:[#allocation3 + $0x40] sm:$0xf]  ;;  %v3832_v16 = vsel %vm10031_vm13, %v3830_v33, %v3831_v15  ;;  %v4717_v61 = vrot.slane %v8195_v8, 1  ;;  %v8210_v5 = vld [vmem:[#allocation3 + $0x2c] sm:$0xff]  }
 0x4ae   : > { %v6356_v35 = vcombine.low %v3923_v6, %v3924_v29  ;;  %v3882_v1 = vadd.bf16 %v3832_v16, %v3695_v26  ;;  %v6374_v39 = vcombine.low %v3924_v29, %v3924_v29  ;;  %v4716_v38 = vrot.slane %v8194_v37, 1  ;;  %v8207_v58 = vld [vmem:[#allocation3 + $0x3c] sm:$0xff]  }
 0x4af   : > { %v6786_v9 = vcombine.low %v3880_v63, %v3881_v11  ;;  %7586 = vmatmul.mubr.bf16.gmra.mxu0 %v4019_v28  ;;  %v4719_v0 = vrot.slane %v8199_v19, 1  ;;  %v4721_v47 = vrot.slane %v8202_v17, 1  ;;  %v4441_v50 = vrot.slane %v8204_v10, 2  ;;  %v8212_v11 = vld [vmem:[#allocation3 + $0x34] sm:$0xff]   ;;  %v8214_v16 = vld [vmem:[#allocation3 + $0x3c] sm:$0xff]  }
 0x4b0   : > { %v6788_v49 = vcombine.low %v3882_v1, %v3883_v2  ;;  %7589 = vmatprep.mubr.msk.bf16.mxu0 %vm8586_vm0, %v12026_v55  ;;  %v4020_v46 = vrot.slane %v6356_v35, 3  ;;  %v4718_v22 = vsel %vm4715_vm15, %v4716_v38, %v4717_v61  ;;  %v4440_v41 = vrot.slane %v8203_v18, 2  ;;  %v8224_v2 = vld [vmem:[%s11910_s5 + $0x100] sm:$0xff]  }
 0x4b1   : > { %6787 = vst [vmem:[#allocation3 + $0x50] sm:$0xff] %v6786_v9   ;;  %v8196_v27 = vld [vmem:[#allocation3 + $0x44] sm:$0x7f]   ;;  %v4720_v54 = vsel %vm4715_vm15, %v4717_v61, %v4719_v0  ;;  %v4722_v15 = vsel %vm4715_vm15, %v4719_v0, %v4721_v47  ;;  %v4723_v14 = vrot.slane %v8205_v43, 1  ;;  %v4443_v20 = vrot.slane %v8206_v52, 2  ;;  %v8225_v38 = vld [vmem:[#allocation3 + $0x1c] sm:$0xff]  }
 0x4b2   : > { %6789 = vst [vmem:[#allocation3 + $0x58] sm:$0xff] %v6788_v49   ;;  %v4021_v32 = vsel %vm4006_vm14, %v4018_v3, %v4020_v46  ;;  %v4022_v51 = vrot.slane %v8196_v27, 3  ;;  %v4442_v57 = vsel %vm4439_vm1, %v4440_v41, %v4441_v50  ;;  %v4725_v40 = vrot.slane %v8207_v58, 1  ;;  %v8209_v25 = vld [vmem:[#allocation3 + $0x44] sm:$0xff]  }
 0x4b3   : > { %7650 = vmatmul.mubr.bf16.gmra.mxu1 %v6374_v39  ;;  %v4724_v42 = vsel %vm4715_vm15, %v4721_v47, %v4723_v14  ;;  %v4444_v21 = vsel %vm4439_vm1, %v4441_v50, %v4443_v20  ;;  %v4445_v36 = vrot.slane %v8208_v31, 2  ;;  %v4727_v3 = vrot.slane %v8209_v25, 1  ;;  %v8226_v0 = vld [vmem:[#allocation3 + $0x24] sm:$0xff]   ;;  %v8228_v47 = vld [vmem:[#allocation3 + $0x34] sm:$0xff]  }
 0x4b4   : > { %7721 = vmatprep.mubr.msk.bf16.mxu1 %vm8586_vm0, %v12026_v55  ;;  %v4023_v13 = vsel %vm4006_vm14, %v4020_v46, %v4022_v51  ;;  %v4726_v30 = vsel %vm4715_vm15, %v4723_v14, %v4725_v40  ;;  %v4447_v12 = vrot.slane %v8210_v5, 2  ;;  %v4449_v26 = vrot.slane %v8212_v11, 2  ;;  %v8217_v46 = vld [vmem:[#allocation3 + $0x44] sm:$0xff]  }
 0x4b5   : > { %v4446_v48 = vsel %vm4439_vm1, %v4443_v20, %v4445_v36  ;;  %v4728_v34 = vsel %vm4715_vm15, %v4725_v40, %v4727_v3  ;;  %v4451_v1 = vrot.slane %v8214_v16, 2  ;;  %v4453_v8 = vrot.slane %v8217_v46, 2  ;;  %v8230_v52 = vld [vmem:[#allocation3 + $0x44] sm:$0xff]  }
 0x4b6   : > { %v4448_v63 = vsel %vm4439_vm1, %v4445_v36, %v4447_v12  ;;  %v4450_v9 = vsel %vm4439_vm1, %v4447_v12, %v4449_v26 }
 0x4b7   : > { %7590 = vmatmul.mubr.bf16.gmra.mxu0 %v4021_v32  ;;  %v4452_v39 = vsel %vm4439_vm1, %v4449_v26, %v4451_v1  ;;  %v4454_v32 = vsel %vm4439_vm1, %v4451_v1, %v4453_v8 }
 0x4b8   : > { %7593 = vmatprep.mubr.msk.bf16.mxu0 %vm8586_vm0, %v12026_v55  ;;  %v8211_v60 = vld [vmem:[#allocation3 + $0x4c] sm:$0xff]  }
 0x4b9   : > { %v4729_v7 = vrot.slane %v8211_v60, 1  ;;  %v8213_v29 = vld [vmem:[#allocation3 + $0x54] sm:$0x1f]   ;;  %v8220_v27 = vld [vmem:[#allocation3 + $0x4c] sm:$0x3f]  }
 0x4ba   : > { %v4731_v35 = vrot.slane %v8213_v29, 1  ;;  %v4455_v37 = vrot.slane %v8220_v27, 2  ;;  %v8231_v40 = vld [vmem:[#allocation3 + $0x4c] sm:$0xff]   ;;  %v8233_v60 = vld [vmem:[#allocation3 + $0x5c] ss:$0 sps:$4 sm:$0xff]  }
 0x4bb   : > { %7722 = vmatmul.mubr.bf16.vlgmr.msra.gmra.mxu1 %v4718_v22  ;;  %v4730_v28 = vsel %vm4715_vm15, %v4727_v3, %v4729_v7  ;;  %v8232_v3 = vld [vmem:[#allocation3 + $0x54] sm:$0xff]  }
 0x4bc   : > { %7725 = vmatprep.mubr.msk.bf16.mxu1 %vm8586_vm0, %v12026_v55  ;;  %v4732_v49 = vsel %vm4715_vm15, %v4729_v7, %v4731_v35  ;;  %v4456_v61 = vsel %vm4439_vm1, %v4453_v8, %v4455_v37 }
 0x4bf   : > { %7594 = vmatmul.mubr.bf16.gmra.mxu0 %v4023_v13 }
 0x4c0   : > { %7597 = vmatprep.mubr.msk.bf16.mxu0 %vm8586_vm0, %v12026_v55 }
 0x4c3   : > { %7726 = vmatmul.mubr.bf16.gmra.mxu1 %v4720_v54  ;;  %v8227_v54 = vld [vmem:[#allocation3 + $0x2c] sm:$0xff]  }
 0x4c4   : > { %7729 = vmatprep.mubr.msk.bf16.mxu1 %vm8586_vm0, %v12026_v55  ;;  %v11356_v44 = vpop.f32.mrf.mxu1 }
 0x4c6   : > { %v7619_v33 = vpop.f32.mrf.mxu1 }
 0x4c7   : > { %7598 = vmatmul.mubr.bf16.gmra.mxu0 %v4022_v51  ;;  %v8229_v33 = vld [vmem:[#allocation3 + $0x3c] sm:$0xff]  }
 0x4c8   : > { %7669 = vmatprep.mubr.msk.bf16.mxu0 %vm8586_vm0, %v12026_v55  ;;  %v11365_v53 = vpop.f32.mrf.mxu1 }
 0x4ca   : > { %v7620_v6 = vpop.f32.mrf.mxu1 }
 0x4cb   : > { %7730 = vmatmul.mubr.bf16.gmra.mxu1 %v4722_v15 }
 0x4cc   : > { %7733 = vmatprep.mubr.msk.bf16.mxu1 %vm8586_vm0, %v12026_v55 }
 0x4cf   : > { %7670 = vmatmul.mubr.bf16.vlgmr.msra.gmra.mxu0 %v4442_v57 }
 0x4d0   : > { %7673 = vmatprep.mubr.msk.bf16.mxu0 %vm8586_vm0, %v12026_v55  ;;  %7758 = vmatpush3.bf16.msra.mxu0 %v8215_v62 }
 0x4d1   : > { %7759 = vmatprep.subr.bf16.mxu0 %v12026_v55 }
 0x4d3   : > { %7734 = vmatmul.mubr.bf16.gmra.mxu1 %v4724_v42 }
 0x4d4   : > { %7760 = vmatpush3.bf16.msra.mxu0 %v8216_v45  ;;  %7737 = vmatprep.mubr.msk.bf16.mxu1 %vm8586_vm0, %v12026_v55 }
 0x4d5   : > { %7761 = vmatprep.subr.bf16.mxu0 %v12026_v55 }
 0x4d7   : > { %7674 = vmatmul.mubr.bf16.gmra.mxu0 %v4444_v21 }
 0x4d8   : > { %7677 = vmatprep.mubr.msk.bf16.mxu0 %vm8586_vm0, %v12026_v55  ;;  %7762 = vmatpush3.bf16.msra.mxu0 %v8218_v23 }
 0x4d9   : > { %7763 = vmatprep.subr.bf16.mxu0 %v12026_v55 }
 0x4db   : > { %7738 = vmatmul.mubr.bf16.gmra.mxu1 %v4726_v30 }
 0x4dc   : > { %7764 = vmatpush3.bf16.msra.mxu0 %v8219_v59  ;;  %7741 = vmatprep.mubr.msk.bf16.mxu1 %vm8586_vm0, %v12026_v55 }
 0x4dd   : > { %7765 = vmatprep.subr.bf16.mxu0 %v12026_v55 }
 0x4df   : > { %7678 = vmatmul.mubr.bf16.gmra.mxu0 %v4446_v48 }
 0x4e0   : > { %7681 = vmatprep.mubr.msk.bf16.mxu0 %vm8586_vm0, %v12026_v55  ;;  %7766 = vmatpush3.bf16.msra.mxu0 %v8221_v4 }
 0x4e1   : > { %7767 = vmatprep.subr.bf16.mxu0 %v12026_v55 }
 0x4e3   : > { %7742 = vmatmul.mubr.bf16.gmra.mxu1 %v4728_v34 }
 0x4e4   : > { %7768 = vmatpush3.bf16.msra.mxu0 %v8222_v24  ;;  %7745 = vmatprep.mubr.msk.bf16.mxu1 %vm8586_vm0, %v12026_v55 }
 0x4e5   : > { %7769 = vmatprep.subr.bf16.mxu0 %v12026_v55 }
 0x4e7   : > { %7682 = vmatmul.mubr.bf16.gmra.mxu0 %v4448_v63 }
 0x4e8   : > { %7685 = vmatprep.mubr.msk.bf16.mxu0 %vm8586_vm0, %v12026_v55  ;;  %7770 = vmatpush3.bf16.msra.mxu0 %v8223_v56 }
 0x4e9   : > { %7771 = vmatprep.subr.bf16.mxu0 %v12026_v55 }
 0x4eb   : > { %7746 = vmatmul.mubr.bf16.gmra.mxu1 %v4730_v28 }
 0x4ec   : > { %7772 = vmatpush3.bf16.msra.mxu0 %v8224_v2  ;;  %7749 = vmatprep.mubr.msk.bf16.mxu1 %vm8586_vm0, %v12026_v55 }
 0x4ed   : > { %7829 = vmatprep.subr.bf16.mxu0 %v12026_v55 }
 0x4ef   : > { %7686 = vmatmul.mubr.bf16.gmra.mxu0 %v4450_v9 }
 0x4f0   : > { %7689 = vmatprep.mubr.msk.bf16.mxu0 %vm8586_vm0, %v12026_v55 }
 0x4f3   : > { %7750 = vmatmul.mubr.bf16.gmra.mxu1 %v4732_v49 }
 0x4f4   : > { %7753 = vmatprep.mubr.msk.bf16.mxu1 %vm8586_vm0, %v12026_v55 }
 0x4f7   : > { %7690 = vmatmul.mubr.bf16.gmra.mxu0 %v4452_v39 }
 0x4f8   : > { %7693 = vmatprep.mubr.msk.bf16.mxu0 %vm8586_vm0, %v12026_v55 }
 0x4fb   : > { %7754 = vmatmul.mubr.bf16.gmra.mxu1 %v4731_v35 }
 0x4ff   : > { %7694 = vmatmul.mubr.bf16.gmra.mxu0 %v4454_v32 }
 0x500   : > { %7697 = vmatprep.mubr.msk.bf16.mxu0 %vm8586_vm0, %v12026_v55 }
 0x507   : > { %7698 = vmatmul.mubr.bf16.gmra.mxu0 %v4456_v61 }
 0x508   : > { %7701 = vmatprep.mubr.msk.bf16.mxu0 %vm8586_vm0, %v12026_v55 }
 0x50f   : > { %7702 = vmatmul.mubr.bf16.gmra.mxu0 %v4455_v37  ;;  %v4297_v51 = vpop.f32.mrf.mxu1 }
 0x510   : > { %7773 = vmatprep.mubr.msk.bf16.mxu0 %vm8586_vm0, %v12026_v55 }
 0x511   : > { %v7623_v22 = vpop.f32.mrf.mxu1 }
 0x513   : > { %v4300_v19 = vpop.f32.mrf.mxu1 }
 0x515   : > { %v7624_v13 = vpop.f32.mrf.mxu1 }
 0x517   : > { %7774 = vmatmul.mubr.bf16.vlgmr.msra.gmra.mxu0 %v8225_v38 }
 0x518   : > { %7777 = vmatprep.mubr.msk.bf16.mxu0 %vm8586_vm0, %v12026_v55 }
 0x51f   : > { %7778 = vmatmul.mubr.bf16.gmra.mxu0 %v8226_v0 }
 0x520   : > { %7781 = vmatprep.mubr.msk.bf16.mxu0 %vm8586_vm0, %v12026_v55 }
 0x526   : > { %v4305_v17 = vpop.f32.mrf.mxu1 }
 0x527   : > { %7782 = vmatmul.mubr.bf16.gmra.mxu0 %v8227_v54 }
 0x528   : > { %7785 = vmatprep.mubr.msk.bf16.mxu0 %vm8586_vm0, %v12026_v55  ;;  %v7627_v10 = vpop.f32.mrf.mxu1 }
 0x529   : > { %v11442_v18 = vpop.f32.mrf.mxu0 }
 0x52a   : > { %v4308_v50 = vpop.f32.mrf.mxu1 }
 0x52b   : > { %v7567_v15 = vpop.f32.mrf.mxu0 }
 0x52c   : > { %v7628_v43 = vpop.f32.mrf.mxu1 }
 0x52d   : > { %v11446_v41 = vpop.f32.mrf.mxu0 }
 0x52f   : > { %7786 = vmatmul.mubr.bf16.gmra.mxu0 %v8228_v47  ;;  %v7568_v62 = vpop.f32.mrf.mxu0 }
 0x530   : > { %7789 = vmatprep.mubr.msk.bf16.mxu0 %vm8586_vm0, %v12026_v55 }
 0x537   : > { %7790 = vmatmul.mubr.bf16.gmra.mxu0 %v8229_v33 }
 0x538   : > { %7793 = vmatprep.mubr.msk.bf16.mxu0 %vm8586_vm0, %v12026_v55  ;;  %v4313_v57 = vpop.f32.mrf.mxu1 }
 0x53a   : > { %v7631_v14 = vpop.f32.mrf.mxu1 }
 0x53b   : > { %v4123_v45 = vpop.f32.mrf.mxu0 }
 0x53c   : > { %v11450_v6 = vadd.f32 %v4297_v51, %v4123_v45  ;;  %v4316_v20 = vpop.f32.mrf.mxu1 }
 0x53d   : > { %v7571_v42 = vpop.f32.mrf.mxu0 }
 0x53e   : > { %v7632_v58 = vpop.f32.mrf.mxu1 }
 0x53f   : > { %7794 = vmatmul.mubr.bf16.gmra.mxu0 %v8230_v52  ;;  %v4126_v23 = vpop.f32.mrf.mxu0 }
 0x540   : > { %7797 = vmatprep.mubr.msk.bf16.mxu0 %vm8586_vm0, %v12026_v55  ;;  %v11454_v21 = vadd.f32 %v4300_v19, %v4126_v23 }
 0x541   : > { %v7572_v31 = vpop.f32.mrf.mxu0 }
 0x543   : > { %v4321_v59 = vpop.f32.mrf.mxu1 }
 0x545   : > { %v7635_v36 = vpop.f32.mrf.mxu1 }
 0x547   : > { %7798 = vmatmul.mubr.bf16.gmra.mxu0 %v8231_v40  ;;  %v4324_v25 = vpop.f32.mrf.mxu1 }
 0x548   : > { %7801 = vmatprep.mubr.msk.bf16.mxu0 %vm8586_vm0, %v12026_v55  ;;  %v4131_v30 = vpop.f32.mrf.mxu0 }
 0x549   : > { %v11458_v4 = vadd.f32 %v4305_v17, %v4131_v30  ;;  %v7636_v5 = vpop.f32.mrf.mxu1 }
 0x54a   : > { %v7575_v48 = vpop.f32.mrf.mxu0 }
 0x54c   : > { %v4134_v24 = vpop.f32.mrf.mxu0 }
 0x54d   : > { %v11460_v12 = vadd.f32 %v4308_v50, %v4134_v24 }
 0x54e   : > { %v7576_v34 = vpop.f32.mrf.mxu0 }
 0x54f   : > { %7802 = vmatmul.mubr.bf16.gmra.mxu0 %v8232_v3 }
 0x550   : > { %7805 = vmatprep.mubr.msk.bf16.mxu0 %vm8586_vm0, %v12026_v55 }
 0x557   : > { %7806 = vmatmul.mubr.bf16.gmra.mxu0 %v8233_v60 }
 0x558   : > { %7845 = vmatprep.mubr.msk.bf16.mxu0 %vm8586_vm0, %v12026_v55 }
 0x55b   : > { %v4329_v56 = vpop.f32.mrf.mxu1 }
 0x55d   : > { %v7639_v63 = vpop.f32.mrf.mxu1 }
 0x55e   : > { %v4139_v11 = vpop.f32.mrf.mxu0 }
 0x55f   : > { %v11466_v7 = vadd.f32 %v4313_v57, %v4139_v11  ;;  %v4332_v2 = vpop.f32.mrf.mxu1 }
 0x560   : > { %v7579_v26 = vpop.f32.mrf.mxu0 }
 0x561   : > { %v7640_v28 = vpop.f32.mrf.mxu1 }
 0x562   : > { %v4142_v29 = vpop.f32.mrf.mxu0  ;;  %v4290_v28 = vadd.f32 %v11356_v44, %v11442_v18 }
 0x563   : > { %v11468_v9 = vadd.f32 %v4316_v20, %v4142_v29  ;;  %v4337_v16 = vpop.f32.mrf.mxu1 }
 0x564   : > { %v7580_v35 = vpop.f32.mrf.mxu0 }
 0x565   : > { %v7643_v1 = vpop.f32.mrf.mxu1 }
 0x567   : > { %v4147_v49 = vpop.f32.mrf.mxu0  ;;  %v4340_v46 = vpop.f32.mrf.mxu1 }
 0x568   : > { %v11470_v39 = vadd.f32 %v4321_v59, %v4147_v49 }
 0x569   : > { %v7583_v8 = vpop.f32.mrf.mxu0  ;;  %v7644_v32 = vpop.f32.mrf.mxu1 }
 0x56b   : > { %v4150_v27 = vpop.f32.mrf.mxu0  ;;  %v4345_v61 = vpop.f32.mrf.mxu1 }
 0x56c   : > { %v11472_v37 = vadd.f32 %v4324_v25, %v4150_v27 }
 0x56d   : > { %v7584_v51 = vpop.f32.mrf.mxu0  ;;  %v7647_v38 = vpop.f32.mrf.mxu1 }
 0x56f   : > { %v4155_v22 = vpop.f32.mrf.mxu0  ;;  %v4348_v13 = vpop.f32.mrf.mxu1 }
 0x570   : > { %v11474_v19 = vadd.f32 %v4329_v56, %v4155_v22 }
 0x571   : > { %v7587_v0 = vpop.f32.mrf.mxu0  ;;  %v7648_v54 = vpop.f32.mrf.mxu1 }
 0x573   : > { %v4158_v17 = vpop.f32.mrf.mxu0  ;;  %v4353_v47 = vpop.f32.mrf.mxu1 }
 0x574   : > { %v11476_v10 = vadd.f32 %v4332_v2, %v4158_v17 }
 0x575   : > { %v7588_v50 = vpop.f32.mrf.mxu0  ;;  %v7651_v15 = vpop.f32.mrf.mxu1 }
 0x577   : > { %v4163_v43 = vpop.f32.mrf.mxu0  ;;  %v4356_v33 = vpop.f32.mrf.mxu1 }
 0x578   : > { %v11478_v62 = vadd.f32 %v4337_v16, %v4163_v43 }
 0x579   : > { %v7591_v57 = vpop.f32.mrf.mxu0  ;;  %v7652_v52 = vpop.f32.mrf.mxu1 }
 0x57a   : > { %v8587_v57 = vmov 0  }
 0x57b   : > { %v4166_v14 = vpop.f32.mrf.mxu0  ;;  %v4824_v20 = vpop.f32.mrf.mxu1  ;;  %5249 = vmatprep.subr.bf16.mxu1 %v8587_v57 }
 0x57c   : > { %v11480_v45 = vadd.f32 %v4340_v46, %v4166_v14  ;;  %v4293_v46 = vadd.f32 %v11365_v53, %v11446_v41 }
 0x57d   : > { %v7592_v42 = vpop.f32.mrf.mxu0  ;;  %v7723_v58 = vpop.f32.mrf.mxu1 }
 0x57f   : > { %v4171_v23 = vpop.f32.mrf.mxu0  ;;  %v4827_v40 = vpop.f32.mrf.mxu1 }
 0x580   : > { %v11482_v31 = vadd.f32 %v4345_v61, %v4171_v23 }
 0x581   : > { %v7595_v59 = vpop.f32.mrf.mxu0  ;;  %v7724_v36 = vpop.f32.mrf.mxu1 }
 0x583   : > { %v4174_v30 = vpop.f32.mrf.mxu0  ;;  %v4832_v48 = vpop.f32.mrf.mxu1 }
 0x584   : > { %v11484_v25 = vadd.f32 %v4348_v13, %v4174_v30 }
 0x585   : > { %v7596_v5 = vpop.f32.mrf.mxu0  ;;  %v7727_v3 = vpop.f32.mrf.mxu1 }
 0x587   : > { %v4179_v24 = vpop.f32.mrf.mxu0  ;;  %v4835_v60 = vpop.f32.mrf.mxu1 }
 0x588   : > { %v11486_v34 = vadd.f32 %v4353_v47, %v4179_v24 }
 0x589   : > { %v7599_v56 = vpop.f32.mrf.mxu0  ;;  %v7728_v63 = vpop.f32.mrf.mxu1 }
 0x58b   : > { %v4182_v11 = vpop.f32.mrf.mxu0  ;;  %v4840_v2 = vpop.f32.mrf.mxu1 }
 0x58d   : > { %v7600_v26 = vpop.f32.mrf.mxu0  ;;  %v7731_v29 = vpop.f32.mrf.mxu1 }
 0x58f   : > { %v4548_v16 = vpop.f32.mrf.mxu0  ;;  %v4843_v1 = vpop.f32.mrf.mxu1 }
 0x590   : > { %v4618_v35 = vadd.f32 %v4548_v16, %v4290_v28 }
 0x591   : > { %v7671_v49 = vpop.f32.mrf.mxu0  ;;  %v7732_v8 = vpop.f32.mrf.mxu1 }
 0x592   : > { %v11492_v32 = vadd.f32 %v4824_v20, %v4618_v35 }
 0x593   : > { %v4551_v27 = vpop.f32.mrf.mxu0  ;;  %v4848_v51 = vpop.f32.mrf.mxu1 }
 0x594   : > { %v4619_v61 = vadd.f32 %v4551_v27, %v4293_v46 }
 0x595   : > { %v7672_v38 = vpop.f32.mrf.mxu0  ;;  %v7735_v22 = vpop.f32.mrf.mxu1 }
 0x596   : > { %v11494_v13 = vadd.f32 %v4827_v40, %v4619_v61 }
 0x597   : > { %v4556_v0 = vpop.f32.mrf.mxu0  ;;  %v4851_v18 = vpop.f32.mrf.mxu1 }
 0x598   : > { %v4620_v44 = vadd.f32 %v4556_v0, %v11450_v6 }
 0x599   : > { %v7675_v54 = vpop.f32.mrf.mxu0  ;;  %v7736_v17 = vpop.f32.mrf.mxu1 }
 0x59a   : > { %v11497_v47 = vadd.f32 %v4832_v48, %v4620_v44 }
 0x59b   : > { %v4559_v50 = vpop.f32.mrf.mxu0  ;;  %v4856_v41 = vpop.f32.mrf.mxu1 }
 0x59c   : > { %v4621_v53 = vadd.f32 %v4559_v50, %v11454_v21 }
 0x59d   : > { %v7676_v15 = vpop.f32.mrf.mxu0  ;;  %v7739_v43 = vpop.f32.mrf.mxu1 }
 0x59e   : > { %v11500_v33 = vadd.f32 %v4835_v60, %v4621_v53 }
 0x59f   : > { %v4564_v52 = vpop.f32.mrf.mxu0  ;;  %v4859_v6 = vpop.f32.mrf.mxu1 }
 0x5a0   : > { %v4622_v14 = vadd.f32 %v4564_v52, %v11458_v4 }
 0x5a1   : > { %v7679_v20 = vpop.f32.mrf.mxu0  ;;  %v7740_v42 = vpop.f32.mrf.mxu1 }
 0x5a2   : > { %v11504_v58 = vadd.f32 %v4840_v2, %v4622_v14 }
 0x5a3   : > { %v4567_v23 = vpop.f32.mrf.mxu0  ;;  %v4864_v21 = vpop.f32.mrf.mxu1 }
 0x5a4   : > { %v4623_v40 = vadd.f32 %v4567_v23, %v11460_v12 }
 0x5a5   : > { %v7680_v59 = vpop.f32.mrf.mxu0  ;;  %v7743_v36 = vpop.f32.mrf.mxu1 }
 0x5a6   : > { %v11507_v30 = vadd.f32 %v4843_v1, %v4623_v40 }
 0x5a7   : > { %v4572_v48 = vpop.f32.mrf.mxu0  ;;  %v4867_v3 = vpop.f32.mrf.mxu1 }
 0x5a8   : > { %v4624_v5 = vadd.f32 %v4572_v48, %v11466_v7 }
 0x5a9   : > { %v7683_v24 = vpop.f32.mrf.mxu0  ;;  %v7744_v60 = vpop.f32.mrf.mxu1 }
 0x5aa   : > { %v11510_v4 = vadd.f32 %v4848_v51, %v4624_v5 }
 0x5ab   : > { %v4575_v56 = vpop.f32.mrf.mxu0  ;;  %v4872_v11 = vpop.f32.mrf.mxu1 }
 0x5ac   : > { %v4625_v63 = vadd.f32 %v4575_v56, %v11468_v9 }
 0x5ad   : > { %v7684_v2 = vpop.f32.mrf.mxu0  ;;  %v7747_v26 = vpop.f32.mrf.mxu1 }
 0x5ae   : > { %v11513_v12 = vadd.f32 %v4851_v18, %v4625_v63  ;;  %v11550_v26 = vld [vmem:[%s11911_s6] ss:$0 sm:$0xff] }
 0x5af   : > { %v4580_v28 = vpop.f32.mrf.mxu0  ;;  %v4875_v16 = vpop.f32.mrf.mxu1 }
 0x5b0   : > { %v4626_v29 = vadd.f32 %v4580_v28, %v11470_v39 }
 0x5b1   : > { %v7687_v35 = vpop.f32.mrf.mxu0  ;;  %v7748_v1 = vpop.f32.mrf.mxu1 }
 0x5b2   : > { %v11516_v7 = vadd.f32 %v4856_v41, %v4626_v29 }
 0x5b3   : > { %v4583_v49 = vpop.f32.mrf.mxu0  ;;  %v4880_v8 = vpop.f32.mrf.mxu1 }
 0x5b4   : > { %v4627_v46 = vadd.f32 %v4583_v49, %v11472_v37 }
 0x5b5   : > { %v7688_v27 = vpop.f32.mrf.mxu0  ;;  %v7751_v61 = vpop.f32.mrf.mxu1 }
 0x5b6   : > { %v11519_v9 = vadd.f32 %v4859_v6, %v4627_v46 }
 0x5b7   : > { %v4588_v51 = vpop.f32.mrf.mxu0  ;;  %v4883_v22 = vpop.f32.mrf.mxu1 }
 0x5b8   : > { %v4628_v38 = vadd.f32 %v4588_v51, %v11474_v19 }
 0x5b9   : > { %v7691_v0 = vpop.f32.mrf.mxu0  ;;  %v7752_v44 = vpop.f32.mrf.mxu1 }
 0x5ba   : > { %v11522_v39 = vadd.f32 %v4864_v21, %v4628_v38  ;;  %v8236_v21 = vld [vmem:[%s11912_s7 + $0x4] ss:$8 sps:$4 sm:$0xff]  }
 0x5bb   : > { %v4591_v18 = vpop.f32.mrf.mxu0  ;;  %v4888_v17 = vpop.f32.mrf.mxu1  ;;  %6487 = vmatprep.mubr.msk.bf16.mxu1 %vm5238_vm2, %v8236_v21 }
 0x5bc   : > { %v4629_v54 = vadd.f32 %v4591_v18, %v11476_v10 }
 0x5bd   : > { %v7692_v50 = vpop.f32.mrf.mxu0  ;;  %v7755_v53 = vpop.f32.mrf.mxu1 }
 0x5be   : > { %v11525_v37 = vadd.f32 %v4867_v3, %v4629_v54 }
 0x5bf   : > { %v4596_v41 = vpop.f32.mrf.mxu0  ;;  %v4891_v43 = vpop.f32.mrf.mxu1 }
 0x5c0   : > { %v4630_v15 = vadd.f32 %v4596_v41, %v11478_v62 }
 0x5c1   : > { %v7695_v52 = vpop.f32.mrf.mxu0  ;;  %v7756_v14 = vpop.f32.mrf.mxu1 }
 0x5c2   : > { %v11528_v19 = vadd.f32 %v4872_v11, %v4630_v15 }
 0x5c3   : > { %v4599_v6 = vpop.f32.mrf.mxu0 }
 0x5c4   : > { %v4631_v20 = vadd.f32 %v4599_v6, %v11480_v45 }
 0x5c5   : > { %v7696_v42 = vpop.f32.mrf.mxu0 }
 0x5c6   : > { %v11531_v23 = vadd.f32 %v4875_v16, %v4631_v20 }
 0x5c7   : > { %v4604_v10 = vpop.f32.mrf.mxu0 }
 0x5c8   : > { %v4632_v40 = vadd.f32 %v4604_v10, %v11482_v31 }
 0x5c9   : > { %v7699_v62 = vpop.f32.mrf.mxu0 }
 0x5ca   : > { %v11537_v59 = vadd.f32 %v4880_v8, %v4632_v40 }
 0x5cb   : > { %v4607_v36 = vpop.f32.mrf.mxu0 }
 0x5cc   : > { %v4633_v48 = vadd.f32 %v4607_v36, %v11484_v25 }
 0x5cd   : > { %v7700_v45 = vpop.f32.mrf.mxu0 }
 0x5ce   : > { %v11541_v5 = vadd.f32 %v4883_v22, %v4633_v48 }
 0x5cf   : > { %v4612_v3 = vpop.f32.mrf.mxu0 }
 0x5d0   : > { %v4634_v24 = vadd.f32 %v4612_v3, %v11486_v34 }
 0x5d1   : > { %v7703_v31 = vpop.f32.mrf.mxu0 }
 0x5d2   : > { %v11544_v60 = vadd.f32 %v4888_v17, %v4634_v24 }
 0x5d3   : > { %v4615_v56 = vpop.f32.mrf.mxu0 }
 0x5d5   : > { %v7704_v63 = vpop.f32.mrf.mxu0 }
 0x5d7   : > { %v5079_v11 = vpop.f32.mrf.mxu0 }
 0x5d8   : > { %v5149_v2 = vadd.f32 %v5079_v11, %v11492_v32 }
 0x5d9   : > { %v7775_v25 = vpop.f32.mrf.mxu0 }
 0x5da   : > { %v5173_v28 = vadd.f32 %v11550_v26, %v5149_v2 }
 0x5db   : > { %v5082_v29 = vpop.f32.mrf.mxu0 }
 0x5dc   : > { %v5150_v16 = vadd.f32 %v5082_v29, %v11494_v13  ;;  %8484 = vtanh.f32 %v5173_v28 }
 0x5dd   : > { %v7776_v34 = vpop.f32.mrf.mxu0 }
 0x5de   : > { %v5174_v35 = vadd.f32 %v11550_v26, %v5150_v16 }
 0x5df   : > { %v5087_v1 = vpop.f32.mrf.mxu0 }
 0x5e0   : > { %8486 = vtanh.f32 %v5174_v35  ;;  %v5151_v49 = vadd.f32 %v5087_v1, %v11497_v47 }
 0x5e1   : > { %v7779_v32 = vpop.f32.mrf.mxu0 }
 0x5e2   : > { %v5175_v46 = vadd.f32 %v11550_v26, %v5151_v49 }
 0x5e3   : > { %v5090_v8 = vpop.f32.mrf.mxu0 }
 0x5e4   : > { %v5152_v27 = vadd.f32 %v5090_v8, %v11500_v33  ;;  %8488 = vtanh.f32 %v5175_v46 }
 0x5e5   : > { %v7780_v61 = vpop.f32.mrf.mxu0 }
 0x5e6   : > { %v5176_v51 = vadd.f32 %v11550_v26, %v5152_v27 }
 0x5e7   : > { %v5095_v38 = vpop.f32.mrf.mxu0 }
 0x5e8   : > { %8490 = vtanh.f32 %v5176_v51  ;;  %v5153_v13 = vadd.f32 %v5095_v38, %v11504_v58 }
 0x5e9   : > { %v7783_v22 = vpop.f32.mrf.mxu0  ;;  %v11561_v18 = vpop.eup %8484 }
 0x5ea   : > { %v5177_v0 = vadd.f32 %v11550_v26, %v5153_v13 }
 0x5eb   : > { %v5098_v44 = vpop.f32.mrf.mxu0 }
 0x5ec   : > { %v5154_v47 = vadd.f32 %v5098_v44, %v11507_v30  ;;  %8492 = vtanh.f32 %v5177_v0 }
 0x5ed   : > { %v11564_v54 = vpop.eup %8486  ;;  %v7784_v17 = vpop.f32.mrf.mxu0 }
 0x5ee   : > { %v5178_v33 = vadd.f32 %v11550_v26, %v5154_v47  ;;  %v5207_v50 = vpack.c.bf16 %v11564_v54, %v11561_v18  ;;  %v8239_v18 = vld [vmem:[%s11912_s7 + $0x10] ss:$8 sps:$4 sm:$0xff]  }
 0x5ef   : > { %v5103_v53 = vpop.f32.mrf.mxu0  ;;  %v8241_v54 = vld [vmem:[%s11914_s9 + $0x38] sm:$0xff]  }
 0x5f0   : > { %8494 = vtanh.f32 %v5178_v33  ;;  %v5155_v58 = vadd.f32 %v5103_v53, %v11510_v4  ;;  %7830 = vmatpush3.bf16.msra.mxu0 %v8241_v54 }
 0x5f1   : > { %v7787_v41 = vpop.f32.mrf.mxu0  ;;  %v11571_v52 = vpop.eup %8488  ;;  %7831 = vmatprep.subr.bf16.mxu0 %v12026_v55 }
 0x5f2   : > { %v5179_v15 = vadd.f32 %v11550_v26, %v5155_v58 }
 0x5f3   : > { %v5106_v43 = vpop.f32.mrf.mxu0 }
 0x5f4   : > { %v5156_v30 = vadd.f32 %v5106_v43, %v11513_v12  ;;  %8496 = vtanh.f32 %v5179_v15 }
 0x5f5   : > { %v11574_v14 = vpop.eup %8490  ;;  %v7788_v6 = vpop.f32.mrf.mxu0 }
 0x5f6   : > { %v5180_v20 = vadd.f32 %v11550_v26, %v5156_v30  ;;  %v5208_v42 = vpack.c.bf16 %v11574_v14, %v11571_v52  ;;  %v8237_v52 = vld [vmem:[%s11912_s7 + $0x14] ss:$8 sps:$4 sm:$0xff]  }
 0x5f7   : > { %v5111_v10 = vpop.f32.mrf.mxu0  ;;  %v8243_v14 = vld [vmem:[%s11914_s9 + $0x30] sm:$0xff]  }
 0x5f8   : > { %8498 = vtanh.f32 %v5180_v20  ;;  %v5157_v4 = vadd.f32 %v5111_v10, %v11516_v7  ;;  %7832 = vmatpush3.bf16.msra.mxu0 %v8243_v14 }
 0x5f9   : > { %v7791_v40 = vpop.f32.mrf.mxu0  ;;  %v11581_v36 = vpop.eup %8492  ;;  %7833 = vmatprep.subr.bf16.mxu0 %v12026_v55 }
 0x5fa   : > { %v5181_v21 = vadd.f32 %v11550_v26, %v5157_v4 }
 0x5fb   : > { %v5114_v62 = vpop.f32.mrf.mxu0 }
 0x5fc   : > { %v5158_v12 = vadd.f32 %v5114_v62, %v11519_v9  ;;  %8500 = vtanh.f32 %v5181_v21  ;;  %v8234_v21 = vld [vmem:[%s11912_s7] ss:$8 sps:$4 sm:$0xff]  }
 0x5fd   : > { %v11584_v48 = vpop.eup %8494  ;;  %v7792_v45 = vpop.f32.mrf.mxu0  ;;  %v8245_v62 = vld [vmem:[%s11914_s9 + $0x28] sm:$0xff]  }
 0x5fe   : > { %v5182_v3 = vadd.f32 %v11550_v26, %v5158_v12  ;;  %v5209_v24 = vpack.c.bf16 %v11584_v48, %v11581_v36  ;;  %7834 = vmatpush3.bf16.msra.mxu0 %v8245_v62  ;;  %v8246_v36 = vld [vmem:[%s11914_s9 + $0x60] sm:$0xff]   ;;  %v8248_v48 = vld [vmem:[%s11914_s9 + $0x58] sm:$0xff]  }
 0x5ff   : > { %v5119_v31 = vpop.f32.mrf.mxu0  ;;  %v8247_v12 = vld [vmem:[%s11914_s9 + $0x20] sm:$0xff]   ;;  %7835 = vmatprep.subr.bf16.mxu0 %v12026_v55  ;;  %v8249_v45 = vld [vmem:[%s11914_s9 + $0x18] sm:$0xff]  }
 0x600   : > { %8502 = vtanh.f32 %v5182_v3  ;;  %v5159_v7 = vadd.f32 %v5119_v31, %v11522_v39  ;;  %v8250_v3 = vld [vmem:[%s11914_s9 + $0x50] sm:$0xff]   ;;  %v8252_v31 = vld [vmem:[%s11914_s9 + $0x48] sm:$0xff]  }
 0x601   : > { %v7795_v56 = vpop.f32.mrf.mxu0  ;;  %v8497_v2 = vpop.eup %8496 }
 0x602   : > { %v5183_v63 = vadd.f32 %v11550_v26, %v5159_v7  ;;  %7836 = vmatpush3.bf16.msra.mxu0 %v8247_v12  ;;  %v8253_v7 = vld [vmem:[%s11914_s9 + $0x8] sm:$0xff]   ;;  %v8254_v56 = vld [vmem:[%s11914_s9 + $0x40] sm:$0xff]  }
 0x603   : > { %v5122_v11 = vpop.f32.mrf.mxu0  ;;  %7837 = vmatprep.subr.bf16.mxu0 %v12026_v55 }
 0x604   : > { %v5160_v9 = vadd.f32 %v5122_v11, %v11525_v37  ;;  %8504 = vtanh.f32 %v5183_v63  ;;  %v8255_v63 = vld [vmem:[%s11914_s9] sm:$0xff]  }
 0x605   : > { %v8499_v25 = vpop.eup %8498  ;;  %v7796_v28 = vpop.f32.mrf.mxu0 }
 0x606   : > { %v5184_v29 = vadd.f32 %v11550_v26, %v5160_v9  ;;  %v5210_v16 = vpack.c.bf16 %v8499_v25, %v8497_v2  ;;  %7838 = vmatpush3.bf16.msra.mxu0 %v8249_v45  ;;  %v5319_v2 = vld [vmem:[%s11913_s8] sm:$0x1]  ;;  %v5343_v25 = vld [vmem:[%s11913_s8] sm:$0x2] }
 0x607   : > { %v5127_v34 = vpop.f32.mrf.mxu0  ;;  %7839 = vmatprep.subr.bf16.mxu0 %v12026_v55  ;;  %v5329_v28 = vshrl.u32 %v5319_v2, 16 }
 0x608   : > { %8506 = vtanh.f32 %v5184_v29  ;;  %v5161_v35 = vadd.f32 %v5127_v34, %v11528_v19  ;;  %v5354_v34 = vshrl.u32 %v5343_v25, 16 }
 0x609   : > { %v7799_v1 = vpop.f32.mrf.mxu0  ;;  %v8501_v32 = vpop.eup %8500 }
 0x60a   : > { %v5185_v39 = vadd.f32 %v11550_v26, %v5161_v35  ;;  %v5330_v1 = vpack.i.b16 %v5329_v28, %v5329_v28 }
 0x60b   : > { %v5130_v49 = vpop.f32.mrf.mxu0 }
 0x60c   : > { %v5162_v46 = vadd.f32 %v5130_v49, %v11531_v23  ;;  %8508 = vtanh.f32 %v5185_v39  ;;  %v5368_v49 = vld [vmem:[%s11913_s8] sm:$0x4] }
 0x60d   : > { %v8503_v8 = vpop.eup %8502  ;;  %v7800_v27 = vpop.f32.mrf.mxu0 }
 0x60e   : > { %v5186_v37 = vadd.f32 %v11550_v26, %v5162_v46  ;;  %v5211_v61 = vpack.c.bf16 %v8503_v8, %v8501_v32  ;;  %v5321_v32 = vpack.i.b16 %v5319_v2, %v5319_v2  ;;  %v5355_v46 = vpack.i.b16 %v5354_v34, %v5354_v34  ;;  %v5393_v27 = vld [vmem:[%s11913_s8] sm:$0x8] }
 0x60f   : > { %v5135_v51 = vpop.f32.mrf.mxu0 }
 0x610   : > { %8510 = vtanh.f32 %v5186_v37  ;;  %v5163_v38 = vadd.f32 %v5135_v51, %v11537_v59  ;;  %v12225_v37 = vld [vmem:[#allocation20_spill] sm:$0xff]  ;;  %v5345_v51 = vpack.i.b16 %v5343_v25, %v5343_v25 }
 0x611   : > { %v7803_v13 = vpop.f32.mrf.mxu0  ;;  %v8505_v0 = vpop.eup %8504 }
 0x612   : > { %v5187_v19 = vadd.f32 %v11550_v26, %v5163_v38  ;;  %v5379_v38 = vshrl.u32 %v5368_v49, 16 }
 0x613   : > { %v5138_v22 = vpop.f32.mrf.mxu0 }
 0x614   : > { %v5164_v44 = vadd.f32 %v5138_v22, %v11541_v5  ;;  %8512 = vtanh.f32 %v5187_v19  ;;  %v5326_v19 = vrot.slane %v5321_v32, %v12225_v37  ;;  %v8262_v32 = vld [vmem:[%s11914_s9 + $0xa0] sm:$0xff]  }
 0x615   : > { %v8507_v47 = vpop.eup %8506  ;;  %v7804_v17 = vpop.f32.mrf.mxu0 }
 0x616   : > { %v5188_v23 = vadd.f32 %v11550_v26, %v5164_v44  ;;  %v5212_v33 = vpack.c.bf16 %v8507_v47, %v8505_v0  ;;  %v12226_v0 = vld [vmem:[#allocation21_spill] sm:$0xff]  ;;  %v5404_v47 = vshrl.u32 %v5393_v27, 16 }
 0x617   : > { %v5143_v53 = vpop.f32.mrf.mxu0  ;;  %v5360_v44 = vrot.slane %v5355_v46, %v12226_v0  ;;  %v8265_v46 = vld [vmem:[%s11914_s9 + $0xd8] sm:$0xff]  }
 0x618   : > { %8514 = vtanh.f32 %v5188_v23  ;;  %v5165_v5 = vadd.f32 %v5143_v53, %v11544_v60 }
 0x619   : > { %v7807_v58 = vpop.f32.mrf.mxu0  ;;  %v8509_v15 = vpop.eup %8508 }
 0x61a   : > { %v5189_v4 = vadd.f32 %v11550_v26, %v5165_v5 }
 0x61b   : > { %v5146_v41 = vpop.f32.mrf.mxu0 }
 0x61c   : > { %8516 = vtanh.f32 %v5189_v4  ;;  %v5350_v41 = vrot.slane %v5345_v51, %v12226_v0  ;;  %v5405_v4 = vpack.i.b16 %v5404_v47, %v5404_v47  ;;  %v8268_v51 = vld [vmem:[%s11914_s9 + $0x88] sm:$0xff]   ;;  %v8272_v0 = vld [vmem:[%s11916_s11 + $0x38] sm:$0xff]  }
 0x61d   : > { %v8511_v43 = vpop.eup %8510  ;;  %v7808_v59 = vpop.f32.mrf.mxu0  ;;  %v8274_v47 = vld [vmem:[%s11916_s11 + $0x28] sm:$0xff]  }
 0x61e   : > { %v5213_v30 = vpack.c.bf16 %v8511_v43, %v8509_v15  ;;  %v5380_v43 = vpack.i.b16 %v5379_v38, %v5379_v38  ;;  %v8271_v38 = vld [vmem:[%s11914_s9 + $0xc0] sm:$0xff]  }
 0x621   : > { %v8513_v6 = vpop.eup %8512 }
 0x625   : > { %v8515_v20 = vpop.eup %8514 }
 0x626   : > { %v5214_v10 = vpack.c.bf16 %v8515_v20, %v8513_v6 }
 0x628   : > { %5250 = vmatpush1.bf16.msra.mxu1 %v5214_v10 }
 0x629   : > { %5251 = vmatprep.subr.bf16.mxu1 %v8587_v57  ;;  %v8517_v60 = vpop.eup %8516 }
 0x62a   : > { %v5215_v26 = vpack.c.bf16 %v8517_v60, %v8517_v60  ;;  %v12228_v60 = vld [vmem:[#allocation22_spill] sm:$0xff] }
 0x62c   : > { %5252 = vmatpush1.bf16.msra.mxu1 %v5213_v30  ;;  %v5247_v40 = vsel %vm5245_vm3, %v5215_v26, 0  ;;  %v12227_v30 = vld [vmem:[#allocation19_spill] sm:$0xff] }
 0x62d   : > { %5253 = vmatprep.subr.bf16.mxu1 %v8587_v57  ;;  %v5399_v6 = vsub.s32 3, %v12227_v30 }
 0x630   : > { %5254 = vmatpush1.bf16.msra.mxu1 %v5212_v33  ;;  %v5370_v33 = vpack.i.b16 %v5368_v49, %v5368_v49  ;;  %v8263_v49 = vld [vmem:[%s11914_s9 + $0xe0] sm:$0xff]  }
 0x631   : > { %5255 = vmatprep.subr.bf16.mxu1 %v8587_v57 }
 0x632   : > { %v5375_v26 = vrot.slane %v5370_v33, %v12228_v60  ;;  %v8280_v33 = vld [vmem:[%s11918_s13 + $0x38] sm:$0xff]  }
 0x634   : > { %5256 = vmatpush1.bf16.msra.mxu1 %v5211_v61  ;;  %v5335_v61 = vrot.slane %v5330_v1, %v12225_v37  ;;  %v8261_v1 = vld [vmem:[%s11914_s9 + $0xe8] sm:$0xff]   ;;  %v8266_v37 = vld [vmem:[%s11914_s9 + $0x90] sm:$0xff]  }
 0x635   : > { %5257 = vmatprep.subr.bf16.mxu1 %v8587_v57 }
 0x638   : > { %5258 = vmatpush1.bf16.msra.mxu1 %v5210_v16 }
 0x639   : > { %5259 = vmatprep.subr.bf16.mxu1 %v8587_v57 }
 0x63c   : > { %5260 = vmatpush1.bf16.msra.mxu1 %v5209_v24  ;;  %v8251_v24 = vld [vmem:[%s11914_s9 + $0x10] sm:$0xff]  }
 0x63d   : > { %5261 = vmatprep.subr.bf16.mxu1 %v8587_v57  ;;  %7840 = vmatpush3.bf16.msra.mxu0 %v8251_v24 }
 0x63e   : > { %7841 = vmatprep.subr.bf16.mxu0 %v12026_v55 }
 0x640   : > { %5262 = vmatpush1.bf16.msra.mxu1 %v5208_v42  ;;  %v8244_v42 = vld [vmem:[%s11914_s9 + $0x68] sm:$0xff]  }
 0x641   : > { %5263 = vmatprep.subr.bf16.mxu1 %v8587_v57  ;;  %7842 = vmatpush3.bf16.msra.mxu0 %v8253_v7 }
 0x642   : > { %7843 = vmatprep.subr.bf16.mxu0 %v12026_v55 }
 0x644   : > { %5264 = vmatpush1.bf16.msra.mxu1 %v5207_v50  ;;  %v8242_v50 = vld [vmem:[%s11914_s9 + $0x70] sm:$0xff]  }
 0x645   : > { %5279 = vmatprep.subr.bf16.mxu1 %v8587_v57  ;;  %v8240_v57 = vld [vmem:[%s11914_s9 + $0x78] sm:$0xff]   ;;  %7844 = vmatpush3.bf16.msra.mxu0 %v8255_v63 }
 0x646   : > { %7869 = vmatprep.subr.bf16.mxu0 %v12026_v55 }
 0x648   : > { %5280 = vmatpush2.bf16.msra.mxu1 %v5247_v40 }
 0x649   : > { %7809 = vmatprep.subr.bf16.mxu1 %v12026_v55 }
 0x64b   : > { %5282 = vmatmul.mubr.bf16.vlgmr.msra.gmra.mxu1 %v8234_v21 }
 0x64c   : > { %6488 = vmatprep.mubr.msk.bf16.mxu1 %vm5238_vm2, %v8237_v52  ;;  %7810 = vmatpush3.bf16.msra.mxu1 %v8240_v57  ;;  %v5385_v52 = vrot.slane %v5380_v43, %v12228_v60  ;;  %v8279_v43 = vld [vmem:[%s11916_s11] sm:$0xff]  }
 0x64d   : > { %7811 = vmatprep.subr.bf16.mxu1 %v12026_v55 }
 0x650   : > { %7812 = vmatpush3.bf16.msra.mxu1 %v8242_v50  ;;  %v5410_v50 = vrot.slane %v5405_v4, %v5399_v6 }
 0x651   : > { %7813 = vmatprep.subr.bf16.mxu1 %v12026_v55 }
 0x653   : > { %5290 = vmatmul.mubr.bf16.gmra.mxu1 %v8239_v18  ;;  %v5395_v18 = vpack.i.b16 %v5393_v27, %v5393_v27  ;;  %v8267_v27 = vld [vmem:[%s11914_s9 + $0xd0] sm:$0xff]  }
 0x654   : > { %7825 = vmatprep.mubr.msk.bf16.mxu1 %vm8586_vm0, %v12026_v55  ;;  %7814 = vmatpush3.bf16.msra.mxu1 %v8244_v42 }
 0x655   : > { %7815 = vmatprep.subr.bf16.mxu1 %v12026_v55 }
 0x658   : > { %7816 = vmatpush3.bf16.msra.mxu1 %v8246_v36 }
 0x659   : > { %7817 = vmatprep.subr.bf16.mxu1 %v12026_v55 }
 0x65c   : > { %7818 = vmatpush3.bf16.msra.mxu1 %v8248_v48  ;;  %v5400_v48 = vrot.slane %v5395_v18, %v5399_v6 }
 0x65d   : > { %7819 = vmatprep.subr.bf16.mxu1 %v12026_v55 }
 0x660   : > { %7820 = vmatpush3.bf16.msra.mxu1 %v8250_v3 }
 0x661   : > { %7821 = vmatprep.subr.bf16.mxu1 %v12026_v55 }
 0x664   : > { %7822 = vmatpush3.bf16.msra.mxu1 %v8252_v31 }
 0x665   : > { %7823 = vmatprep.subr.bf16.mxu1 %v12026_v55 }
 0x668   : > { %7824 = vmatpush3.bf16.msra.mxu1 %v8254_v56 }
 0x669   : > { %7849 = vmatprep.subr.bf16.mxu1 %v12026_v55 }
 0x70b   : > { %v5283_v11 = vpop.f32.mrf.mxu1 }
 0x70d   : > { %v5285_v9 = vpop.f32.mrf.mxu1 }
 0x70e   : > { %v8257_v9 = vld [vmem:[%s11914_s9 + $0xf8] sm:$0xff]  }
 0x70f   : > { %v5286_v29 = vpop.f32.mrf.mxu1 }
 0x710   : > { %v6749_v16 = vpack.c.bf16 %v5286_v29, %v5283_v11  ;;  %v8256_v29 = vld [vmem:[%s11914_s9 + $0xb8] sm:$0xff]  }
 0x711   : > { %v5288_v35 = vpop.f32.mrf.mxu1 }
 0x712   : > { %6750 = vst [vmem:[#allocation4] sm:$0xff] %v6749_v16   ;;  %v8259_v16 = vld [vmem:[%s11914_s9 + $0xf0] sm:$0xff]  }
 0x713   : > { %v5291_v39 = vpop.f32.mrf.mxu1  ;;  %v8258_v35 = vld [vmem:[%s11914_s9 + $0xb0] sm:$0xff]  }
 0x715   : > { %v5293_v8 = vpop.f32.mrf.mxu1 }
 0x716   : > { %v8264_v8 = vld [vmem:[%s11914_s9 + $0x98] sm:$0xff]  }
 0x717   : > { %v5294_v13 = vpop.f32.mrf.mxu1 }
 0x718   : > { %v6754_v22 = vpack.c.bf16 %v5294_v13, %v5291_v39  ;;  %v8260_v39 = vld [vmem:[%s11914_s9 + $0xa8] sm:$0xff]   ;;  %v8270_v13 = vld [vmem:[%s11914_s9 + $0x80] sm:$0xff]  }
 0x719   : > { %v5318_v17 = vld [vmem:[#allocation4] sm:$0x3]  ;;  %v5328_v23 = vld [vmem:[#allocation4] sm:$0xc]  ;;  %v5296_v53 = vpop.f32.mrf.mxu1  ;;  %v5353_v15 = vld [vmem:[#allocation4 + $0x4] sm:$0xc] }
 0x71a   : > { %v5336_v58 = vmul.bf16 %v5335_v61, %v5328_v23  ;;  %6790 = vst [vmem:[#allocation4 + $0x8] sm:$0xff] %v6754_v22   ;;  %v5342_v59 = vld [vmem:[#allocation4 + $0x4] sm:$0x3]  ;;  %v5327_v20 = vmul.bf16 %v5326_v19, %v5318_v17  ;;  %v5361_v5 = vmul.bf16 %v5360_v44, %v5353_v15  ;;  %v8273_v44 = vld [vmem:[%s11916_s11 + $0x30] sm:$0xff]   ;;  %v8275_v17 = vld [vmem:[%s11916_s11 + $0x20] sm:$0xff]  }
 0x71b   : > { %v5351_v21 = vmul.bf16 %v5350_v41, %v5342_v59  ;;  %v8269_v61 = vld [vmem:[%s11914_s9 + $0xc8] sm:$0xff]   ;;  %v8276_v23 = vld [vmem:[%s11916_s11 + $0x18] sm:$0xff]   ;;  %v8281_v53 = vld [vmem:[%s11918_s13 + $0x30] sm:$0xff]  }
 0x71c   : > { %v6493_v10 = vrot.slane %v5336_v58, 10  ;;  %v6494_v54 = vrot.slane %v5361_v5, 10  ;;  %v8277_v58 = vld [vmem:[%s11916_s11 + $0x10] sm:$0xff]   ;;  %v8282_v41 = vld [vmem:[%s11918_s13 + $0x28] sm:$0xff]  }
 0x71d   : > { %v8278_v15 = vld [vmem:[%s11916_s11 + $0x8] sm:$0xff]  }
 0x71e   : > { %v5341_v40 = vadd.bf16 %v6493_v10, %v5327_v20 }
 0x720   : > { %v5352_v57 = vadd.bf16 %v5351_v21, %v5341_v40 }
 0x721   : > { %v5367_v14 = vld [vmem:[#allocation4 + $0x8] sm:$0x3]  ;;  %v5378_v42 = vld [vmem:[#allocation4 + $0x8] sm:$0xc]  ;;  %v5403_v45 = vld [vmem:[#allocation4 + $0xc] sm:$0xc] }
 0x722   : > { %v5366_v62 = vadd.bf16 %v6494_v54, %v5352_v57  ;;  %v5376_v36 = vmul.bf16 %v5375_v26, %v5367_v14  ;;  %v5386_v12 = vmul.bf16 %v5385_v52, %v5378_v42  ;;  %v5392_v3 = vld [vmem:[#allocation4 + $0xc] sm:$0x3]  ;;  %v5411_v7 = vmul.bf16 %v5410_v50, %v5403_v45  ;;  %v5849_v54 = vld [vmem:[%s11915_s10] sm:$0x1] }
 0x723   : > { %v5401_v63 = vmul.bf16 %v5400_v48, %v5392_v3  ;;  %v8283_v3 = vld [vmem:[%s11918_s13 + $0x20] sm:$0xff]  }
 0x724   : > { %v5377_v24 = vadd.bf16 %v5376_v36, %v5366_v62  ;;  %v6495_v31 = vrot.slane %v5386_v12, 10  ;;  %v6496_v2 = vrot.slane %v5411_v7, 10  ;;  %v8286_v7 = vld [vmem:[%s11918_s13 + $0x8] sm:$0xff]  }
 0x726   : > { %v5391_v56 = vadd.bf16 %v6495_v31, %v5377_v24  ;;  %v8284_v24 = vld [vmem:[%s11918_s13 + $0x18] sm:$0xff]   ;;  %v8285_v31 = vld [vmem:[%s11918_s13 + $0x10] sm:$0xff]  }
 0x728   : > { %v5402_v11 = vadd.bf16 %v5401_v63, %v5391_v56  ;;  %v8287_v56 = vld [vmem:[%s11918_s13] sm:$0xff]  }
 0x729   : > { %v5869_v63 = vld [vmem:[%s11917_s12] sm:$0x1] }
 0x72a   : > { %v5416_v25 = vadd.bf16 %v6496_v2, %v5402_v11 }
 0x72c   : > { %v6513_v28 = vcombine.low %v5416_v25, %v5416_v25  ;;  %7846 = vmatmul.mubr.bf16.vlgmr.msra.gmra.mxu0 %v5416_v25 }
 0x72d   : > { %7870 = vmatpush3.bf16.msra.mxu0 %v8257_v9  ;;  %7885 = vmatprep.mubr.msk.bf16.mxu0 %vm8586_vm0, %v12026_v55 }
 0x72e   : > { %v5454_v34 = vshrl.u32 %v6513_v28, 16  ;;  %7871 = vmatprep.subr.bf16.mxu0 %v12026_v55  ;;  %v5650_v22 = vrot.slane %v6513_v28, 1 }
 0x730   : > { %7826 = vmatmul.mubr.bf16.vlgmr.msra.gmra.mxu1 %v5454_v34  ;;  %v5758_v19 = vrot.slane %v5454_v34, 1 }
 0x731   : > { %7850 = vmatpush3.bf16.msra.mxu1 %v8256_v29  ;;  %7872 = vmatpush3.bf16.msra.mxu0 %v8259_v16 }
 0x732   : > { %7851 = vmatprep.subr.bf16.mxu1 %v12026_v55  ;;  %7873 = vmatprep.subr.bf16.mxu0 %v12026_v55 }
 0x733   : > { %7865 = vmatprep.mubr.msk.bf16.mxu1 %vm8586_vm0, %v12026_v55 }
 0x735   : > { %7852 = vmatpush3.bf16.msra.mxu1 %v8258_v35  ;;  %7874 = vmatpush3.bf16.msra.mxu0 %v8261_v1 }
 0x736   : > { %7853 = vmatprep.subr.bf16.mxu1 %v12026_v55  ;;  %7875 = vmatprep.subr.bf16.mxu0 %v12026_v55 }
 0x739   : > { %7854 = vmatpush3.bf16.msra.mxu1 %v8260_v39  ;;  %7876 = vmatpush3.bf16.msra.mxu0 %v8263_v49 }
 0x73a   : > { %7855 = vmatprep.subr.bf16.mxu1 %v12026_v55  ;;  %7877 = vmatprep.subr.bf16.mxu0 %v12026_v55 }
 0x73d   : > { %7856 = vmatpush3.bf16.msra.mxu1 %v8262_v32  ;;  %7878 = vmatpush3.bf16.msra.mxu0 %v8265_v46 }
 0x73e   : > { %7857 = vmatprep.subr.bf16.mxu1 %v12026_v55  ;;  %7879 = vmatprep.subr.bf16.mxu0 %v12026_v55 }
 0x741   : > { %7858 = vmatpush3.bf16.msra.mxu1 %v8264_v8  ;;  %7880 = vmatpush3.bf16.msra.mxu0 %v8267_v27 }
 0x742   : > { %7859 = vmatprep.subr.bf16.mxu1 %v12026_v55  ;;  %7881 = vmatprep.subr.bf16.mxu0 %v12026_v55 }
 0x745   : > { %7860 = vmatpush3.bf16.msra.mxu1 %v8266_v37  ;;  %7882 = vmatpush3.bf16.msra.mxu0 %v8269_v61 }
 0x746   : > { %7861 = vmatprep.subr.bf16.mxu1 %v12026_v55  ;;  %7883 = vmatprep.subr.bf16.mxu0 %v12026_v55 }
 0x749   : > { %7862 = vmatpush3.bf16.msra.mxu1 %v8268_v51  ;;  %7884 = vmatpush3.bf16.msra.mxu0 %v8271_v38 }
 0x74a   : > { %7863 = vmatprep.subr.bf16.mxu1 %v12026_v55  ;;  %7909 = vmatprep.subr.bf16.mxu0 %v12026_v55 }
 0x74c   : > { %7886 = vmatmul.mubr.bf16.vlgmr.msra.gmra.mxu0 %v5758_v19 }
 0x74d   : > { %7864 = vmatpush3.bf16.msra.mxu1 %v8270_v13  ;;  %7925 = vmatprep.mubr.msk.bf16.mxu0 %vm8586_vm0, %v12026_v55 }
 0x74e   : > { %7889 = vmatprep.subr.bf16.mxu1 %v12026_v55  ;;  %7910 = vmatpush3.bf16.msra.mxu0 %v8280_v33 }
 0x74f   : > { %7911 = vmatprep.subr.bf16.mxu0 %v12026_v55 }
 0x750   : > { %7866 = vmatmul.mubr.bf16.vlgmr.msra.gmra.mxu1 %v5650_v22 }
 0x751   : > { %7905 = vmatprep.mubr.msk.bf16.mxu1 %vm8586_vm0, %v12026_v55  ;;  %7890 = vmatpush3.bf16.msra.mxu1 %v8272_v0 }
 0x752   : > { %7891 = vmatprep.subr.bf16.mxu1 %v12026_v55  ;;  %7912 = vmatpush3.bf16.msra.mxu0 %v8281_v53 }
 0x753   : > { %7913 = vmatprep.subr.bf16.mxu0 %v12026_v55 }
 0x755   : > { %7892 = vmatpush3.bf16.msra.mxu1 %v8273_v44 }
 0x756   : > { %7893 = vmatprep.subr.bf16.mxu1 %v12026_v55  ;;  %7914 = vmatpush3.bf16.msra.mxu0 %v8282_v41 }
 0x757   : > { %7915 = vmatprep.subr.bf16.mxu0 %v12026_v55 }
 0x759   : > { %7894 = vmatpush3.bf16.msra.mxu1 %v8274_v47 }
 0x75a   : > { %7895 = vmatprep.subr.bf16.mxu1 %v12026_v55  ;;  %7916 = vmatpush3.bf16.msra.mxu0 %v8283_v3 }
 0x75b   : > { %7917 = vmatprep.subr.bf16.mxu0 %v12026_v55 }
 0x75d   : > { %7896 = vmatpush3.bf16.msra.mxu1 %v8275_v17 }
 0x75e   : > { %7897 = vmatprep.subr.bf16.mxu1 %v12026_v55  ;;  %7918 = vmatpush3.bf16.msra.mxu0 %v8284_v24 }
 0x75f   : > { %7919 = vmatprep.subr.bf16.mxu0 %v12026_v55 }
 0x761   : > { %7898 = vmatpush3.bf16.msra.mxu1 %v8276_v23 }
 0x762   : > { %7899 = vmatprep.subr.bf16.mxu1 %v12026_v55  ;;  %7920 = vmatpush3.bf16.msra.mxu0 %v8285_v31 }
 0x763   : > { %7921 = vmatprep.subr.bf16.mxu0 %v12026_v55 }
 0x765   : > { %7900 = vmatpush3.bf16.msra.mxu1 %v8277_v58 }
 0x766   : > { %7901 = vmatprep.subr.bf16.mxu1 %v12026_v55  ;;  %7922 = vmatpush3.bf16.msra.mxu0 %v8286_v7 }
 0x767   : > { %7923 = vmatprep.subr.bf16.mxu0 %v12026_v55 }
 0x769   : > { %7902 = vmatpush3.bf16.msra.mxu1 %v8278_v15 }
 0x76a   : > { %7903 = vmatprep.subr.bf16.mxu1 %v12026_v55  ;;  %7924 = vmatpush3.bf16.msra.mxu0 %v8287_v56  ;;  %v5976_v55 = vld [vmem:[%s11919_s14] sm:$0x1] }
 0x76d   : > { %7904 = vmatpush3.bf16.msra.mxu1 %v8279_v43 }
 0x7ec   : > { %v5627_v59 = vpop.f32.mrf.mxu0 }
 0x7ee   : > { %v7847_v30 = vpop.f32.mrf.mxu0 }
 0x7f0   : > { %v5539_v6 = vpop.f32.mrf.mxu1  ;;  %v5630_v20 = vpop.f32.mrf.mxu0 }
 0x7f1   : > { %v5628_v21 = vadd.f32 %v5627_v59, %v5539_v6 }
 0x7f2   : > { %v7827_v10 = vpop.f32.mrf.mxu1  ;;  %v7848_v5 = vpop.f32.mrf.mxu0 }
 0x7f4   : > { %v5542_v4 = vpop.f32.mrf.mxu1 }
 0x7f6   : > { %v7828_v60 = vpop.f32.mrf.mxu1 }
 0x80c   : > { %v5842_v26 = vpop.f32.mrf.mxu0 }
 0x80e   : > { %v7887_v40 = vpop.f32.mrf.mxu0 }
 0x810   : > { %v5734_v52 = vpop.f32.mrf.mxu1  ;;  %v5845_v18 = vpop.f32.mrf.mxu0 }
 0x811   : > { %v5740_v57 = vadd.f32 %v5734_v52, %v5628_v21 }
 0x812   : > { %v7867_v50 = vpop.f32.mrf.mxu1  ;;  %v7888_v14 = vpop.f32.mrf.mxu0 }
 0x813   : > { %v5848_v42 = vadd.f32 %v5842_v26, %v5740_v57 }
 0x814   : > { %v5737_v62 = vpop.f32.mrf.mxu1 }
 0x815   : > { %v5850_v36 = vadd.f32 %v5849_v54, %v5848_v42 }
 0x816   : > { %v7868_v12 = vpop.f32.mrf.mxu1 }
 0x817   : > { %8518 = vtanh.f32 %v5850_v36 }
 0x824   : > { %v8519_v48 = vpop.eup %8518 }
 0x825   : > { %v5852_v45 = vpack.c.bf16 %v8519_v48, %v8519_v48 }
 0x827   : > { %7906 = vmatmul.mubr.bf16.vlgmr.msra.gmra.mxu1 %v5852_v45 }
 0x8e7   : > { %v5952_v11 = vpop.f32.mrf.mxu1 }
 0x8e8   : > { %v5953_v2 = vadd.f32 %v5952_v11, %v5869_v63 }
 0x8e9   : > { %v7907_v9 = vpop.f32.mrf.mxu1 }
 0x8ea   : > { %8520 = vtanh.f32 %v5953_v2 }
 0x8eb   : > { %v5955_v25 = vpop.f32.mrf.mxu1 }
 0x8ed   : > { %v7908_v28 = vpop.f32.mrf.mxu1 }
 0x8f7   : > { %v8521_v29 = vpop.eup %8520 }
 0x8f8   : > { %v5959_v16 = vpack.c.bf16 %v8521_v29, %v8521_v29 }
 0x8fa   : > { %7926 = vmatmul.mubr.bf16.vlgmr.msra.gmra.mxu0 %v5959_v16 }
 0x9ba   : > { %v6059_v34 = vpop.f32.mrf.mxu0 }
 0x9bb   : > { %v6060_v35 = vadd.f32 %v6059_v34, %v5976_v55 }
 0x9bc   : > { %v7927_v1 = vpop.f32.mrf.mxu0 }
 0x9bd   : > { %6065 = vst [vmem:[%s486_s30] sm:$0x1] %v6060_v35 }
 0x9be   : > { %v6062_v39 = vpop.f32.mrf.mxu0 }
 0x9bf   : > { %8536 = shalt.err (!%p8533_p3)
}
 0x9c0   : > { %s8537_s29 = scalar_lea.hbm %s11864_s20, 16  ;;  %s8541_s26 = scalar_lea.hbm %s11920_s15, 32 }
 0x9c1   : > { %p8538_p4 = scmp.ne.s32.totalorder %s11864_s20, %s8537_s29  ;;  %p8542_p9 = scmp.lt.s32.totalorder %s11864_s20, %s11920_s15 }
 0x9c2   : > { %p8543_p10 = scmp.lt.s32.totalorder %s8541_s26, %s8537_s29 }
 0x9c3   : > { %p8539_p7 = pnand %p8538_p4, %p8707_p5 }
 0x9c4   : > { %p8544_p11 = por %p8543_p10, %p8542_p9 }
 0x9c5   : > { %p8540_p8 = pneg %p8539_p7 }
 0x9c7   : > { %p8545_p12 = pnand %p8544_p11, %p8540_p8 }
 0x9c9   : > { %8548 = shalt.err (!%p8545_p12)
}
 0x9ca   : > { %7930 = dma.vmem_to_hbm [thread:$0]  (%p8707_p5), %s11866_s16, 16, %s11864_s20, %s6067_s27   ;;  %v7928_v49 = vpop.f32.mrf.mxu0 }
 0x9cb PF: > { %p7936_p13 = scmp.ge.s32.totalorder %s8583_s21, 2  ;;  %s6091_s17 = sand.u32 1, %s8571_s18  }
 0x9cc   : > { %s6092_s0 = scalar_lea.sflag [#allocation6], %s6091_s17 }
 0x9cd   : > { %p7933_p0 = pnand %p7936_p13, %p8711_p6 }
 0x9cf   : > { %p7934_p1 = pneg %p7933_p0 }
 0x9d1   : > { %8566 = dma.done.wait (%p7934_p1), %s6092_s0, 16  }
 0x9d2   : > { %8568 = vsyncadd (%p7934_p1), %s6092_s0, 4294967280  ;;  %s12230_s21 = sld [smem:[#allocation9_spill]]  ;;  %s12233_s18 = smov %s8575_s19 }
 0x9d3   : > { %s12231_s23 = sld [smem:[#allocation8_spill]] }
 0x9d4   : > { %s12232_s20 = sld [smem:[#allocation10_spill]] }
 0x9d8   : > { %p25_p2 = scmp.ge.s32.totalorder %s12230_s21, 4  }
 0x9d9   : > { %s12234_s19 = smov %s12231_s23 }
 0x9da   :  { %27 = sbr.rel (!%p25_p2) target bundleno = 5 (0x5), region = 122 }
 0x9df   :  { %6096 = vsyncpa [#allocation6], 1 }
 0x9e0   :  { %6098 = vsyncpa [#allocation6 + $0x1], 1 }

</bundles_post_ra>
